<compile_context>
chip_gen: v6e
topology: v6e:2x2x1
jax: 0.10.0
libtpu: 0.0.40
codegen_flags: <defaults>
</compile_context>

<pallas_src>
import functools
import math

import jax
import jax.numpy as jnp
import numpy as np
from jax.experimental import pallas as pl
from jax.experimental.pallas import tpu as pltpu

# ---------------- small-config hyperparameters (consistent with the module) ---
IMG_SIZE = 16
PATCH = 4
IN_CHANS = 3
EMBED_DIM = 32
DEPTH = 2
NUM_HEADS = 4
DEC_DIM = 32
DEC_DEPTH = 2
DEC_HEADS = 4
MLP_RATIO = 4.0
MASK_RATIO = 0.75
LN_EPS = 1e-5                      # nn.LayerNorm default
_NEG = -1e30                       # additive bias for padded attention keys
MATMUL_DTYPE = jnp.bfloat16        # MXU operand dtype (f32 accumulation kept)


def _round_up(n, m):
    return ((n + m - 1) // m) * m


# ----------------------------- in-kernel helpers -------------------------------
def _ln(x, g, b, eps=LN_EPS):
    mu = jnp.mean(x, axis=-1, keepdims=True)
    var = jnp.mean((x - mu) ** 2, axis=-1, keepdims=True)
    return (x - mu) * jax.lax.rsqrt(var + eps) * g + b


def _block_body(x, kbias, head_mask, H,
                lnp, wq, wk, wv, qkvb, pw, pb, f1w, f1b, f2w, f2b):
    """One timm Block (pre-LN MHSA + pre-LN MLP).  x: (B, Lp, D) float32."""
    B, Lp, D = x.shape
    Dh = D // H
    scale = Dh ** -0.5
    x2 = x.reshape(B * Lp, D)

    ln1_w, ln1_b = lnp[0:1], lnp[1:2]
    ln2_w, ln2_b = lnp[2:3], lnp[3:4]
    bq, bk, bv = qkvb[0:1], qkvb[1:2], qkvb[2:3]

    # ---- multi-head self attention (qkv_bias=True), heads batched on axis 0 ----
    h1 = _ln(x2, ln1_w, ln1_b)
    h1m = h1.astype(wq.dtype)
    q = (jnp.dot(h1m, wq, preferred_element_type=jnp.float32) + bq).reshape(B, Lp, D)
    k = (jnp.dot(h1m, wk, preferred_element_type=jnp.float32) + bk).reshape(B, Lp, D)
    v = (jnp.dot(h1m, wv, preferred_element_type=jnp.float32) + bv).reshape(B, Lp, D)

    # head_mask: (H, 1, 1, D) one-hot column blocks -> per-head structure without
    # any lane slicing; all matmul operands stay full-width and lane-aligned.
    qh = (q[None] * head_mask).reshape(H * B, Lp, D)
    kh = jnp.broadcast_to(k[None], (H, B, Lp, D)).reshape(H * B, Lp, D)
    vh = (v[None] * head_mask).reshape(H * B, Lp, D)

    s = jnp.einsum('zqd,zkd->zqk', qh.astype(wq.dtype), kh.astype(wq.dtype),
                   preferred_element_type=jnp.float32) * scale
    s = s + kbias                                   # mask padded key tokens
    s = s - jnp.max(s, axis=-1, keepdims=True)
    e = jnp.exp(s)
    p = e / jnp.sum(e, axis=-1, keepdims=True)      # exact softmax division

    o = jnp.einsum('zqk,zkd->zqd', p.astype(wq.dtype), vh.astype(wq.dtype),
                   preferred_element_type=jnp.float32)            # (H*B, Lp, D)
    # per-head outputs occupy disjoint column blocks (v was head-masked),
    # so summing over the head axis reconstructs the concatenated MHSA output.
    o4 = o.reshape(H, B * Lp, D)
    o_cat = o4[0]
    for h in range(1, H):
        o_cat = o_cat + o4[h]

    x2 = x2 + jnp.dot(o_cat.astype(pw.dtype), pw,
                      preferred_element_type=jnp.float32) + pb

    # ---- MLP ------------------------------------------------------------------
    h2 = _ln(x2, ln2_w, ln2_b)
    mid = jnp.dot(h2.astype(f1w.dtype), f1w,
                  preferred_element_type=jnp.float32) + f1b
    # TODO(synk): PyTorch nn.GELU defaults to exact erf-GELU; tanh approximation
    # is used since erf lowering is not guaranteed in Mosaic.
    mid = jax.nn.gelu(mid, approximate=True)
    x2 = x2 + jnp.dot(mid.astype(f2w.dtype), f2w,
                      preferred_element_type=jnp.float32) + f2b
    return x2.reshape(B, Lp, D)


# ------------------------------ fused MAE kernel --------------------------------
def _mae_kernel(
    # per-batch blocks
    xp_ref, keep_sel_ref, restore_sel_ref, mask_ind_ref, target_ref, lmask_ref,
    # patch embed / cls / constant masks
    patch_w_ref, patch_b_ref, pos_ref, cls_ref, cls_ind_ref,
    kbias_enc_ref, kbias_dec_ref, hmask_e_ref, hmask_d_ref,
    # encoder blocks (stacked along depth)
    e_lnp, e_wq, e_wk, e_wv, e_qkvb, e_pw, e_pb, e_f1w, e_f1b, e_f2w, e_f2b,
    enorm_w_ref, enorm_b_ref, demb_w_ref, demb_b_ref,
    pmask_ref, dpos_ref,
    # decoder blocks (stacked along depth)
    d_lnp, d_wq, d_wk, d_wv, d_qkvb, d_pw, d_pb, d_f1w, d_f1b, d_f2w, d_f2b,
    dnorm_w_ref, dnorm_b_ref, pred_w_ref, pred_b_ref,
    # outputs
    pred_ref, loss_ref,
    *, enc_depth, dec_depth, enc_heads, dec_heads, pred_dim):
    Bb, L0, CPP = xp_ref.shape            # Bb == 1 (batch block)
    D = patch_w_ref.shape[1]
    Lp_enc = keep_sel_ref.shape[1]
    Lp_dec = restore_sel_ref.shape[1]

    # ---- patch embed (Conv2d k=p, stride=p as matmul) + positional embedding ----
    tok = jnp.dot(xp_ref[...].reshape(Bb * L0, CPP).astype(patch_w_ref.dtype),
                  patch_w_ref[...], preferred_element_type=jnp.float32)
    tok = (tok + patch_b_ref[...]).reshape(Bb, L0, D) + pos_ref[...]

    # ---- random-masking keep-gather (one-hot matmul) + cls token ----
    x = jnp.einsum('bls,bsd->bld', keep_sel_ref[...], tok,
                   preferred_element_type=jnp.float32)
    x = x + cls_ind_ref[...] * cls_ref[...]

    # ---- encoder blocks ----
    hmask_e = hmask_e_ref[...]
    kbias_e = kbias_enc_ref[...]
    for l in range(enc_depth):
        x = _block_body(x, kbias_e, hmask_e, enc_heads,
                        e_lnp[l], e_wq[l], e_wk[l], e_wv[l], e_qkvb[l],
                        e_pw[l], e_pb[l], e_f1w[l], e_f1b[l], e_f2w[l], e_f2b[l])

    # ---- final encoder LayerNorm + decoder-embed linear (fused) ----
    x2 = _ln(x.reshape(Bb * Lp_enc, D), enorm_w_ref[...], enorm_b_ref[...])
    Dd = demb_w_ref.shape[1]
    y = jnp.dot(x2.astype(demb_w_ref.dtype), demb_w_ref[...],
                preferred_element_type=jnp.float32) + demb_b_ref[...]
    y = y.reshape(Bb, Lp_enc, Dd)

    # ---- decoder token unshuffle (one-hot matmul) + mask tokens + pos embed ----
    xd = jnp.einsum('bls,bsd->bld', restore_sel_ref[...], y,
                    preferred_element_type=jnp.float32)
    xd = xd + mask_ind_ref[...] * pmask_ref[...] + dpos_ref[...]

    # ---- decoder blocks ----
    hmask_d = hmask_d_ref[...]
    kbias_d = kbias_dec_ref[...]
    for l in range(dec_depth):
        xd = _block_body(xd, kbias_d, hmask_d, dec_heads,
                         d_lnp[l], d_wq[l], d_wk[l], d_wv[l], d_qkvb[l],
                         d_pw[l], d_pb[l], d_f1w[l], d_f1b[l], d_f2w[l], d_f2b[l])

    # ---- decoder LayerNorm + prediction head (lane-padded to 128 -> dense store) ----
    xd2 = _ln(xd.reshape(Bb * Lp_dec, Dd), dnorm_w_ref[...], dnorm_b_ref[...])
    P = pred_w_ref.shape[1]
    pred = jnp.dot(xd2.astype(pred_w_ref.dtype), pred_w_ref[...],
                   preferred_element_type=jnp.float32) + pred_b_ref[...]
    pred3 = pred.reshape(Bb, Lp_dec, P)
    pred_ref[...] = pred3.astype(pred_ref.dtype)

    # ---- fused masked pixel-MSE numerator (denominator = mask.sum() in wrapper) ----
    # padded lanes / padded rows / cls row carry zero target & zero mask weight.
    diff = pred3 - target_ref[...]
    per = jnp.sum(diff * diff, axis=-1, keepdims=True) * (1.0 / pred_dim)  # (1,Lp,1)
    num = jnp.sum(per * lmask_ref[...], axis=1, keepdims=True)             # (1,1,1)
    loss_ref[...] = jnp.broadcast_to(num, loss_ref.shape)


# ----------------------------- plain-JAX glue -----------------------------------
def patchify_for_embed(imgs, p):
    # Conv2d(kernel=p, stride=p) == matmul over (c, i, j)-flattened patches.
    B, C, H, W = imgs.shape
    h, w = H // p, W // p
    x = imgs.reshape(B, C, h, p, w, p)
    x = jnp.transpose(x, (0, 2, 4, 1, 3, 5))                 # n h w c p q
    return x.reshape(B, h * w, C * p * p)


def patchify(imgs, p):
    # matches MaskedAutoencoderViT.patchify: nchpwq -> nhwpqc
    B, C, H, W = imgs.shape
    h, w = H // p, W // p
    x = imgs.reshape(B, C, h, p, w, p)
    x = jnp.transpose(x, (0, 2, 4, 3, 5, 1))
    return x.reshape(B, h * w, p * p * C)


def _head_mask(H, D):
    Dh = D // H
    m = (np.arange(D)[None, :] // Dh == np.arange(H)[:, None]).astype(np.float32)
    return jnp.asarray(m).reshape(H, 1, 1, D)


def _stack_blocks(blocks, mm):
    """Stack per-layer params with a leading depth axis; split qkv into q/k/v."""
    D = blocks[0]["qkv_w"].shape[0]
    lnp = jnp.stack([jnp.stack([b["ln1_w"], b["ln1_b"], b["ln2_w"], b["ln2_b"]], 0)
                     for b in blocks], 0)
    qkv_w = jnp.stack([b["qkv_w"] for b in blocks], 0)        # (depth, D, 3D)
    wq = qkv_w[:, :, 0 * D:1 * D].astype(mm)
    wk = qkv_w[:, :, 1 * D:2 * D].astype(mm)
    wv = qkv_w[:, :, 2 * D:3 * D].astype(mm)
    qkvb = jnp.stack([b["qkv_b"].reshape(3, D) for b in blocks], 0)
    pw = jnp.stack([b["proj_w"] for b in blocks], 0).astype(mm)
    pb = jnp.stack([b["proj_b"].reshape(1, -1) for b in blocks], 0)
    f1w = jnp.stack([b["fc1_w"] for b in blocks], 0).astype(mm)
    f1b = jnp.stack([b["fc1_b"].reshape(1, -1) for b in blocks], 0)
    f2w = jnp.stack([b["fc2_w"] for b in blocks], 0).astype(mm)
    f2b = jnp.stack([b["fc2_b"].reshape(1, -1) for b in blocks], 0)
    return [lnp, wq, wk, wv, qkvb, pw, pb, f1w, f1b, f2w, f2b]


# ------------------------------ forward pass ------------------------------------
def mae_forward(params, imgs, key, mask_ratio=MASK_RATIO):
    f32 = jnp.float32
    mm = MATMUL_DTYPE
    B = imgs.shape[0]
    D, Dd = EMBED_DIM, DEC_DIM

    # ---- patchify + random-masking bookkeeping (argsort stays in JAX) ----
    xp = patchify_for_embed(imgs, PATCH)                      # (B, L0, C*p*p)
    L0 = xp.shape[1]
    len_keep = int(L0 * (1 - mask_ratio))
    noise = jax.random.uniform(key, (B, L0))
    ids_shuffle = jnp.argsort(noise, axis=1)
    ids_restore = jnp.argsort(ids_shuffle, axis=1)
    ids_keep = ids_shuffle[:, :len_keep]
    mask = jnp.ones((B, L0), f32).at[:, :len_keep].set(0.0)
    mask = jnp.take_along_axis(mask, ids_restore, axis=1)     # (B, L0), 1 = removed

    l_enc, l_dec = 1 + len_keep, 1 + L0
    Lp_enc, Lp_dec = _round_up(l_enc, 8), _round_up(l_dec, 8)

    # ---- one-hot gather matrices: in-kernel gathers become MXU matmuls ----
    keep_sel = jnp.zeros((B, Lp_enc, L0), f32)
    keep_sel = keep_sel.at[:, 1:1 + len_keep, :].set(
        jax.nn.one_hot(ids_keep, L0, dtype=f32))
    is_kept = ids_restore < len_keep
    rows = jax.nn.one_hot(jnp.where(is_kept, ids_restore + 1, 0), Lp_enc, dtype=f32)
    rows = rows * is_kept[..., None].astype(f32)
    restore_sel = jnp.zeros((B, Lp_dec, Lp_enc), f32)
    restore_sel = restore_sel.at[:, 0, 0].set(1.0)            # cls row
    restore_sel = restore_sel.at[:, 1:1 + L0, :].set(rows)
    mask_ind = jnp.zeros((B, Lp_dec, 1), f32)
    mask_ind = mask_ind.at[:, 1:1 + L0, 0].set((~is_kept).astype(f32))

    # ---- loss targets aligned to padded decoder tokens; pred lane-padded to 128 ----
    target = patchify(imgs, PATCH)                            # (B, L0, p*p*C)
    pred_dim = target.shape[-1]
    P_pad = max(128, _round_up(pred_dim, 128))
    target_pad = jnp.zeros((B, Lp_dec, P_pad), f32)
    target_pad = target_pad.at[:, 1:1 + L0, :pred_dim].set(target)
    lmask = jnp.zeros((B, Lp_dec, 1), f32).at[:, 1:1 + L0, 0].set(mask)

    # ---- compile-time constants: key bias, cls indicator, head masks ----
    kbias_enc = jnp.where(jnp.arange(Lp_enc) < l_enc, 0.0, _NEG
                          ).astype(f32).reshape(1, 1, Lp_enc)
    kbias_dec = jnp.where(jnp.arange(Lp_dec) < l_dec, 0.0, _NEG
                          ).astype(f32).reshape(1, 1, Lp_dec)
    cls_ind = (jnp.arange(Lp_enc) == 0).astype(f32).reshape(1, Lp_enc, 1)
    hmask_e = _head_mask(NUM_HEADS, D)
    hmask_d = _head_mask(DEC_HEADS, Dd)

    # ---- weights: matmul operands in bf16, accumulation stays f32 ----
    patch_w = params["patch_w"].astype(mm)
    patch_b = params["patch_b"].reshape(1, -1)
    pos_patch = params["pos_embed"][:, 1:, :]
    cls_pos = params["cls_token"] + params["pos_embed"][:, :1, :]
    enc_stk = _stack_blocks(params["blocks"], mm)
    enorm_w = params["norm_w"].reshape(1, -1)
    enorm_b = params["norm_b"].reshape(1, -1)
    demb_w = params["pdec_embed_w"].astype(mm)
    demb_b = params["pdec_embed_b"].reshape(1, -1)
    pmask = params["pmask_token"]
    dec_pos = jnp.zeros((1, Lp_dec, Dd), f32).at[:, :l_dec, :].set(
        params["decoder_pos_embed"])
    dec_stk = _stack_blocks(params["pdec_blocks"], mm)
    dnorm_w = params["pdec_norm_w"].reshape(1, -1)
    dnorm_b = params["pdec_norm_b"].reshape(1, -1)
    pred_w = jnp.zeros((Dd, P_pad), f32).at[:, :pred_dim].set(
        params["pdec_pred_w"]).astype(mm)
    pred_b = jnp.zeros((1, P_pad), f32).at[:, :pred_dim].set(
        params["pdec_pred_b"].reshape(1, -1))

    batched = [xp, keep_sel, restore_sel, mask_ind, target_pad, lmask]
    shared = [patch_w, patch_b, pos_patch, cls_pos, cls_ind,
              kbias_enc, kbias_dec, hmask_e, hmask_d,
              *enc_stk, enorm_w, enorm_b, demb_w, demb_b, pmask, dec_pos,
              *dec_stk, dnorm_w, dnorm_b, pred_w, pred_b]

    def _bspec(a):
        return pl.BlockSpec((1,) + a.shape[1:],
                            lambda b, _nd=a.ndim: (b,) + (0,) * (_nd - 1))

    def _sspec(a):
        return pl.BlockSpec(a.shape, lambda b, _nd=a.ndim: (0,) * _nd)

    kern = functools.partial(_mae_kernel,
                             enc_depth=DEPTH, dec_depth=DEC_DEPTH,
                             enc_heads=NUM_HEADS, dec_heads=DEC_HEADS,
                             pred_dim=float(pred_dim))

    pred_full, loss_num = pl.pallas_call(
        kern,
        grid=(B,),
        in_specs=[_bspec(a) for a in batched] + [_sspec(a) for a in shared],
        out_specs=(pl.BlockSpec((1, Lp_dec, P_pad), lambda b: (b, 0, 0)),
                   pl.BlockSpec((1, 1, 128), lambda b: (b, 0, 0))),
        out_shape=(jax.ShapeDtypeStruct((B, Lp_dec, P_pad), f32),
                   jax.ShapeDtypeStruct((B, 1, 128), f32)),
        compiler_params=pltpu.CompilerParams(
            dimension_semantics=("parallel",)),       # v7x megacore batch split
    )(*batched, *shared)

    pred = pred_full[:, 1:1 + L0, :pred_dim]
    den = jnp.maximum(jnp.sum(mask), 1.0)             # guard mask_ratio == 0 edge case
    loss = jnp.sum(loss_num[:, 0, 0]) / den
    # TODO(synk): forward_fdecoder / feat_loss branch (feat_target is not None) is
    # not exercised by the default forward and is omitted here.
    return loss, pred, mask


# ------------------------ deterministic parameter init --------------------------
def get_1d_sincos_pos_embed_from_grid(embed_dim, pos):
    omega = np.arange(embed_dim // 2, dtype=np.float64)
    omega /= embed_dim / 2.0
    omega = 1.0 / 10000 ** omega
    out = np.einsum("m,d->md", pos.reshape(-1), omega)
    return np.concatenate([np.sin(out), np.cos(out)], axis=1)


def get_2d_sincos_pos_embed(embed_dim, grid_size, cls_token=False):
    grid_h = np.arange(grid_size, dtype=np.float32)
    grid_w = np.arange(grid_size, dtype=np.float32)
    grid = np.meshgrid(grid_w, grid_h)
    grid = np.stack(grid, axis=0).reshape([2, 1, grid_size, grid_size])
    emb_h = get_1d_sincos_pos_embed_from_grid(embed_dim // 2, grid[0])
    emb_w = get_1d_sincos_pos_embed_from_grid(embed_dim // 2, grid[1])
    pos = np.concatenate([emb_h, emb_w], axis=1)
    if cls_token:
        pos = np.concatenate([np.zeros([1, embed_dim]), pos], axis=0)
    return pos


def xavier_uniform(key, fan_in, fan_out):
    a = math.sqrt(6.0 / (fan_in + fan_out))
    return jax.random.uniform(key, (fan_in, fan_out), jnp.float32, -a, a)


def init_block(key, dim, mlp_ratio):
    hid = int(dim * mlp_ratio)
    k = jax.random.split(key, 4)
    return dict(
        ln1_w=jnp.ones((dim,), jnp.float32), ln1_b=jnp.zeros((dim,), jnp.float32),
        qkv_w=xavier_uniform(k[0], dim, 3 * dim),
        qkv_b=jnp.zeros((3 * dim,), jnp.float32),
        proj_w=xavier_uniform(k[1], dim, dim),
        proj_b=jnp.zeros((dim,), jnp.float32),
        ln2_w=jnp.ones((dim,), jnp.float32), ln2_b=jnp.zeros((dim,), jnp.float32),
        fc1_w=xavier_uniform(k[2], dim, hid),
        fc1_b=jnp.zeros((hid,), jnp.float32),
        fc2_w=xavier_uniform(k[3], hid, dim),
        fc2_b=jnp.zeros((dim,), jnp.float32),
    )


def init_params(key):
    grid = IMG_SIZE // PATCH
    patch_dim = IN_CHANS * PATCH * PATCH
    pred_dim = PATCH * PATCH * IN_CHANS
    keys = jax.random.split(key, 10)
    return dict(
        patch_w=xavier_uniform(keys[0], patch_dim, EMBED_DIM),
        patch_b=jnp.zeros((EMBED_DIM,), jnp.float32),
        cls_token=0.02 * jax.random.normal(keys[1], (1, 1, EMBED_DIM), jnp.float32),
        pos_embed=jnp.asarray(
            get_2d_sincos_pos_embed(EMBED_DIM, grid, cls_token=True),
            jnp.float32)[None],
        blocks=[init_block(k, EMBED_DIM, MLP_RATIO)
                for k in jax.random.split(keys[2], DEPTH)],
        norm_w=jnp.ones((EMBED_DIM,), jnp.float32),
        norm_b=jnp.zeros((EMBED_DIM,), jnp.float32),
        decoder_pos_embed=jnp.asarray(
            get_2d_sincos_pos_embed(DEC_DIM, grid, cls_token=True),
            jnp.float32)[None],
        pdec_embed_w=xavier_uniform(keys[3], EMBED_DIM, DEC_DIM),
        pdec_embed_b=jnp.zeros((DEC_DIM,), jnp.float32),
        pmask_token=0.02 * jax.random.normal(keys[4], (1, 1, DEC_DIM), jnp.float32),
        pdec_blocks=[init_block(k, DEC_DIM, MLP_RATIO)
                     for k in jax.random.split(keys[5], DEC_DEPTH)],
        pdec_norm_w=jnp.ones((DEC_DIM,), jnp.float32),
        pdec_norm_b=jnp.zeros((DEC_DIM,), jnp.float32),
        pdec_pred_w=xavier_uniform(keys[6], DEC_DIM, pred_dim),
        pdec_pred_b=jnp.zeros((pred_dim,), jnp.float32),
    )


# ----------------------------------- main ----------------------------------------
if __name__ == "__main__":
    root = jax.random.PRNGKey(0)
    k_param, k_img, k_mask = jax.random.split(root, 3)
    params = init_params(k_param)
    imgs = jax.random.normal(k_img, (2, IN_CHANS, IMG_SIZE, IMG_SIZE), jnp.float32)

    fwd = jax.jit(mae_forward)
    loss, pred, mask = fwd(params, imgs, k_mask)
    jax.block_until_ready((loss, pred, mask))

    num_patches = (IMG_SIZE // PATCH) ** 2
    assert loss.shape == ()
    assert pred.shape == (2, num_patches, PATCH * PATCH * IN_CHANS)
    assert mask.shape == (2, num_patches)
    assert bool(jnp.isfinite(loss))
    print("KERNEL_OK")
</pallas_src>

<mosaic_0001>
module attributes {stable_mosaic.version = 11 : i64} {
  func.func @_mae_kernel(%arg0: i32, %arg1: memref<1x16x48xf32, #tpu.memory_space<vmem>>, %arg2: memref<1x8x16xf32, #tpu.memory_space<vmem>>, %arg3: memref<1x24x8xf32, #tpu.memory_space<vmem>>, %arg4: memref<1x24x1xf32, #tpu.memory_space<vmem>>, %arg5: memref<1x24x128xf32, #tpu.memory_space<vmem>>, %arg6: memref<1x24x1xf32, #tpu.memory_space<vmem>>, %arg7: memref<48x32xbf16, #tpu.memory_space<vmem>>, %arg8: memref<1x32xf32, #tpu.memory_space<vmem>>, %arg9: memref<1x16x32xf32, #tpu.memory_space<vmem>>, %arg10: memref<1x1x32xf32, #tpu.memory_space<vmem>>, %arg11: memref<1x8x1xf32, #tpu.memory_space<vmem>>, %arg12: memref<1x1x8xf32, #tpu.memory_space<vmem>>, %arg13: memref<1x1x24xf32, #tpu.memory_space<vmem>>, %arg14: memref<4x1x1x32xf32, #tpu.memory_space<vmem>>, %arg15: memref<4x1x1x32xf32, #tpu.memory_space<vmem>>, %arg16: memref<2x4x32xf32, #tpu.memory_space<vmem>>, %arg17: memref<2x32x32xbf16, #tpu.memory_space<vmem>>, %arg18: memref<2x32x32xbf16, #tpu.memory_space<vmem>>, %arg19: memref<2x32x32xbf16, #tpu.memory_space<vmem>>, %arg20: memref<2x3x32xf32, #tpu.memory_space<vmem>>, %arg21: memref<2x32x32xbf16, #tpu.memory_space<vmem>>, %arg22: memref<2x1x32xf32, #tpu.memory_space<vmem>>, %arg23: memref<2x32x128xbf16, #tpu.memory_space<vmem>>, %arg24: memref<2x1x128xf32, #tpu.memory_space<vmem>>, %arg25: memref<2x128x32xbf16, #tpu.memory_space<vmem>>, %arg26: memref<2x1x32xf32, #tpu.memory_space<vmem>>, %arg27: memref<1x32xf32, #tpu.memory_space<vmem>>, %arg28: memref<1x32xf32, #tpu.memory_space<vmem>>, %arg29: memref<32x32xbf16, #tpu.memory_space<vmem>>, %arg30: memref<1x32xf32, #tpu.memory_space<vmem>>, %arg31: memref<1x1x32xf32, #tpu.memory_space<vmem>>, %arg32: memref<1x24x32xf32, #tpu.memory_space<vmem>>, %arg33: memref<2x4x32xf32, #tpu.memory_space<vmem>>, %arg34: memref<2x32x32xbf16, #tpu.memory_space<vmem>>, %arg35: memref<2x32x32xbf16, #tpu.memory_space<vmem>>, %arg36: memref<2x32x32xbf16, #tpu.memory_space<vmem>>, %arg37: memref<2x3x32xf32, #tpu.memory_space<vmem>>, %arg38: memref<2x32x32xbf16, #tpu.memory_space<vmem>>, %arg39: memref<2x1x32xf32, #tpu.memory_space<vmem>>, %arg40: memref<2x32x128xbf16, #tpu.memory_space<vmem>>, %arg41: memref<2x1x128xf32, #tpu.memory_space<vmem>>, %arg42: memref<2x128x32xbf16, #tpu.memory_space<vmem>>, %arg43: memref<2x1x32xf32, #tpu.memory_space<vmem>>, %arg44: memref<1x32xf32, #tpu.memory_space<vmem>>, %arg45: memref<1x32xf32, #tpu.memory_space<vmem>>, %arg46: memref<32x128xbf16, #tpu.memory_space<vmem>>, %arg47: memref<1x128xf32, #tpu.memory_space<vmem>>, %arg48: memref<1x24x128xf32, #tpu.memory_space<vmem>>, %arg49: memref<1x1x128xf32, #tpu.memory_space<vmem>>) attributes {dimension_semantics = [#tpu.dimension_semantics<parallel>], iteration_bounds = array<i64: 2>, scalar_prefetch = 0 : i64, scratch_operands = 0 : i64, tpu.core_type = #tpu.core_type<tc>, window_params = [{transform_indices = @transform_0, window_bounds = array<i64: 1, 16, 48>}, {transform_indices = @transform_1, window_bounds = array<i64: 1, 8, 16>}, {transform_indices = @transform_2, window_bounds = array<i64: 1, 24, 8>}, {transform_indices = @transform_3, window_bounds = array<i64: 1, 24, 1>}, {transform_indices = @transform_4, window_bounds = array<i64: 1, 24, 128>}, {transform_indices = @transform_5, window_bounds = array<i64: 1, 24, 1>}, {pipeline_mode = #tpu.pipeline_mode<synchronous>, transform_indices = @transform_6, window_bounds = array<i64: 48, 32>}, {pipeline_mode = #tpu.pipeline_mode<synchronous>, transform_indices = @transform_7, window_bounds = array<i64: 1, 32>}, {pipeline_mode = #tpu.pipeline_mode<synchronous>, transform_indices = @transform_8, window_bounds = array<i64: 1, 16, 32>}, {pipeline_mode = #tpu.pipeline_mode<synchronous>, transform_indices = @transform_9, window_bounds = array<i64: 1, 1, 32>}, {pipeline_mode = #tpu.pipeline_mode<synchronous>, transform_indices = @transform_10, window_bounds = array<i64: 1, 8, 1>}, {pipeline_mode = #tpu.pipeline_mode<synchronous>, transform_indices = @transform_11, window_bounds = array<i64: 1, 1, 8>}, {pipeline_mode = #tpu.pipeline_mode<synchronous>, transform_indices = @transform_12, window_bounds = array<i64: 1, 1, 24>}, {pipeline_mode = #tpu.pipeline_mode<synchronous>, transform_indices = @transform_13, window_bounds = array<i64: 4, 1, 1, 32>}, {pipeline_mode = #tpu.pipeline_mode<synchronous>, transform_indices = @transform_14, window_bounds = array<i64: 4, 1, 1, 32>}, {pipeline_mode = #tpu.pipeline_mode<synchronous>, transform_indices = @transform_15, window_bounds = array<i64: 2, 4, 32>}, {pipeline_mode = #tpu.pipeline_mode<synchronous>, transform_indices = @transform_16, window_bounds = array<i64: 2, 32, 32>}, {pipeline_mode = #tpu.pipeline_mode<synchronous>, transform_indices = @transform_17, window_bounds = array<i64: 2, 32, 32>}, {pipeline_mode = #tpu.pipeline_mode<synchronous>, transform_indices = @transform_18, window_bounds = array<i64: 2, 32, 32>}, {pipeline_mode = #tpu.pipeline_mode<synchronous>, transform_indices = @transform_19, window_bounds = array<i64: 2, 3, 32>}, {pipeline_mode = #tpu.pipeline_mode<synchronous>, transform_indices = @transform_20, window_bounds = array<i64: 2, 32, 32>}, {pipeline_mode = #tpu.pipeline_mode<synchronous>, transform_indices = @transform_21, window_bounds = array<i64: 2, 1, 32>}, {pipeline_mode = #tpu.pipeline_mode<synchronous>, transform_indices = @transform_22, window_bounds = array<i64: 2, 32, 128>}, {pipeline_mode = #tpu.pipeline_mode<synchronous>, transform_indices = @transform_23, window_bounds = array<i64: 2, 1, 128>}, {pipeline_mode = #tpu.pipeline_mode<synchronous>, transform_indices = @transform_24, window_bounds = array<i64: 2, 128, 32>}, {pipeline_mode = #tpu.pipeline_mode<synchronous>, transform_indices = @transform_25, window_bounds = array<i64: 2, 1, 32>}, {pipeline_mode = #tpu.pipeline_mode<synchronous>, transform_indices = @transform_26, window_bounds = array<i64: 1, 32>}, {pipeline_mode = #tpu.pipeline_mode<synchronous>, transform_indices = @transform_27, window_bounds = array<i64: 1, 32>}, {pipeline_mode = #tpu.pipeline_mode<synchronous>, transform_indices = @transform_28, window_bounds = array<i64: 32, 32>}, {pipeline_mode = #tpu.pipeline_mode<synchronous>, transform_indices = @transform_29, window_bounds = array<i64: 1, 32>}, {pipeline_mode = #tpu.pipeline_mode<synchronous>, transform_indices = @transform_30, window_bounds = array<i64: 1, 1, 32>}, {pipeline_mode = #tpu.pipeline_mode<synchronous>, transform_indices = @transform_31, window_bounds = array<i64: 1, 24, 32>}, {pipeline_mode = #tpu.pipeline_mode<synchronous>, transform_indices = @transform_32, window_bounds = array<i64: 2, 4, 32>}, {pipeline_mode = #tpu.pipeline_mode<synchronous>, transform_indices = @transform_33, window_bounds = array<i64: 2, 32, 32>}, {pipeline_mode = #tpu.pipeline_mode<synchronous>, transform_indices = @transform_34, window_bounds = array<i64: 2, 32, 32>}, {pipeline_mode = #tpu.pipeline_mode<synchronous>, transform_indices = @transform_35, window_bounds = array<i64: 2, 32, 32>}, {pipeline_mode = #tpu.pipeline_mode<synchronous>, transform_indices = @transform_36, window_bounds = array<i64: 2, 3, 32>}, {pipeline_mode = #tpu.pipeline_mode<synchronous>, transform_indices = @transform_37, window_bounds = array<i64: 2, 32, 32>}, {pipeline_mode = #tpu.pipeline_mode<synchronous>, transform_indices = @transform_38, window_bounds = array<i64: 2, 1, 32>}, {pipeline_mode = #tpu.pipeline_mode<synchronous>, transform_indices = @transform_39, window_bounds = array<i64: 2, 32, 128>}, {pipeline_mode = #tpu.pipeline_mode<synchronous>, transform_indices = @transform_40, window_bounds = array<i64: 2, 1, 128>}, {pipeline_mode = #tpu.pipeline_mode<synchronous>, transform_indices = @transform_41, window_bounds = array<i64: 2, 128, 32>}, {pipeline_mode = #tpu.pipeline_mode<synchronous>, transform_indices = @transform_42, window_bounds = array<i64: 2, 1, 32>}, {pipeline_mode = #tpu.pipeline_mode<synchronous>, transform_indices = @transform_43, window_bounds = array<i64: 1, 32>}, {pipeline_mode = #tpu.pipeline_mode<synchronous>, transform_indices = @transform_44, window_bounds = array<i64: 1, 32>}, {pipeline_mode = #tpu.pipeline_mode<synchronous>, transform_indices = @transform_45, window_bounds = array<i64: 32, 128>}, {pipeline_mode = #tpu.pipeline_mode<synchronous>, transform_indices = @transform_46, window_bounds = array<i64: 1, 128>}, {transform_indices = @transform_47, window_bounds = array<i64: 1, 24, 128>}, {transform_indices = @transform_48, window_bounds = array<i64: 1, 1, 128>}]} {
    %c0 = arith.constant 0 : index
    %c0_0 = arith.constant 0 : index
    %c0_1 = arith.constant 0 : index
    %0 = vector.load %arg1[%c0, %c0_0, %c0_1] : memref<1x16x48xf32, #tpu.memory_space<vmem>>, vector<1x16x48xf32>
    %1 = vector.shape_cast %0 : vector<1x16x48xf32> to vector<16x48xf32>
    %2 = arith.truncf %1 : vector<16x48xf32> to vector<16x48xbf16>
    %c0_2 = arith.constant 0 : index
    %c0_3 = arith.constant 0 : index
    %3 = vector.load %arg7[%c0_2, %c0_3] : memref<48x32xbf16, #tpu.memory_space<vmem>>, vector<48x32xbf16>
    %cst = arith.constant dense<0.000000e+00> : vector<16x32xf32>
    %4 = tpu.matmul %2, %3, %cst {dimension_numbers = #tpu.dot_dimension_numbers<[1], [0], [0], [1], [0, 0, 1, 1], [], []>} : vector<16x48xbf16>, vector<48x32xbf16>, vector<16x32xf32> -> vector<16x32xf32>
    %c0_4 = arith.constant 0 : index
    %c0_5 = arith.constant 0 : index
    %5 = vector.load %arg8[%c0_4, %c0_5] : memref<1x32xf32, #tpu.memory_space<vmem>>, vector<1x32xf32>
    %6 = vector.broadcast %5 : vector<1x32xf32> to vector<16x32xf32>
    %7 = arith.addf %4, %6 : vector<16x32xf32>
    %8 = vector.shape_cast %7 : vector<16x32xf32> to vector<1x16x32xf32>
    %c0_6 = arith.constant 0 : index
    %c0_7 = arith.constant 0 : index
    %c0_8 = arith.constant 0 : index
    %9 = vector.load %arg9[%c0_6, %c0_7, %c0_8] : memref<1x16x32xf32, #tpu.memory_space<vmem>>, vector<1x16x32xf32>
    %10 = arith.addf %8, %9 : vector<1x16x32xf32>
    %c0_9 = arith.constant 0 : index
    %c0_10 = arith.constant 0 : index
    %c0_11 = arith.constant 0 : index
    %11 = vector.load %arg2[%c0_9, %c0_10, %c0_11] : memref<1x8x16xf32, #tpu.memory_space<vmem>>, vector<1x8x16xf32>
    "tpu.trace_start"() <{level = 10 : i32, message = "bls,bsd->bld"}> : () -> ()
    %cst_12 = arith.constant dense<0.000000e+00> : vector<1x8x32xf32>
    %12 = tpu.matmul %11, %10, %cst_12 {dimension_numbers = #tpu.dot_dimension_numbers<[2], [1], [1], [2], [0, 0, 0, 1, 1, 2], [0], [0]>} : vector<1x8x16xf32>, vector<1x16x32xf32>, vector<1x8x32xf32> -> vector<1x8x32xf32>
    "tpu.trace_stop"() : () -> ()
    %c0_13 = arith.constant 0 : index
    %c0_14 = arith.constant 0 : index
    %c0_15 = arith.constant 0 : index
    %13 = vector.load %arg11[%c0_13, %c0_14, %c0_15] : memref<1x8x1xf32, #tpu.memory_space<vmem>>, vector<1x8x1xf32>
    %c0_16 = arith.constant 0 : index
    %c0_17 = arith.constant 0 : index
    %c0_18 = arith.constant 0 : index
    %14 = vector.load %arg10[%c0_16, %c0_17, %c0_18] : memref<1x1x32xf32, #tpu.memory_space<vmem>>, vector<1x1x32xf32>
    %15 = vector.broadcast %13 : vector<1x8x1xf32> to vector<1x8x32xf32>
    %16 = vector.broadcast %14 : vector<1x1x32xf32> to vector<1x8x32xf32>
    %17 = arith.mulf %15, %16 : vector<1x8x32xf32>
    %18 = arith.addf %12, %17 : vector<1x8x32xf32>
    %c0_19 = arith.constant 0 : index
    %c0_20 = arith.constant 0 : index
    %c0_21 = arith.constant 0 : index
    %c0_22 = arith.constant 0 : index
    %19 = vector.load %arg14[%c0_19, %c0_20, %c0_21, %c0_22] : memref<4x1x1x32xf32, #tpu.memory_space<vmem>>, vector<4x1x1x32xf32>
    %c0_23 = arith.constant 0 : index
    %c0_24 = arith.constant 0 : index
    %c0_25 = arith.constant 0 : index
    %20 = vector.load %arg12[%c0_23, %c0_24, %c0_25] : memref<1x1x8xf32, #tpu.memory_space<vmem>>, vector<1x1x8xf32>
    %c0_26 = arith.constant 0 : index
    %c0_27 = arith.constant 0 : index
    %c0_28 = arith.constant 0 : index
    %21 = vector.load %arg16[%c0_26, %c0_27, %c0_28] : memref<2x4x32xf32, #tpu.memory_space<vmem>>, vector<1x4x32xf32>
    %22 = vector.shape_cast %21 : vector<1x4x32xf32> to vector<4x32xf32>
    %c0_29 = arith.constant 0 : index
    %c0_30 = arith.constant 0 : index
    %c0_31 = arith.constant 0 : index
    %23 = vector.load %arg17[%c0_29, %c0_30, %c0_31] : memref<2x32x32xbf16, #tpu.memory_space<vmem>>, vector<1x32x32xbf16>
    %24 = vector.shape_cast %23 : vector<1x32x32xbf16> to vector<32x32xbf16>
    %c0_32 = arith.constant 0 : index
    %c0_33 = arith.constant 0 : index
    %c0_34 = arith.constant 0 : index
    %25 = vector.load %arg18[%c0_32, %c0_33, %c0_34] : memref<2x32x32xbf16, #tpu.memory_space<vmem>>, vector<1x32x32xbf16>
    %26 = vector.shape_cast %25 : vector<1x32x32xbf16> to vector<32x32xbf16>
    %c0_35 = arith.constant 0 : index
    %c0_36 = arith.constant 0 : index
    %c0_37 = arith.constant 0 : index
    %27 = vector.load %arg19[%c0_35, %c0_36, %c0_37] : memref<2x32x32xbf16, #tpu.memory_space<vmem>>, vector<1x32x32xbf16>
    %28 = vector.shape_cast %27 : vector<1x32x32xbf16> to vector<32x32xbf16>
    %c0_38 = arith.constant 0 : index
    %c0_39 = arith.constant 0 : index
    %c0_40 = arith.constant 0 : index
    %29 = vector.load %arg20[%c0_38, %c0_39, %c0_40] : memref<2x3x32xf32, #tpu.memory_space<vmem>>, vector<1x3x32xf32>
    %30 = vector.shape_cast %29 : vector<1x3x32xf32> to vector<3x32xf32>
    %c0_41 = arith.constant 0 : index
    %c0_42 = arith.constant 0 : index
    %c0_43 = arith.constant 0 : index
    %31 = vector.load %arg21[%c0_41, %c0_42, %c0_43] : memref<2x32x32xbf16, #tpu.memory_space<vmem>>, vector<1x32x32xbf16>
    %32 = vector.shape_cast %31 : vector<1x32x32xbf16> to vector<32x32xbf16>
    %c0_44 = arith.constant 0 : index
    %c0_45 = arith.constant 0 : index
    %c0_46 = arith.constant 0 : index
    %33 = vector.load %arg22[%c0_44, %c0_45, %c0_46] : memref<2x1x32xf32, #tpu.memory_space<vmem>>, vector<1x1x32xf32>
    %34 = vector.shape_cast %33 : vector<1x1x32xf32> to vector<1x32xf32>
    %c0_47 = arith.constant 0 : index
    %c0_48 = arith.constant 0 : index
    %c0_49 = arith.constant 0 : index
    %35 = vector.load %arg23[%c0_47, %c0_48, %c0_49] : memref<2x32x128xbf16, #tpu.memory_space<vmem>>, vector<1x32x128xbf16>
    %36 = vector.shape_cast %35 : vector<1x32x128xbf16> to vector<32x128xbf16>
    %c0_50 = arith.constant 0 : index
    %c0_51 = arith.constant 0 : index
    %c0_52 = arith.constant 0 : index
    %37 = vector.load %arg24[%c0_50, %c0_51, %c0_52] : memref<2x1x128xf32, #tpu.memory_space<vmem>>, vector<1x1x128xf32>
    %38 = vector.shape_cast %37 : vector<1x1x128xf32> to vector<1x128xf32>
    %c0_53 = arith.constant 0 : index
    %c0_54 = arith.constant 0 : index
    %c0_55 = arith.constant 0 : index
    %39 = vector.load %arg25[%c0_53, %c0_54, %c0_55] : memref<2x128x32xbf16, #tpu.memory_space<vmem>>, vector<1x128x32xbf16>
    %40 = vector.shape_cast %39 : vector<1x128x32xbf16> to vector<128x32xbf16>
    %c0_56 = arith.constant 0 : index
    %c0_57 = arith.constant 0 : index
    %c0_58 = arith.constant 0 : index
    %41 = vector.load %arg26[%c0_56, %c0_57, %c0_58] : memref<2x1x32xf32, #tpu.memory_space<vmem>>, vector<1x1x32xf32>
    %42 = vector.shape_cast %41 : vector<1x1x32xf32> to vector<1x32xf32>
    %43 = vector.shape_cast %18 : vector<1x8x32xf32> to vector<8x32xf32>
    %44 = vector.extract_strided_slice %22 {offsets = [0, 0], sizes = [1, 32], strides = [1, 1]} : vector<4x32xf32> to vector<1x32xf32>
    %45 = vector.extract_strided_slice %22 {offsets = [1, 0], sizes = [1, 32], strides = [1, 1]} : vector<4x32xf32> to vector<1x32xf32>
    %46 = vector.extract_strided_slice %22 {offsets = [2, 0], sizes = [1, 32], strides = [1, 1]} : vector<4x32xf32> to vector<1x32xf32>
    %47 = vector.extract_strided_slice %22 {offsets = [3, 0], sizes = [1, 32], strides = [1, 1]} : vector<4x32xf32> to vector<1x32xf32>
    %48 = vector.extract_strided_slice %30 {offsets = [0, 0], sizes = [1, 32], strides = [1, 1]} : vector<3x32xf32> to vector<1x32xf32>
    %49 = vector.extract_strided_slice %30 {offsets = [1, 0], sizes = [1, 32], strides = [1, 1]} : vector<3x32xf32> to vector<1x32xf32>
    %50 = vector.extract_strided_slice %30 {offsets = [2, 0], sizes = [1, 32], strides = [1, 1]} : vector<3x32xf32> to vector<1x32xf32>
    %cst_59 = arith.constant dense<0.000000e+00> : vector<8xf32>
    %51 = vector.multi_reduction <add>, %43, %cst_59 [1] : vector<8x32xf32> to vector<8xf32>
    %52 = vector.shape_cast %51 : vector<8xf32> to vector<8x1xf32>
    %cst_60 = arith.constant 3.200000e+01 : f32
    %53 = vector.broadcast %cst_60 : f32 to vector<8x1xf32>
    %54 = arith.divf %52, %53 : vector<8x1xf32>
    %55 = vector.broadcast %54 : vector<8x1xf32> to vector<8x32xf32>
    %56 = arith.subf %43, %55 : vector<8x32xf32>
    %57 = arith.mulf %56, %56 : vector<8x32xf32>
    %cst_61 = arith.constant dense<0.000000e+00> : vector<8xf32>
    %58 = vector.multi_reduction <add>, %57, %cst_61 [1] : vector<8x32xf32> to vector<8xf32>
    %59 = vector.shape_cast %58 : vector<8xf32> to vector<8x1xf32>
    %cst_62 = arith.constant 3.200000e+01 : f32
    %60 = vector.broadcast %cst_62 : f32 to vector<8x1xf32>
    %61 = arith.divf %59, %60 : vector<8x1xf32>
    %62 = vector.broadcast %54 : vector<8x1xf32> to vector<8x32xf32>
    %63 = arith.subf %43, %62 : vector<8x32xf32>
    %cst_63 = arith.constant 9.99999974E-6 : f32
    %64 = vector.broadcast %cst_63 : f32 to vector<8x1xf32>
    %65 = arith.addf %61, %64 : vector<8x1xf32>
    %66 = math.rsqrt %65 : vector<8x1xf32>
    %67 = vector.broadcast %66 : vector<8x1xf32> to vector<8x32xf32>
    %68 = arith.mulf %63, %67 : vector<8x32xf32>
    %69 = vector.broadcast %44 : vector<1x32xf32> to vector<8x32xf32>
    %70 = arith.mulf %68, %69 : vector<8x32xf32>
    %71 = vector.broadcast %45 : vector<1x32xf32> to vector<8x32xf32>
    %72 = arith.addf %70, %71 : vector<8x32xf32>
    %73 = arith.truncf %72 : vector<8x32xf32> to vector<8x32xbf16>
    %cst_64 = arith.constant dense<0.000000e+00> : vector<8x32xf32>
    %74 = tpu.matmul %73, %24, %cst_64 {dimension_numbers = #tpu.dot_dimension_numbers<[1], [0], [0], [1], [0, 0, 1, 1], [], []>} : vector<8x32xbf16>, vector<32x32xbf16>, vector<8x32xf32> -> vector<8x32xf32>
    %75 = vector.broadcast %48 : vector<1x32xf32> to vector<8x32xf32>
    %76 = arith.addf %74, %75 : vector<8x32xf32>
    %77 = vector.shape_cast %76 : vector<8x32xf32> to vector<1x8x32xf32>
    %cst_65 = arith.constant dense<0.000000e+00> : vector<8x32xf32>
    %78 = tpu.matmul %73, %26, %cst_65 {dimension_numbers = #tpu.dot_dimension_numbers<[1], [0], [0], [1], [0, 0, 1, 1], [], []>} : vector<8x32xbf16>, vector<32x32xbf16>, vector<8x32xf32> -> vector<8x32xf32>
    %79 = vector.broadcast %49 : vector<1x32xf32> to vector<8x32xf32>
    %80 = arith.addf %78, %79 : vector<8x32xf32>
    %81 = vector.shape_cast %80 : vector<8x32xf32> to vector<1x8x32xf32>
    %cst_66 = arith.constant dense<0.000000e+00> : vector<8x32xf32>
    %82 = tpu.matmul %73, %28, %cst_66 {dimension_numbers = #tpu.dot_dimension_numbers<[1], [0], [0], [1], [0, 0, 1, 1], [], []>} : vector<8x32xbf16>, vector<32x32xbf16>, vector<8x32xf32> -> vector<8x32xf32>
    %83 = vector.broadcast %50 : vector<1x32xf32> to vector<8x32xf32>
    %84 = arith.addf %82, %83 : vector<8x32xf32>
    %85 = vector.shape_cast %84 : vector<8x32xf32> to vector<1x8x32xf32>
    %86 = vector.shape_cast %77 : vector<1x8x32xf32> to vector<1x1x8x32xf32>
    %87 = vector.broadcast %86 : vector<1x1x8x32xf32> to vector<4x1x8x32xf32>
    %88 = vector.broadcast %19 : vector<4x1x1x32xf32> to vector<4x1x8x32xf32>
    %89 = arith.mulf %87, %88 : vector<4x1x8x32xf32>
    %90 = vector.shape_cast %89 : vector<4x1x8x32xf32> to vector<4x8x32xf32>
    %91 = vector.shape_cast %81 : vector<1x8x32xf32> to vector<1x1x8x32xf32>
    %92 = vector.shape_cast %91 : vector<1x1x8x32xf32> to vector<1x1x8x32xf32>
    %93 = vector.broadcast %92 : vector<1x1x8x32xf32> to vector<4x1x8x32xf32>
    %94 = vector.shape_cast %93 : vector<4x1x8x32xf32> to vector<4x8x32xf32>
    %95 = vector.shape_cast %85 : vector<1x8x32xf32> to vector<1x1x8x32xf32>
    %96 = vector.broadcast %95 : vector<1x1x8x32xf32> to vector<4x1x8x32xf32>
    %97 = vector.broadcast %19 : vector<4x1x1x32xf32> to vector<4x1x8x32xf32>
    %98 = arith.mulf %96, %97 : vector<4x1x8x32xf32>
    %99 = vector.shape_cast %98 : vector<4x1x8x32xf32> to vector<4x8x32xf32>
    %100 = arith.truncf %90 : vector<4x8x32xf32> to vector<4x8x32xbf16>
    %101 = arith.truncf %94 : vector<4x8x32xf32> to vector<4x8x32xbf16>
    "tpu.trace_start"() <{level = 10 : i32, message = "zqd,zkd->zqk"}> : () -> ()
    %cst_67 = arith.constant dense<0.000000e+00> : vector<4x8x8xf32>
    %102 = tpu.matmul %100, %101, %cst_67 {dimension_numbers = #tpu.dot_dimension_numbers<[2], [2], [1], [1], [0, 0, 0, 1, 1, 1], [0], [0]>} : vector<4x8x32xbf16>, vector<4x8x32xbf16>, vector<4x8x8xf32> -> vector<4x8x8xf32>
    "tpu.trace_stop"() : () -> ()
    %cst_68 = arith.constant 0.353553385 : f32
    %103 = vector.broadcast %cst_68 : f32 to vector<4x8x8xf32>
    %104 = arith.mulf %102, %103 : vector<4x8x8xf32>
    %105 = vector.broadcast %20 : vector<1x1x8xf32> to vector<4x8x8xf32>
    %106 = arith.addf %104, %105 : vector<4x8x8xf32>
    %cst_69 = arith.constant dense<0xFF800000> : vector<4x8xf32>
    %107 = vector.multi_reduction <maximumf>, %106, %cst_69 [2] : vector<4x8x8xf32> to vector<4x8xf32>
    %108 = vector.shape_cast %107 : vector<4x8xf32> to vector<4x8x1xf32>
    %109 = vector.broadcast %108 : vector<4x8x1xf32> to vector<4x8x8xf32>
    %110 = arith.subf %106, %109 : vector<4x8x8xf32>
    %111 = math.exp %110 : vector<4x8x8xf32>
    %cst_70 = arith.constant dense<0.000000e+00> : vector<4x8xf32>
    %112 = vector.multi_reduction <add>, %111, %cst_70 [2] : vector<4x8x8xf32> to vector<4x8xf32>
    %113 = vector.shape_cast %112 : vector<4x8xf32> to vector<4x8x1xf32>
    %114 = vector.broadcast %113 : vector<4x8x1xf32> to vector<4x8x8xf32>
    %115 = arith.divf %111, %114 : vector<4x8x8xf32>
    %116 = arith.truncf %115 : vector<4x8x8xf32> to vector<4x8x8xbf16>
    %117 = arith.truncf %99 : vector<4x8x32xf32> to vector<4x8x32xbf16>
    "tpu.trace_start"() <{level = 10 : i32, message = "zqk,zkd->zqd"}> : () -> ()
    %cst_71 = arith.constant dense<0.000000e+00> : vector<4x8x32xf32>
    %118 = tpu.matmul %116, %117, %cst_71 {dimension_numbers = #tpu.dot_dimension_numbers<[2], [1], [1], [2], [0, 0, 0, 1, 1, 2], [0], [0]>} : vector<4x8x8xbf16>, vector<4x8x32xbf16>, vector<4x8x32xf32> -> vector<4x8x32xf32>
    "tpu.trace_stop"() : () -> ()
    %119 = vector.extract_strided_slice %118 {offsets = [0, 0, 0], sizes = [1, 8, 32], strides = [1, 1, 1]} : vector<4x8x32xf32> to vector<1x8x32xf32>
    %120 = vector.shape_cast %119 : vector<1x8x32xf32> to vector<8x32xf32>
    %121 = vector.extract_strided_slice %118 {offsets = [1, 0, 0], sizes = [1, 8, 32], strides = [1, 1, 1]} : vector<4x8x32xf32> to vector<1x8x32xf32>
    %122 = vector.shape_cast %121 : vector<1x8x32xf32> to vector<8x32xf32>
    %123 = arith.addf %120, %122 : vector<8x32xf32>
    %124 = vector.extract_strided_slice %118 {offsets = [2, 0, 0], sizes = [1, 8, 32], strides = [1, 1, 1]} : vector<4x8x32xf32> to vector<1x8x32xf32>
    %125 = vector.shape_cast %124 : vector<1x8x32xf32> to vector<8x32xf32>
    %126 = arith.addf %123, %125 : vector<8x32xf32>
    %127 = vector.extract_strided_slice %118 {offsets = [3, 0, 0], sizes = [1, 8, 32], strides = [1, 1, 1]} : vector<4x8x32xf32> to vector<1x8x32xf32>
    %128 = vector.shape_cast %127 : vector<1x8x32xf32> to vector<8x32xf32>
    %129 = arith.addf %126, %128 : vector<8x32xf32>
    %130 = arith.truncf %129 : vector<8x32xf32> to vector<8x32xbf16>
    %cst_72 = arith.constant dense<0.000000e+00> : vector<8x32xf32>
    %131 = tpu.matmul %130, %32, %cst_72 {dimension_numbers = #tpu.dot_dimension_numbers<[1], [0], [0], [1], [0, 0, 1, 1], [], []>} : vector<8x32xbf16>, vector<32x32xbf16>, vector<8x32xf32> -> vector<8x32xf32>
    %132 = arith.addf %43, %131 : vector<8x32xf32>
    %133 = vector.broadcast %34 : vector<1x32xf32> to vector<8x32xf32>
    %134 = arith.addf %132, %133 : vector<8x32xf32>
    %cst_73 = arith.constant dense<0.000000e+00> : vector<8xf32>
    %135 = vector.multi_reduction <add>, %134, %cst_73 [1] : vector<8x32xf32> to vector<8xf32>
    %136 = vector.shape_cast %135 : vector<8xf32> to vector<8x1xf32>
    %cst_74 = arith.constant 3.200000e+01 : f32
    %137 = vector.broadcast %cst_74 : f32 to vector<8x1xf32>
    %138 = arith.divf %136, %137 : vector<8x1xf32>
    %139 = vector.broadcast %138 : vector<8x1xf32> to vector<8x32xf32>
    %140 = arith.subf %134, %139 : vector<8x32xf32>
    %141 = arith.mulf %140, %140 : vector<8x32xf32>
    %cst_75 = arith.constant dense<0.000000e+00> : vector<8xf32>
    %142 = vector.multi_reduction <add>, %141, %cst_75 [1] : vector<8x32xf32> to vector<8xf32>
    %143 = vector.shape_cast %142 : vector<8xf32> to vector<8x1xf32>
    %cst_76 = arith.constant 3.200000e+01 : f32
    %144 = vector.broadcast %cst_76 : f32 to vector<8x1xf32>
    %145 = arith.divf %143, %144 : vector<8x1xf32>
    %146 = vector.broadcast %138 : vector<8x1xf32> to vector<8x32xf32>
    %147 = arith.subf %134, %146 : vector<8x32xf32>
    %cst_77 = arith.constant 9.99999974E-6 : f32
    %148 = vector.broadcast %cst_77 : f32 to vector<8x1xf32>
    %149 = arith.addf %145, %148 : vector<8x1xf32>
    %150 = math.rsqrt %149 : vector<8x1xf32>
    %151 = vector.broadcast %150 : vector<8x1xf32> to vector<8x32xf32>
    %152 = arith.mulf %147, %151 : vector<8x32xf32>
    %153 = vector.broadcast %46 : vector<1x32xf32> to vector<8x32xf32>
    %154 = arith.mulf %152, %153 : vector<8x32xf32>
    %155 = vector.broadcast %47 : vector<1x32xf32> to vector<8x32xf32>
    %156 = arith.addf %154, %155 : vector<8x32xf32>
    %157 = arith.truncf %156 : vector<8x32xf32> to vector<8x32xbf16>
    %cst_78 = arith.constant dense<0.000000e+00> : vector<8x128xf32>
    %158 = tpu.matmul %157, %36, %cst_78 {dimension_numbers = #tpu.dot_dimension_numbers<[1], [0], [0], [1], [0, 0, 1, 1], [], []>} : vector<8x32xbf16>, vector<32x128xbf16>, vector<8x128xf32> -> vector<8x128xf32>
    %159 = vector.broadcast %38 : vector<1x128xf32> to vector<8x128xf32>
    %160 = arith.addf %158, %159 : vector<8x128xf32>
    %161 = arith.mulf %160, %160 : vector<8x128xf32>
    %162 = arith.mulf %160, %161 : vector<8x128xf32>
    %cst_79 = arith.constant 4.471500e-02 : f32
    %163 = vector.broadcast %cst_79 : f32 to vector<8x128xf32>
    %164 = arith.mulf %163, %162 : vector<8x128xf32>
    %165 = arith.addf %160, %164 : vector<8x128xf32>
    %cst_80 = arith.constant 0.797884583 : f32
    %166 = vector.broadcast %cst_80 : f32 to vector<8x128xf32>
    %167 = arith.mulf %166, %165 : vector<8x128xf32>
    %168 = math.tanh %167 : vector<8x128xf32>
    %cst_81 = arith.constant 1.000000e+00 : f32
    %169 = vector.broadcast %cst_81 : f32 to vector<8x128xf32>
    %170 = arith.addf %169, %168 : vector<8x128xf32>
    %cst_82 = arith.constant 5.000000e-01 : f32
    %171 = vector.broadcast %cst_82 : f32 to vector<8x128xf32>
    %172 = arith.mulf %171, %170 : vector<8x128xf32>
    %173 = arith.mulf %160, %172 : vector<8x128xf32>
    %174 = arith.truncf %173 : vector<8x128xf32> to vector<8x128xbf16>
    %cst_83 = arith.constant dense<0.000000e+00> : vector<8x32xf32>
    %175 = tpu.matmul %174, %40, %cst_83 {dimension_numbers = #tpu.dot_dimension_numbers<[1], [0], [0], [1], [0, 0, 1, 1], [], []>} : vector<8x128xbf16>, vector<128x32xbf16>, vector<8x32xf32> -> vector<8x32xf32>
    %176 = arith.addf %134, %175 : vector<8x32xf32>
    %177 = vector.broadcast %42 : vector<1x32xf32> to vector<8x32xf32>
    %178 = arith.addf %176, %177 : vector<8x32xf32>
    %179 = vector.shape_cast %178 : vector<8x32xf32> to vector<1x8x32xf32>
    %c1 = arith.constant 1 : index
    %c0_84 = arith.constant 0 : index
    %c0_85 = arith.constant 0 : index
    %180 = vector.load %arg16[%c1, %c0_84, %c0_85] : memref<2x4x32xf32, #tpu.memory_space<vmem>>, vector<1x4x32xf32>
    %181 = vector.shape_cast %180 : vector<1x4x32xf32> to vector<4x32xf32>
    %c1_86 = arith.constant 1 : index
    %c0_87 = arith.constant 0 : index
    %c0_88 = arith.constant 0 : index
    %182 = vector.load %arg17[%c1_86, %c0_87, %c0_88] : memref<2x32x32xbf16, #tpu.memory_space<vmem>>, vector<1x32x32xbf16>
    %183 = vector.shape_cast %182 : vector<1x32x32xbf16> to vector<32x32xbf16>
    %c1_89 = arith.constant 1 : index
    %c0_90 = arith.constant 0 : index
    %c0_91 = arith.constant 0 : index
    %184 = vector.load %arg18[%c1_89, %c0_90, %c0_91] : memref<2x32x32xbf16, #tpu.memory_space<vmem>>, vector<1x32x32xbf16>
    %185 = vector.shape_cast %184 : vector<1x32x32xbf16> to vector<32x32xbf16>
    %c1_92 = arith.constant 1 : index
    %c0_93 = arith.constant 0 : index
    %c0_94 = arith.constant 0 : index
    %186 = vector.load %arg19[%c1_92, %c0_93, %c0_94] : memref<2x32x32xbf16, #tpu.memory_space<vmem>>, vector<1x32x32xbf16>
    %187 = vector.shape_cast %186 : vector<1x32x32xbf16> to vector<32x32xbf16>
    %c1_95 = arith.constant 1 : index
    %c0_96 = arith.constant 0 : index
    %c0_97 = arith.constant 0 : index
    %188 = vector.load %arg20[%c1_95, %c0_96, %c0_97] : memref<2x3x32xf32, #tpu.memory_space<vmem>>, vector<1x3x32xf32>
    %189 = vector.shape_cast %188 : vector<1x3x32xf32> to vector<3x32xf32>
    %c1_98 = arith.constant 1 : index
    %c0_99 = arith.constant 0 : index
    %c0_100 = arith.constant 0 : index
    %190 = vector.load %arg21[%c1_98, %c0_99, %c0_100] : memref<2x32x32xbf16, #tpu.memory_space<vmem>>, vector<1x32x32xbf16>
    %191 = vector.shape_cast %190 : vector<1x32x32xbf16> to vector<32x32xbf16>
    %c1_101 = arith.constant 1 : index
    %c0_102 = arith.constant 0 : index
    %c0_103 = arith.constant 0 : index
    %192 = vector.load %arg22[%c1_101, %c0_102, %c0_103] : memref<2x1x32xf32, #tpu.memory_space<vmem>>, vector<1x1x32xf32>
    %193 = vector.shape_cast %192 : vector<1x1x32xf32> to vector<1x32xf32>
    %c1_104 = arith.constant 1 : index
    %c0_105 = arith.constant 0 : index
    %c0_106 = arith.constant 0 : index
    %194 = vector.load %arg23[%c1_104, %c0_105, %c0_106] : memref<2x32x128xbf16, #tpu.memory_space<vmem>>, vector<1x32x128xbf16>
    %195 = vector.shape_cast %194 : vector<1x32x128xbf16> to vector<32x128xbf16>
    %c1_107 = arith.constant 1 : index
    %c0_108 = arith.constant 0 : index
    %c0_109 = arith.constant 0 : index
    %196 = vector.load %arg24[%c1_107, %c0_108, %c0_109] : memref<2x1x128xf32, #tpu.memory_space<vmem>>, vector<1x1x128xf32>
    %197 = vector.shape_cast %196 : vector<1x1x128xf32> to vector<1x128xf32>
    %c1_110 = arith.constant 1 : index
    %c0_111 = arith.constant 0 : index
    %c0_112 = arith.constant 0 : index
    %198 = vector.load %arg25[%c1_110, %c0_111, %c0_112] : memref<2x128x32xbf16, #tpu.memory_space<vmem>>, vector<1x128x32xbf16>
    %199 = vector.shape_cast %198 : vector<1x128x32xbf16> to vector<128x32xbf16>
    %c1_113 = arith.constant 1 : index
    %c0_114 = arith.constant 0 : index
    %c0_115 = arith.constant 0 : index
    %200 = vector.load %arg26[%c1_113, %c0_114, %c0_115] : memref<2x1x32xf32, #tpu.memory_space<vmem>>, vector<1x1x32xf32>
    %201 = vector.shape_cast %200 : vector<1x1x32xf32> to vector<1x32xf32>
    %202 = vector.shape_cast %179 : vector<1x8x32xf32> to vector<8x32xf32>
    %203 = vector.extract_strided_slice %181 {offsets = [0, 0], sizes = [1, 32], strides = [1, 1]} : vector<4x32xf32> to vector<1x32xf32>
    %204 = vector.extract_strided_slice %181 {offsets = [1, 0], sizes = [1, 32], strides = [1, 1]} : vector<4x32xf32> to vector<1x32xf32>
    %205 = vector.extract_strided_slice %181 {offsets = [2, 0], sizes = [1, 32], strides = [1, 1]} : vector<4x32xf32> to vector<1x32xf32>
    %206 = vector.extract_strided_slice %181 {offsets = [3, 0], sizes = [1, 32], strides = [1, 1]} : vector<4x32xf32> to vector<1x32xf32>
    %207 = vector.extract_strided_slice %189 {offsets = [0, 0], sizes = [1, 32], strides = [1, 1]} : vector<3x32xf32> to vector<1x32xf32>
    %208 = vector.extract_strided_slice %189 {offsets = [1, 0], sizes = [1, 32], strides = [1, 1]} : vector<3x32xf32> to vector<1x32xf32>
    %209 = vector.extract_strided_slice %189 {offsets = [2, 0], sizes = [1, 32], strides = [1, 1]} : vector<3x32xf32> to vector<1x32xf32>
    %cst_116 = arith.constant dense<0.000000e+00> : vector<8xf32>
    %210 = vector.multi_reduction <add>, %202, %cst_116 [1] : vector<8x32xf32> to vector<8xf32>
    %211 = vector.shape_cast %210 : vector<8xf32> to vector<8x1xf32>
    %cst_117 = arith.constant 3.200000e+01 : f32
    %212 = vector.broadcast %cst_117 : f32 to vector<8x1xf32>
    %213 = arith.divf %211, %212 : vector<8x1xf32>
    %214 = vector.broadcast %213 : vector<8x1xf32> to vector<8x32xf32>
    %215 = arith.subf %202, %214 : vector<8x32xf32>
    %216 = arith.mulf %215, %215 : vector<8x32xf32>
    %cst_118 = arith.constant dense<0.000000e+00> : vector<8xf32>
    %217 = vector.multi_reduction <add>, %216, %cst_118 [1] : vector<8x32xf32> to vector<8xf32>
    %218 = vector.shape_cast %217 : vector<8xf32> to vector<8x1xf32>
    %cst_119 = arith.constant 3.200000e+01 : f32
    %219 = vector.broadcast %cst_119 : f32 to vector<8x1xf32>
    %220 = arith.divf %218, %219 : vector<8x1xf32>
    %221 = vector.broadcast %213 : vector<8x1xf32> to vector<8x32xf32>
    %222 = arith.subf %202, %221 : vector<8x32xf32>
    %cst_120 = arith.constant 9.99999974E-6 : f32
    %223 = vector.broadcast %cst_120 : f32 to vector<8x1xf32>
    %224 = arith.addf %220, %223 : vector<8x1xf32>
    %225 = math.rsqrt %224 : vector<8x1xf32>
    %226 = vector.broadcast %225 : vector<8x1xf32> to vector<8x32xf32>
    %227 = arith.mulf %222, %226 : vector<8x32xf32>
    %228 = vector.broadcast %203 : vector<1x32xf32> to vector<8x32xf32>
    %229 = arith.mulf %227, %228 : vector<8x32xf32>
    %230 = vector.broadcast %204 : vector<1x32xf32> to vector<8x32xf32>
    %231 = arith.addf %229, %230 : vector<8x32xf32>
    %232 = arith.truncf %231 : vector<8x32xf32> to vector<8x32xbf16>
    %cst_121 = arith.constant dense<0.000000e+00> : vector<8x32xf32>
    %233 = tpu.matmul %232, %183, %cst_121 {dimension_numbers = #tpu.dot_dimension_numbers<[1], [0], [0], [1], [0, 0, 1, 1], [], []>} : vector<8x32xbf16>, vector<32x32xbf16>, vector<8x32xf32> -> vector<8x32xf32>
    %234 = vector.broadcast %207 : vector<1x32xf32> to vector<8x32xf32>
    %235 = arith.addf %233, %234 : vector<8x32xf32>
    %236 = vector.shape_cast %235 : vector<8x32xf32> to vector<1x8x32xf32>
    %cst_122 = arith.constant dense<0.000000e+00> : vector<8x32xf32>
    %237 = tpu.matmul %232, %185, %cst_122 {dimension_numbers = #tpu.dot_dimension_numbers<[1], [0], [0], [1], [0, 0, 1, 1], [], []>} : vector<8x32xbf16>, vector<32x32xbf16>, vector<8x32xf32> -> vector<8x32xf32>
    %238 = vector.broadcast %208 : vector<1x32xf32> to vector<8x32xf32>
    %239 = arith.addf %237, %238 : vector<8x32xf32>
    %240 = vector.shape_cast %239 : vector<8x32xf32> to vector<1x8x32xf32>
    %cst_123 = arith.constant dense<0.000000e+00> : vector<8x32xf32>
    %241 = tpu.matmul %232, %187, %cst_123 {dimension_numbers = #tpu.dot_dimension_numbers<[1], [0], [0], [1], [0, 0, 1, 1], [], []>} : vector<8x32xbf16>, vector<32x32xbf16>, vector<8x32xf32> -> vector<8x32xf32>
    %242 = vector.broadcast %209 : vector<1x32xf32> to vector<8x32xf32>
    %243 = arith.addf %241, %242 : vector<8x32xf32>
    %244 = vector.shape_cast %243 : vector<8x32xf32> to vector<1x8x32xf32>
    %245 = vector.shape_cast %236 : vector<1x8x32xf32> to vector<1x1x8x32xf32>
    %246 = vector.broadcast %245 : vector<1x1x8x32xf32> to vector<4x1x8x32xf32>
    %247 = vector.broadcast %19 : vector<4x1x1x32xf32> to vector<4x1x8x32xf32>
    %248 = arith.mulf %246, %247 : vector<4x1x8x32xf32>
    %249 = vector.shape_cast %248 : vector<4x1x8x32xf32> to vector<4x8x32xf32>
    %250 = vector.shape_cast %240 : vector<1x8x32xf32> to vector<1x1x8x32xf32>
    %251 = vector.shape_cast %250 : vector<1x1x8x32xf32> to vector<1x1x8x32xf32>
    %252 = vector.broadcast %251 : vector<1x1x8x32xf32> to vector<4x1x8x32xf32>
    %253 = vector.shape_cast %252 : vector<4x1x8x32xf32> to vector<4x8x32xf32>
    %254 = vector.shape_cast %244 : vector<1x8x32xf32> to vector<1x1x8x32xf32>
    %255 = vector.broadcast %254 : vector<1x1x8x32xf32> to vector<4x1x8x32xf32>
    %256 = vector.broadcast %19 : vector<4x1x1x32xf32> to vector<4x1x8x32xf32>
    %257 = arith.mulf %255, %256 : vector<4x1x8x32xf32>
    %258 = vector.shape_cast %257 : vector<4x1x8x32xf32> to vector<4x8x32xf32>
    %259 = arith.truncf %249 : vector<4x8x32xf32> to vector<4x8x32xbf16>
    %260 = arith.truncf %253 : vector<4x8x32xf32> to vector<4x8x32xbf16>
    "tpu.trace_start"() <{level = 10 : i32, message = "zqd,zkd->zqk"}> : () -> ()
    %cst_124 = arith.constant dense<0.000000e+00> : vector<4x8x8xf32>
    %261 = tpu.matmul %259, %260, %cst_124 {dimension_numbers = #tpu.dot_dimension_numbers<[2], [2], [1], [1], [0, 0, 0, 1, 1, 1], [0], [0]>} : vector<4x8x32xbf16>, vector<4x8x32xbf16>, vector<4x8x8xf32> -> vector<4x8x8xf32>
    "tpu.trace_stop"() : () -> ()
    %cst_125 = arith.constant 0.353553385 : f32
    %262 = vector.broadcast %cst_125 : f32 to vector<4x8x8xf32>
    %263 = arith.mulf %261, %262 : vector<4x8x8xf32>
    %264 = vector.broadcast %20 : vector<1x1x8xf32> to vector<4x8x8xf32>
    %265 = arith.addf %263, %264 : vector<4x8x8xf32>
    %cst_126 = arith.constant dense<0xFF800000> : vector<4x8xf32>
    %266 = vector.multi_reduction <maximumf>, %265, %cst_126 [2] : vector<4x8x8xf32> to vector<4x8xf32>
    %267 = vector.shape_cast %266 : vector<4x8xf32> to vector<4x8x1xf32>
    %268 = vector.broadcast %267 : vector<4x8x1xf32> to vector<4x8x8xf32>
    %269 = arith.subf %265, %268 : vector<4x8x8xf32>
    %270 = math.exp %269 : vector<4x8x8xf32>
    %cst_127 = arith.constant dense<0.000000e+00> : vector<4x8xf32>
    %271 = vector.multi_reduction <add>, %270, %cst_127 [2] : vector<4x8x8xf32> to vector<4x8xf32>
    %272 = vector.shape_cast %271 : vector<4x8xf32> to vector<4x8x1xf32>
    %273 = vector.broadcast %272 : vector<4x8x1xf32> to vector<4x8x8xf32>
    %274 = arith.divf %270, %273 : vector<4x8x8xf32>
    %275 = arith.truncf %274 : vector<4x8x8xf32> to vector<4x8x8xbf16>
    %276 = arith.truncf %258 : vector<4x8x32xf32> to vector<4x8x32xbf16>
    "tpu.trace_start"() <{level = 10 : i32, message = "zqk,zkd->zqd"}> : () -> ()
    %cst_128 = arith.constant dense<0.000000e+00> : vector<4x8x32xf32>
    %277 = tpu.matmul %275, %276, %cst_128 {dimension_numbers = #tpu.dot_dimension_numbers<[2], [1], [1], [2], [0, 0, 0, 1, 1, 2], [0], [0]>} : vector<4x8x8xbf16>, vector<4x8x32xbf16>, vector<4x8x32xf32> -> vector<4x8x32xf32>
    "tpu.trace_stop"() : () -> ()
    %278 = vector.extract_strided_slice %277 {offsets = [0, 0, 0], sizes = [1, 8, 32], strides = [1, 1, 1]} : vector<4x8x32xf32> to vector<1x8x32xf32>
    %279 = vector.shape_cast %278 : vector<1x8x32xf32> to vector<8x32xf32>
    %280 = vector.extract_strided_slice %277 {offsets = [1, 0, 0], sizes = [1, 8, 32], strides = [1, 1, 1]} : vector<4x8x32xf32> to vector<1x8x32xf32>
    %281 = vector.shape_cast %280 : vector<1x8x32xf32> to vector<8x32xf32>
    %282 = arith.addf %279, %281 : vector<8x32xf32>
    %283 = vector.extract_strided_slice %277 {offsets = [2, 0, 0], sizes = [1, 8, 32], strides = [1, 1, 1]} : vector<4x8x32xf32> to vector<1x8x32xf32>
    %284 = vector.shape_cast %283 : vector<1x8x32xf32> to vector<8x32xf32>
    %285 = arith.addf %282, %284 : vector<8x32xf32>
    %286 = vector.extract_strided_slice %277 {offsets = [3, 0, 0], sizes = [1, 8, 32], strides = [1, 1, 1]} : vector<4x8x32xf32> to vector<1x8x32xf32>
    %287 = vector.shape_cast %286 : vector<1x8x32xf32> to vector<8x32xf32>
    %288 = arith.addf %285, %287 : vector<8x32xf32>
    %289 = arith.truncf %288 : vector<8x32xf32> to vector<8x32xbf16>
    %cst_129 = arith.constant dense<0.000000e+00> : vector<8x32xf32>
    %290 = tpu.matmul %289, %191, %cst_129 {dimension_numbers = #tpu.dot_dimension_numbers<[1], [0], [0], [1], [0, 0, 1, 1], [], []>} : vector<8x32xbf16>, vector<32x32xbf16>, vector<8x32xf32> -> vector<8x32xf32>
    %291 = arith.addf %202, %290 : vector<8x32xf32>
    %292 = vector.broadcast %193 : vector<1x32xf32> to vector<8x32xf32>
    %293 = arith.addf %291, %292 : vector<8x32xf32>
    %cst_130 = arith.constant dense<0.000000e+00> : vector<8xf32>
    %294 = vector.multi_reduction <add>, %293, %cst_130 [1] : vector<8x32xf32> to vector<8xf32>
    %295 = vector.shape_cast %294 : vector<8xf32> to vector<8x1xf32>
    %cst_131 = arith.constant 3.200000e+01 : f32
    %296 = vector.broadcast %cst_131 : f32 to vector<8x1xf32>
    %297 = arith.divf %295, %296 : vector<8x1xf32>
    %298 = vector.broadcast %297 : vector<8x1xf32> to vector<8x32xf32>
    %299 = arith.subf %293, %298 : vector<8x32xf32>
    %300 = arith.mulf %299, %299 : vector<8x32xf32>
    %cst_132 = arith.constant dense<0.000000e+00> : vector<8xf32>
    %301 = vector.multi_reduction <add>, %300, %cst_132 [1] : vector<8x32xf32> to vector<8xf32>
    %302 = vector.shape_cast %301 : vector<8xf32> to vector<8x1xf32>
    %cst_133 = arith.constant 3.200000e+01 : f32
    %303 = vector.broadcast %cst_133 : f32 to vector<8x1xf32>
    %304 = arith.divf %302, %303 : vector<8x1xf32>
    %305 = vector.broadcast %297 : vector<8x1xf32> to vector<8x32xf32>
    %306 = arith.subf %293, %305 : vector<8x32xf32>
    %cst_134 = arith.constant 9.99999974E-6 : f32
    %307 = vector.broadcast %cst_134 : f32 to vector<8x1xf32>
    %308 = arith.addf %304, %307 : vector<8x1xf32>
    %309 = math.rsqrt %308 : vector<8x1xf32>
    %310 = vector.broadcast %309 : vector<8x1xf32> to vector<8x32xf32>
    %311 = arith.mulf %306, %310 : vector<8x32xf32>
    %312 = vector.broadcast %205 : vector<1x32xf32> to vector<8x32xf32>
    %313 = arith.mulf %311, %312 : vector<8x32xf32>
    %314 = vector.broadcast %206 : vector<1x32xf32> to vector<8x32xf32>
    %315 = arith.addf %313, %314 : vector<8x32xf32>
    %316 = arith.truncf %315 : vector<8x32xf32> to vector<8x32xbf16>
    %cst_135 = arith.constant dense<0.000000e+00> : vector<8x128xf32>
    %317 = tpu.matmul %316, %195, %cst_135 {dimension_numbers = #tpu.dot_dimension_numbers<[1], [0], [0], [1], [0, 0, 1, 1], [], []>} : vector<8x32xbf16>, vector<32x128xbf16>, vector<8x128xf32> -> vector<8x128xf32>
    %318 = vector.broadcast %197 : vector<1x128xf32> to vector<8x128xf32>
    %319 = arith.addf %317, %318 : vector<8x128xf32>
    %320 = arith.mulf %319, %319 : vector<8x128xf32>
    %321 = arith.mulf %319, %320 : vector<8x128xf32>
    %cst_136 = arith.constant 4.471500e-02 : f32
    %322 = vector.broadcast %cst_136 : f32 to vector<8x128xf32>
    %323 = arith.mulf %322, %321 : vector<8x128xf32>
    %324 = arith.addf %319, %323 : vector<8x128xf32>
    %cst_137 = arith.constant 0.797884583 : f32
    %325 = vector.broadcast %cst_137 : f32 to vector<8x128xf32>
    %326 = arith.mulf %325, %324 : vector<8x128xf32>
    %327 = math.tanh %326 : vector<8x128xf32>
    %cst_138 = arith.constant 1.000000e+00 : f32
    %328 = vector.broadcast %cst_138 : f32 to vector<8x128xf32>
    %329 = arith.addf %328, %327 : vector<8x128xf32>
    %cst_139 = arith.constant 5.000000e-01 : f32
    %330 = vector.broadcast %cst_139 : f32 to vector<8x128xf32>
    %331 = arith.mulf %330, %329 : vector<8x128xf32>
    %332 = arith.mulf %319, %331 : vector<8x128xf32>
    %333 = arith.truncf %332 : vector<8x128xf32> to vector<8x128xbf16>
    %cst_140 = arith.constant dense<0.000000e+00> : vector<8x32xf32>
    %334 = tpu.matmul %333, %199, %cst_140 {dimension_numbers = #tpu.dot_dimension_numbers<[1], [0], [0], [1], [0, 0, 1, 1], [], []>} : vector<8x128xbf16>, vector<128x32xbf16>, vector<8x32xf32> -> vector<8x32xf32>
    %335 = arith.addf %293, %334 : vector<8x32xf32>
    %336 = vector.broadcast %201 : vector<1x32xf32> to vector<8x32xf32>
    %337 = arith.addf %335, %336 : vector<8x32xf32>
    %338 = vector.shape_cast %337 : vector<8x32xf32> to vector<1x8x32xf32>
    %339 = vector.shape_cast %338 : vector<1x8x32xf32> to vector<8x32xf32>
    %c0_141 = arith.constant 0 : index
    %c0_142 = arith.constant 0 : index
    %340 = vector.load %arg27[%c0_141, %c0_142] : memref<1x32xf32, #tpu.memory_space<vmem>>, vector<1x32xf32>
    %c0_143 = arith.constant 0 : index
    %c0_144 = arith.constant 0 : index
    %341 = vector.load %arg28[%c0_143, %c0_144] : memref<1x32xf32, #tpu.memory_space<vmem>>, vector<1x32xf32>
    %cst_145 = arith.constant dense<0.000000e+00> : vector<8xf32>
    %342 = vector.multi_reduction <add>, %339, %cst_145 [1] : vector<8x32xf32> to vector<8xf32>
    %343 = vector.shape_cast %342 : vector<8xf32> to vector<8x1xf32>
    %cst_146 = arith.constant 3.200000e+01 : f32
    %344 = vector.broadcast %cst_146 : f32 to vector<8x1xf32>
    %345 = arith.divf %343, %344 : vector<8x1xf32>
    %346 = vector.broadcast %345 : vector<8x1xf32> to vector<8x32xf32>
    %347 = arith.subf %339, %346 : vector<8x32xf32>
    %348 = arith.mulf %347, %347 : vector<8x32xf32>
    %cst_147 = arith.constant dense<0.000000e+00> : vector<8xf32>
    %349 = vector.multi_reduction <add>, %348, %cst_147 [1] : vector<8x32xf32> to vector<8xf32>
    %350 = vector.shape_cast %349 : vector<8xf32> to vector<8x1xf32>
    %cst_148 = arith.constant 3.200000e+01 : f32
    %351 = vector.broadcast %cst_148 : f32 to vector<8x1xf32>
    %352 = arith.divf %350, %351 : vector<8x1xf32>
    %353 = vector.broadcast %345 : vector<8x1xf32> to vector<8x32xf32>
    %354 = arith.subf %339, %353 : vector<8x32xf32>
    %cst_149 = arith.constant 9.99999974E-6 : f32
    %355 = vector.broadcast %cst_149 : f32 to vector<8x1xf32>
    %356 = arith.addf %352, %355 : vector<8x1xf32>
    %357 = math.rsqrt %356 : vector<8x1xf32>
    %358 = vector.broadcast %357 : vector<8x1xf32> to vector<8x32xf32>
    %359 = arith.mulf %354, %358 : vector<8x32xf32>
    %360 = vector.broadcast %340 : vector<1x32xf32> to vector<8x32xf32>
    %361 = arith.mulf %359, %360 : vector<8x32xf32>
    %362 = vector.broadcast %341 : vector<1x32xf32> to vector<8x32xf32>
    %363 = arith.addf %361, %362 : vector<8x32xf32>
    %364 = arith.truncf %363 : vector<8x32xf32> to vector<8x32xbf16>
    %c0_150 = arith.constant 0 : index
    %c0_151 = arith.constant 0 : index
    %365 = vector.load %arg29[%c0_150, %c0_151] : memref<32x32xbf16, #tpu.memory_space<vmem>>, vector<32x32xbf16>
    %cst_152 = arith.constant dense<0.000000e+00> : vector<8x32xf32>
    %366 = tpu.matmul %364, %365, %cst_152 {dimension_numbers = #tpu.dot_dimension_numbers<[1], [0], [0], [1], [0, 0, 1, 1], [], []>} : vector<8x32xbf16>, vector<32x32xbf16>, vector<8x32xf32> -> vector<8x32xf32>
    %c0_153 = arith.constant 0 : index
    %c0_154 = arith.constant 0 : index
    %367 = vector.load %arg30[%c0_153, %c0_154] : memref<1x32xf32, #tpu.memory_space<vmem>>, vector<1x32xf32>
    %368 = vector.broadcast %367 : vector<1x32xf32> to vector<8x32xf32>
    %369 = arith.addf %366, %368 : vector<8x32xf32>
    %370 = vector.shape_cast %369 : vector<8x32xf32> to vector<1x8x32xf32>
    %c0_155 = arith.constant 0 : index
    %c0_156 = arith.constant 0 : index
    %c0_157 = arith.constant 0 : index
    %371 = vector.load %arg3[%c0_155, %c0_156, %c0_157] : memref<1x24x8xf32, #tpu.memory_space<vmem>>, vector<1x24x8xf32>
    "tpu.trace_start"() <{level = 10 : i32, message = "bls,bsd->bld"}> : () -> ()
    %cst_158 = arith.constant dense<0.000000e+00> : vector<1x24x32xf32>
    %372 = tpu.matmul %371, %370, %cst_158 {dimension_numbers = #tpu.dot_dimension_numbers<[2], [1], [1], [2], [0, 0, 0, 1, 1, 2], [0], [0]>} : vector<1x24x8xf32>, vector<1x8x32xf32>, vector<1x24x32xf32> -> vector<1x24x32xf32>
    "tpu.trace_stop"() : () -> ()
    %c0_159 = arith.constant 0 : index
    %c0_160 = arith.constant 0 : index
    %c0_161 = arith.constant 0 : index
    %373 = vector.load %arg4[%c0_159, %c0_160, %c0_161] : memref<1x24x1xf32, #tpu.memory_space<vmem>>, vector<1x24x1xf32>
    %c0_162 = arith.constant 0 : index
    %c0_163 = arith.constant 0 : index
    %c0_164 = arith.constant 0 : index
    %374 = vector.load %arg31[%c0_162, %c0_163, %c0_164] : memref<1x1x32xf32, #tpu.memory_space<vmem>>, vector<1x1x32xf32>
    %375 = vector.broadcast %373 : vector<1x24x1xf32> to vector<1x24x32xf32>
    %376 = vector.broadcast %374 : vector<1x1x32xf32> to vector<1x24x32xf32>
    %377 = arith.mulf %375, %376 : vector<1x24x32xf32>
    %378 = arith.addf %372, %377 : vector<1x24x32xf32>
    %c0_165 = arith.constant 0 : index
    %c0_166 = arith.constant 0 : index
    %c0_167 = arith.constant 0 : index
    %379 = vector.load %arg32[%c0_165, %c0_166, %c0_167] : memref<1x24x32xf32, #tpu.memory_space<vmem>>, vector<1x24x32xf32>
    %380 = arith.addf %378, %379 : vector<1x24x32xf32>
    %c0_168 = arith.constant 0 : index
    %c0_169 = arith.constant 0 : index
    %c0_170 = arith.constant 0 : index
    %c0_171 = arith.constant 0 : index
    %381 = vector.load %arg15[%c0_168, %c0_169, %c0_170, %c0_171] : memref<4x1x1x32xf32, #tpu.memory_space<vmem>>, vector<4x1x1x32xf32>
    %c0_172 = arith.constant 0 : index
    %c0_173 = arith.constant 0 : index
    %c0_174 = arith.constant 0 : index
    %382 = vector.load %arg13[%c0_172, %c0_173, %c0_174] : memref<1x1x24xf32, #tpu.memory_space<vmem>>, vector<1x1x24xf32>
    %c0_175 = arith.constant 0 : index
    %c0_176 = arith.constant 0 : index
    %c0_177 = arith.constant 0 : index
    %383 = vector.load %arg33[%c0_175, %c0_176, %c0_177] : memref<2x4x32xf32, #tpu.memory_space<vmem>>, vector<1x4x32xf32>
    %384 = vector.shape_cast %383 : vector<1x4x32xf32> to vector<4x32xf32>
    %c0_178 = arith.constant 0 : index
    %c0_179 = arith.constant 0 : index
    %c0_180 = arith.constant 0 : index
    %385 = vector.load %arg34[%c0_178, %c0_179, %c0_180] : memref<2x32x32xbf16, #tpu.memory_space<vmem>>, vector<1x32x32xbf16>
    %386 = vector.shape_cast %385 : vector<1x32x32xbf16> to vector<32x32xbf16>
    %c0_181 = arith.constant 0 : index
    %c0_182 = arith.constant 0 : index
    %c0_183 = arith.constant 0 : index
    %387 = vector.load %arg35[%c0_181, %c0_182, %c0_183] : memref<2x32x32xbf16, #tpu.memory_space<vmem>>, vector<1x32x32xbf16>
    %388 = vector.shape_cast %387 : vector<1x32x32xbf16> to vector<32x32xbf16>
    %c0_184 = arith.constant 0 : index
    %c0_185 = arith.constant 0 : index
    %c0_186 = arith.constant 0 : index
    %389 = vector.load %arg36[%c0_184, %c0_185, %c0_186] : memref<2x32x32xbf16, #tpu.memory_space<vmem>>, vector<1x32x32xbf16>
    %390 = vector.shape_cast %389 : vector<1x32x32xbf16> to vector<32x32xbf16>
    %c0_187 = arith.constant 0 : index
    %c0_188 = arith.constant 0 : index
    %c0_189 = arith.constant 0 : index
    %391 = vector.load %arg37[%c0_187, %c0_188, %c0_189] : memref<2x3x32xf32, #tpu.memory_space<vmem>>, vector<1x3x32xf32>
    %392 = vector.shape_cast %391 : vector<1x3x32xf32> to vector<3x32xf32>
    %c0_190 = arith.constant 0 : index
    %c0_191 = arith.constant 0 : index
    %c0_192 = arith.constant 0 : index
    %393 = vector.load %arg38[%c0_190, %c0_191, %c0_192] : memref<2x32x32xbf16, #tpu.memory_space<vmem>>, vector<1x32x32xbf16>
    %394 = vector.shape_cast %393 : vector<1x32x32xbf16> to vector<32x32xbf16>
    %c0_193 = arith.constant 0 : index
    %c0_194 = arith.constant 0 : index
    %c0_195 = arith.constant 0 : index
    %395 = vector.load %arg39[%c0_193, %c0_194, %c0_195] : memref<2x1x32xf32, #tpu.memory_space<vmem>>, vector<1x1x32xf32>
    %396 = vector.shape_cast %395 : vector<1x1x32xf32> to vector<1x32xf32>
    %c0_196 = arith.constant 0 : index
    %c0_197 = arith.constant 0 : index
    %c0_198 = arith.constant 0 : index
    %397 = vector.load %arg40[%c0_196, %c0_197, %c0_198] : memref<2x32x128xbf16, #tpu.memory_space<vmem>>, vector<1x32x128xbf16>
    %398 = vector.shape_cast %397 : vector<1x32x128xbf16> to vector<32x128xbf16>
    %c0_199 = arith.constant 0 : index
    %c0_200 = arith.constant 0 : index
    %c0_201 = arith.constant 0 : index
    %399 = vector.load %arg41[%c0_199, %c0_200, %c0_201] : memref<2x1x128xf32, #tpu.memory_space<vmem>>, vector<1x1x128xf32>
    %400 = vector.shape_cast %399 : vector<1x1x128xf32> to vector<1x128xf32>
    %c0_202 = arith.constant 0 : index
    %c0_203 = arith.constant 0 : index
    %c0_204 = arith.constant 0 : index
    %401 = vector.load %arg42[%c0_202, %c0_203, %c0_204] : memref<2x128x32xbf16, #tpu.memory_space<vmem>>, vector<1x128x32xbf16>
    %402 = vector.shape_cast %401 : vector<1x128x32xbf16> to vector<128x32xbf16>
    %c0_205 = arith.constant 0 : index
    %c0_206 = arith.constant 0 : index
    %c0_207 = arith.constant 0 : index
    %403 = vector.load %arg43[%c0_205, %c0_206, %c0_207] : memref<2x1x32xf32, #tpu.memory_space<vmem>>, vector<1x1x32xf32>
    %404 = vector.shape_cast %403 : vector<1x1x32xf32> to vector<1x32xf32>
    %405 = vector.shape_cast %380 : vector<1x24x32xf32> to vector<24x32xf32>
    %406 = vector.extract_strided_slice %384 {offsets = [0, 0], sizes = [1, 32], strides = [1, 1]} : vector<4x32xf32> to vector<1x32xf32>
    %407 = vector.extract_strided_slice %384 {offsets = [1, 0], sizes = [1, 32], strides = [1, 1]} : vector<4x32xf32> to vector<1x32xf32>
    %408 = vector.extract_strided_slice %384 {offsets = [2, 0], sizes = [1, 32], strides = [1, 1]} : vector<4x32xf32> to vector<1x32xf32>
    %409 = vector.extract_strided_slice %384 {offsets = [3, 0], sizes = [1, 32], strides = [1, 1]} : vector<4x32xf32> to vector<1x32xf32>
    %410 = vector.extract_strided_slice %392 {offsets = [0, 0], sizes = [1, 32], strides = [1, 1]} : vector<3x32xf32> to vector<1x32xf32>
    %411 = vector.extract_strided_slice %392 {offsets = [1, 0], sizes = [1, 32], strides = [1, 1]} : vector<3x32xf32> to vector<1x32xf32>
    %412 = vector.extract_strided_slice %392 {offsets = [2, 0], sizes = [1, 32], strides = [1, 1]} : vector<3x32xf32> to vector<1x32xf32>
    %cst_208 = arith.constant dense<0.000000e+00> : vector<24xf32>
    %413 = vector.multi_reduction <add>, %405, %cst_208 [1] : vector<24x32xf32> to vector<24xf32>
    %414 = vector.shape_cast %413 : vector<24xf32> to vector<24x1xf32>
    %cst_209 = arith.constant 3.200000e+01 : f32
    %415 = vector.broadcast %cst_209 : f32 to vector<24x1xf32>
    %416 = arith.divf %414, %415 : vector<24x1xf32>
    %417 = vector.broadcast %416 : vector<24x1xf32> to vector<24x32xf32>
    %418 = arith.subf %405, %417 : vector<24x32xf32>
    %419 = arith.mulf %418, %418 : vector<24x32xf32>
    %cst_210 = arith.constant dense<0.000000e+00> : vector<24xf32>
    %420 = vector.multi_reduction <add>, %419, %cst_210 [1] : vector<24x32xf32> to vector<24xf32>
    %421 = vector.shape_cast %420 : vector<24xf32> to vector<24x1xf32>
    %cst_211 = arith.constant 3.200000e+01 : f32
    %422 = vector.broadcast %cst_211 : f32 to vector<24x1xf32>
    %423 = arith.divf %421, %422 : vector<24x1xf32>
    %424 = vector.broadcast %416 : vector<24x1xf32> to vector<24x32xf32>
    %425 = arith.subf %405, %424 : vector<24x32xf32>
    %cst_212 = arith.constant 9.99999974E-6 : f32
    %426 = vector.broadcast %cst_212 : f32 to vector<24x1xf32>
    %427 = arith.addf %423, %426 : vector<24x1xf32>
    %428 = math.rsqrt %427 : vector<24x1xf32>
    %429 = vector.broadcast %428 : vector<24x1xf32> to vector<24x32xf32>
    %430 = arith.mulf %425, %429 : vector<24x32xf32>
    %431 = vector.broadcast %406 : vector<1x32xf32> to vector<24x32xf32>
    %432 = arith.mulf %430, %431 : vector<24x32xf32>
    %433 = vector.broadcast %407 : vector<1x32xf32> to vector<24x32xf32>
    %434 = arith.addf %432, %433 : vector<24x32xf32>
    %435 = arith.truncf %434 : vector<24x32xf32> to vector<24x32xbf16>
    %cst_213 = arith.constant dense<0.000000e+00> : vector<24x32xf32>
    %436 = tpu.matmul %435, %386, %cst_213 {dimension_numbers = #tpu.dot_dimension_numbers<[1], [0], [0], [1], [0, 0, 1, 1], [], []>} : vector<24x32xbf16>, vector<32x32xbf16>, vector<24x32xf32> -> vector<24x32xf32>
    %437 = vector.broadcast %410 : vector<1x32xf32> to vector<24x32xf32>
    %438 = arith.addf %436, %437 : vector<24x32xf32>
    %439 = vector.shape_cast %438 : vector<24x32xf32> to vector<1x24x32xf32>
    %cst_214 = arith.constant dense<0.000000e+00> : vector<24x32xf32>
    %440 = tpu.matmul %435, %388, %cst_214 {dimension_numbers = #tpu.dot_dimension_numbers<[1], [0], [0], [1], [0, 0, 1, 1], [], []>} : vector<24x32xbf16>, vector<32x32xbf16>, vector<24x32xf32> -> vector<24x32xf32>
    %441 = vector.broadcast %411 : vector<1x32xf32> to vector<24x32xf32>
    %442 = arith.addf %440, %441 : vector<24x32xf32>
    %443 = vector.shape_cast %442 : vector<24x32xf32> to vector<1x24x32xf32>
    %cst_215 = arith.constant dense<0.000000e+00> : vector<24x32xf32>
    %444 = tpu.matmul %435, %390, %cst_215 {dimension_numbers = #tpu.dot_dimension_numbers<[1], [0], [0], [1], [0, 0, 1, 1], [], []>} : vector<24x32xbf16>, vector<32x32xbf16>, vector<24x32xf32> -> vector<24x32xf32>
    %445 = vector.broadcast %412 : vector<1x32xf32> to vector<24x32xf32>
    %446 = arith.addf %444, %445 : vector<24x32xf32>
    %447 = vector.shape_cast %446 : vector<24x32xf32> to vector<1x24x32xf32>
    %448 = vector.shape_cast %439 : vector<1x24x32xf32> to vector<1x1x24x32xf32>
    %449 = vector.broadcast %448 : vector<1x1x24x32xf32> to vector<4x1x24x32xf32>
    %450 = vector.broadcast %381 : vector<4x1x1x32xf32> to vector<4x1x24x32xf32>
    %451 = arith.mulf %449, %450 : vector<4x1x24x32xf32>
    %452 = vector.shape_cast %451 : vector<4x1x24x32xf32> to vector<4x24x32xf32>
    %453 = vector.shape_cast %443 : vector<1x24x32xf32> to vector<1x1x24x32xf32>
    %454 = vector.shape_cast %453 : vector<1x1x24x32xf32> to vector<1x1x24x32xf32>
    %455 = vector.broadcast %454 : vector<1x1x24x32xf32> to vector<4x1x24x32xf32>
    %456 = vector.shape_cast %455 : vector<4x1x24x32xf32> to vector<4x24x32xf32>
    %457 = vector.shape_cast %447 : vector<1x24x32xf32> to vector<1x1x24x32xf32>
    %458 = vector.broadcast %457 : vector<1x1x24x32xf32> to vector<4x1x24x32xf32>
    %459 = vector.broadcast %381 : vector<4x1x1x32xf32> to vector<4x1x24x32xf32>
    %460 = arith.mulf %458, %459 : vector<4x1x24x32xf32>
    %461 = vector.shape_cast %460 : vector<4x1x24x32xf32> to vector<4x24x32xf32>
    %462 = arith.truncf %452 : vector<4x24x32xf32> to vector<4x24x32xbf16>
    %463 = arith.truncf %456 : vector<4x24x32xf32> to vector<4x24x32xbf16>
    "tpu.trace_start"() <{level = 10 : i32, message = "zqd,zkd->zqk"}> : () -> ()
    %cst_216 = arith.constant dense<0.000000e+00> : vector<4x24x24xf32>
    %464 = tpu.matmul %462, %463, %cst_216 {dimension_numbers = #tpu.dot_dimension_numbers<[2], [2], [1], [1], [0, 0, 0, 1, 1, 1], [0], [0]>} : vector<4x24x32xbf16>, vector<4x24x32xbf16>, vector<4x24x24xf32> -> vector<4x24x24xf32>
    "tpu.trace_stop"() : () -> ()
    %cst_217 = arith.constant 0.353553385 : f32
    %465 = vector.broadcast %cst_217 : f32 to vector<4x24x24xf32>
    %466 = arith.mulf %464, %465 : vector<4x24x24xf32>
    %467 = vector.broadcast %382 : vector<1x1x24xf32> to vector<4x24x24xf32>
    %468 = arith.addf %466, %467 : vector<4x24x24xf32>
    %cst_218 = arith.constant dense<0xFF800000> : vector<4x24xf32>
    %469 = vector.multi_reduction <maximumf>, %468, %cst_218 [2] : vector<4x24x24xf32> to vector<4x24xf32>
    %470 = vector.shape_cast %469 : vector<4x24xf32> to vector<4x24x1xf32>
    %471 = vector.broadcast %470 : vector<4x24x1xf32> to vector<4x24x24xf32>
    %472 = arith.subf %468, %471 : vector<4x24x24xf32>
    %473 = math.exp %472 : vector<4x24x24xf32>
    %cst_219 = arith.constant dense<0.000000e+00> : vector<4x24xf32>
    %474 = vector.multi_reduction <add>, %473, %cst_219 [2] : vector<4x24x24xf32> to vector<4x24xf32>
    %475 = vector.shape_cast %474 : vector<4x24xf32> to vector<4x24x1xf32>
    %476 = vector.broadcast %475 : vector<4x24x1xf32> to vector<4x24x24xf32>
    %477 = arith.divf %473, %476 : vector<4x24x24xf32>
    %478 = arith.truncf %477 : vector<4x24x24xf32> to vector<4x24x24xbf16>
    %479 = arith.truncf %461 : vector<4x24x32xf32> to vector<4x24x32xbf16>
    "tpu.trace_start"() <{level = 10 : i32, message = "zqk,zkd->zqd"}> : () -> ()
    %cst_220 = arith.constant dense<0.000000e+00> : vector<4x24x32xf32>
    %480 = tpu.matmul %478, %479, %cst_220 {dimension_numbers = #tpu.dot_dimension_numbers<[2], [1], [1], [2], [0, 0, 0, 1, 1, 2], [0], [0]>} : vector<4x24x24xbf16>, vector<4x24x32xbf16>, vector<4x24x32xf32> -> vector<4x24x32xf32>
    "tpu.trace_stop"() : () -> ()
    %481 = vector.extract_strided_slice %480 {offsets = [0, 0, 0], sizes = [1, 24, 32], strides = [1, 1, 1]} : vector<4x24x32xf32> to vector<1x24x32xf32>
    %482 = vector.shape_cast %481 : vector<1x24x32xf32> to vector<24x32xf32>
    %483 = vector.extract_strided_slice %480 {offsets = [1, 0, 0], sizes = [1, 24, 32], strides = [1, 1, 1]} : vector<4x24x32xf32> to vector<1x24x32xf32>
    %484 = vector.shape_cast %483 : vector<1x24x32xf32> to vector<24x32xf32>
    %485 = arith.addf %482, %484 : vector<24x32xf32>
    %486 = vector.extract_strided_slice %480 {offsets = [2, 0, 0], sizes = [1, 24, 32], strides = [1, 1, 1]} : vector<4x24x32xf32> to vector<1x24x32xf32>
    %487 = vector.shape_cast %486 : vector<1x24x32xf32> to vector<24x32xf32>
    %488 = arith.addf %485, %487 : vector<24x32xf32>
    %489 = vector.extract_strided_slice %480 {offsets = [3, 0, 0], sizes = [1, 24, 32], strides = [1, 1, 1]} : vector<4x24x32xf32> to vector<1x24x32xf32>
    %490 = vector.shape_cast %489 : vector<1x24x32xf32> to vector<24x32xf32>
    %491 = arith.addf %488, %490 : vector<24x32xf32>
    %492 = arith.truncf %491 : vector<24x32xf32> to vector<24x32xbf16>
    %cst_221 = arith.constant dense<0.000000e+00> : vector<24x32xf32>
    %493 = tpu.matmul %492, %394, %cst_221 {dimension_numbers = #tpu.dot_dimension_numbers<[1], [0], [0], [1], [0, 0, 1, 1], [], []>} : vector<24x32xbf16>, vector<32x32xbf16>, vector<24x32xf32> -> vector<24x32xf32>
    %494 = arith.addf %405, %493 : vector<24x32xf32>
    %495 = vector.broadcast %396 : vector<1x32xf32> to vector<24x32xf32>
    %496 = arith.addf %494, %495 : vector<24x32xf32>
    %cst_222 = arith.constant dense<0.000000e+00> : vector<24xf32>
    %497 = vector.multi_reduction <add>, %496, %cst_222 [1] : vector<24x32xf32> to vector<24xf32>
    %498 = vector.shape_cast %497 : vector<24xf32> to vector<24x1xf32>
    %cst_223 = arith.constant 3.200000e+01 : f32
    %499 = vector.broadcast %cst_223 : f32 to vector<24x1xf32>
    %500 = arith.divf %498, %499 : vector<24x1xf32>
    %501 = vector.broadcast %500 : vector<24x1xf32> to vector<24x32xf32>
    %502 = arith.subf %496, %501 : vector<24x32xf32>
    %503 = arith.mulf %502, %502 : vector<24x32xf32>
    %cst_224 = arith.constant dense<0.000000e+00> : vector<24xf32>
    %504 = vector.multi_reduction <add>, %503, %cst_224 [1] : vector<24x32xf32> to vector<24xf32>
    %505 = vector.shape_cast %504 : vector<24xf32> to vector<24x1xf32>
    %cst_225 = arith.constant 3.200000e+01 : f32
    %506 = vector.broadcast %cst_225 : f32 to vector<24x1xf32>
    %507 = arith.divf %505, %506 : vector<24x1xf32>
    %508 = vector.broadcast %500 : vector<24x1xf32> to vector<24x32xf32>
    %509 = arith.subf %496, %508 : vector<24x32xf32>
    %cst_226 = arith.constant 9.99999974E-6 : f32
    %510 = vector.broadcast %cst_226 : f32 to vector<24x1xf32>
    %511 = arith.addf %507, %510 : vector<24x1xf32>
    %512 = math.rsqrt %511 : vector<24x1xf32>
    %513 = vector.broadcast %512 : vector<24x1xf32> to vector<24x32xf32>
    %514 = arith.mulf %509, %513 : vector<24x32xf32>
    %515 = vector.broadcast %408 : vector<1x32xf32> to vector<24x32xf32>
    %516 = arith.mulf %514, %515 : vector<24x32xf32>
    %517 = vector.broadcast %409 : vector<1x32xf32> to vector<24x32xf32>
    %518 = arith.addf %516, %517 : vector<24x32xf32>
    %519 = arith.truncf %518 : vector<24x32xf32> to vector<24x32xbf16>
    %cst_227 = arith.constant dense<0.000000e+00> : vector<24x128xf32>
    %520 = tpu.matmul %519, %398, %cst_227 {dimension_numbers = #tpu.dot_dimension_numbers<[1], [0], [0], [1], [0, 0, 1, 1], [], []>} : vector<24x32xbf16>, vector<32x128xbf16>, vector<24x128xf32> -> vector<24x128xf32>
    %521 = vector.broadcast %400 : vector<1x128xf32> to vector<24x128xf32>
    %522 = arith.addf %520, %521 : vector<24x128xf32>
    %523 = arith.mulf %522, %522 : vector<24x128xf32>
    %524 = arith.mulf %522, %523 : vector<24x128xf32>
    %cst_228 = arith.constant 4.471500e-02 : f32
    %525 = vector.broadcast %cst_228 : f32 to vector<24x128xf32>
    %526 = arith.mulf %525, %524 : vector<24x128xf32>
    %527 = arith.addf %522, %526 : vector<24x128xf32>
    %cst_229 = arith.constant 0.797884583 : f32
    %528 = vector.broadcast %cst_229 : f32 to vector<24x128xf32>
    %529 = arith.mulf %528, %527 : vector<24x128xf32>
    %530 = math.tanh %529 : vector<24x128xf32>
    %cst_230 = arith.constant 1.000000e+00 : f32
    %531 = vector.broadcast %cst_230 : f32 to vector<24x128xf32>
    %532 = arith.addf %531, %530 : vector<24x128xf32>
    %cst_231 = arith.constant 5.000000e-01 : f32
    %533 = vector.broadcast %cst_231 : f32 to vector<24x128xf32>
    %534 = arith.mulf %533, %532 : vector<24x128xf32>
    %535 = arith.mulf %522, %534 : vector<24x128xf32>
    %536 = arith.truncf %535 : vector<24x128xf32> to vector<24x128xbf16>
    %cst_232 = arith.constant dense<0.000000e+00> : vector<24x32xf32>
    %537 = tpu.matmul %536, %402, %cst_232 {dimension_numbers = #tpu.dot_dimension_numbers<[1], [0], [0], [1], [0, 0, 1, 1], [], []>} : vector<24x128xbf16>, vector<128x32xbf16>, vector<24x32xf32> -> vector<24x32xf32>
    %538 = arith.addf %496, %537 : vector<24x32xf32>
    %539 = vector.broadcast %404 : vector<1x32xf32> to vector<24x32xf32>
    %540 = arith.addf %538, %539 : vector<24x32xf32>
    %541 = vector.shape_cast %540 : vector<24x32xf32> to vector<1x24x32xf32>
    %c1_233 = arith.constant 1 : index
    %c0_234 = arith.constant 0 : index
    %c0_235 = arith.constant 0 : index
    %542 = vector.load %arg33[%c1_233, %c0_234, %c0_235] : memref<2x4x32xf32, #tpu.memory_space<vmem>>, vector<1x4x32xf32>
    %543 = vector.shape_cast %542 : vector<1x4x32xf32> to vector<4x32xf32>
    %c1_236 = arith.constant 1 : index
    %c0_237 = arith.constant 0 : index
    %c0_238 = arith.constant 0 : index
    %544 = vector.load %arg34[%c1_236, %c0_237, %c0_238] : memref<2x32x32xbf16, #tpu.memory_space<vmem>>, vector<1x32x32xbf16>
    %545 = vector.shape_cast %544 : vector<1x32x32xbf16> to vector<32x32xbf16>
    %c1_239 = arith.constant 1 : index
    %c0_240 = arith.constant 0 : index
    %c0_241 = arith.constant 0 : index
    %546 = vector.load %arg35[%c1_239, %c0_240, %c0_241] : memref<2x32x32xbf16, #tpu.memory_space<vmem>>, vector<1x32x32xbf16>
    %547 = vector.shape_cast %546 : vector<1x32x32xbf16> to vector<32x32xbf16>
    %c1_242 = arith.constant 1 : index
    %c0_243 = arith.constant 0 : index
    %c0_244 = arith.constant 0 : index
    %548 = vector.load %arg36[%c1_242, %c0_243, %c0_244] : memref<2x32x32xbf16, #tpu.memory_space<vmem>>, vector<1x32x32xbf16>
    %549 = vector.shape_cast %548 : vector<1x32x32xbf16> to vector<32x32xbf16>
    %c1_245 = arith.constant 1 : index
    %c0_246 = arith.constant 0 : index
    %c0_247 = arith.constant 0 : index
    %550 = vector.load %arg37[%c1_245, %c0_246, %c0_247] : memref<2x3x32xf32, #tpu.memory_space<vmem>>, vector<1x3x32xf32>
    %551 = vector.shape_cast %550 : vector<1x3x32xf32> to vector<3x32xf32>
    %c1_248 = arith.constant 1 : index
    %c0_249 = arith.constant 0 : index
    %c0_250 = arith.constant 0 : index
    %552 = vector.load %arg38[%c1_248, %c0_249, %c0_250] : memref<2x32x32xbf16, #tpu.memory_space<vmem>>, vector<1x32x32xbf16>
    %553 = vector.shape_cast %552 : vector<1x32x32xbf16> to vector<32x32xbf16>
    %c1_251 = arith.constant 1 : index
    %c0_252 = arith.constant 0 : index
    %c0_253 = arith.constant 0 : index
    %554 = vector.load %arg39[%c1_251, %c0_252, %c0_253] : memref<2x1x32xf32, #tpu.memory_space<vmem>>, vector<1x1x32xf32>
    %555 = vector.shape_cast %554 : vector<1x1x32xf32> to vector<1x32xf32>
    %c1_254 = arith.constant 1 : index
    %c0_255 = arith.constant 0 : index
    %c0_256 = arith.constant 0 : index
    %556 = vector.load %arg40[%c1_254, %c0_255, %c0_256] : memref<2x32x128xbf16, #tpu.memory_space<vmem>>, vector<1x32x128xbf16>
    %557 = vector.shape_cast %556 : vector<1x32x128xbf16> to vector<32x128xbf16>
    %c1_257 = arith.constant 1 : index
    %c0_258 = arith.constant 0 : index
    %c0_259 = arith.constant 0 : index
    %558 = vector.load %arg41[%c1_257, %c0_258, %c0_259] : memref<2x1x128xf32, #tpu.memory_space<vmem>>, vector<1x1x128xf32>
    %559 = vector.shape_cast %558 : vector<1x1x128xf32> to vector<1x128xf32>
    %c1_260 = arith.constant 1 : index
    %c0_261 = arith.constant 0 : index
    %c0_262 = arith.constant 0 : index
    %560 = vector.load %arg42[%c1_260, %c0_261, %c0_262] : memref<2x128x32xbf16, #tpu.memory_space<vmem>>, vector<1x128x32xbf16>
    %561 = vector.shape_cast %560 : vector<1x128x32xbf16> to vector<128x32xbf16>
    %c1_263 = arith.constant 1 : index
    %c0_264 = arith.constant 0 : index
    %c0_265 = arith.constant 0 : index
    %562 = vector.load %arg43[%c1_263, %c0_264, %c0_265] : memref<2x1x32xf32, #tpu.memory_space<vmem>>, vector<1x1x32xf32>
    %563 = vector.shape_cast %562 : vector<1x1x32xf32> to vector<1x32xf32>
    %564 = vector.shape_cast %541 : vector<1x24x32xf32> to vector<24x32xf32>
    %565 = vector.extract_strided_slice %543 {offsets = [0, 0], sizes = [1, 32], strides = [1, 1]} : vector<4x32xf32> to vector<1x32xf32>
    %566 = vector.extract_strided_slice %543 {offsets = [1, 0], sizes = [1, 32], strides = [1, 1]} : vector<4x32xf32> to vector<1x32xf32>
    %567 = vector.extract_strided_slice %543 {offsets = [2, 0], sizes = [1, 32], strides = [1, 1]} : vector<4x32xf32> to vector<1x32xf32>
    %568 = vector.extract_strided_slice %543 {offsets = [3, 0], sizes = [1, 32], strides = [1, 1]} : vector<4x32xf32> to vector<1x32xf32>
    %569 = vector.extract_strided_slice %551 {offsets = [0, 0], sizes = [1, 32], strides = [1, 1]} : vector<3x32xf32> to vector<1x32xf32>
    %570 = vector.extract_strided_slice %551 {offsets = [1, 0], sizes = [1, 32], strides = [1, 1]} : vector<3x32xf32> to vector<1x32xf32>
    %571 = vector.extract_strided_slice %551 {offsets = [2, 0], sizes = [1, 32], strides = [1, 1]} : vector<3x32xf32> to vector<1x32xf32>
    %cst_266 = arith.constant dense<0.000000e+00> : vector<24xf32>
    %572 = vector.multi_reduction <add>, %564, %cst_266 [1] : vector<24x32xf32> to vector<24xf32>
    %573 = vector.shape_cast %572 : vector<24xf32> to vector<24x1xf32>
    %cst_267 = arith.constant 3.200000e+01 : f32
    %574 = vector.broadcast %cst_267 : f32 to vector<24x1xf32>
    %575 = arith.divf %573, %574 : vector<24x1xf32>
    %576 = vector.broadcast %575 : vector<24x1xf32> to vector<24x32xf32>
    %577 = arith.subf %564, %576 : vector<24x32xf32>
    %578 = arith.mulf %577, %577 : vector<24x32xf32>
    %cst_268 = arith.constant dense<0.000000e+00> : vector<24xf32>
    %579 = vector.multi_reduction <add>, %578, %cst_268 [1] : vector<24x32xf32> to vector<24xf32>
    %580 = vector.shape_cast %579 : vector<24xf32> to vector<24x1xf32>
    %cst_269 = arith.constant 3.200000e+01 : f32
    %581 = vector.broadcast %cst_269 : f32 to vector<24x1xf32>
    %582 = arith.divf %580, %581 : vector<24x1xf32>
    %583 = vector.broadcast %575 : vector<24x1xf32> to vector<24x32xf32>
    %584 = arith.subf %564, %583 : vector<24x32xf32>
    %cst_270 = arith.constant 9.99999974E-6 : f32
    %585 = vector.broadcast %cst_270 : f32 to vector<24x1xf32>
    %586 = arith.addf %582, %585 : vector<24x1xf32>
    %587 = math.rsqrt %586 : vector<24x1xf32>
    %588 = vector.broadcast %587 : vector<24x1xf32> to vector<24x32xf32>
    %589 = arith.mulf %584, %588 : vector<24x32xf32>
    %590 = vector.broadcast %565 : vector<1x32xf32> to vector<24x32xf32>
    %591 = arith.mulf %589, %590 : vector<24x32xf32>
    %592 = vector.broadcast %566 : vector<1x32xf32> to vector<24x32xf32>
    %593 = arith.addf %591, %592 : vector<24x32xf32>
    %594 = arith.truncf %593 : vector<24x32xf32> to vector<24x32xbf16>
    %cst_271 = arith.constant dense<0.000000e+00> : vector<24x32xf32>
    %595 = tpu.matmul %594, %545, %cst_271 {dimension_numbers = #tpu.dot_dimension_numbers<[1], [0], [0], [1], [0, 0, 1, 1], [], []>} : vector<24x32xbf16>, vector<32x32xbf16>, vector<24x32xf32> -> vector<24x32xf32>
    %596 = vector.broadcast %569 : vector<1x32xf32> to vector<24x32xf32>
    %597 = arith.addf %595, %596 : vector<24x32xf32>
    %598 = vector.shape_cast %597 : vector<24x32xf32> to vector<1x24x32xf32>
    %cst_272 = arith.constant dense<0.000000e+00> : vector<24x32xf32>
    %599 = tpu.matmul %594, %547, %cst_272 {dimension_numbers = #tpu.dot_dimension_numbers<[1], [0], [0], [1], [0, 0, 1, 1], [], []>} : vector<24x32xbf16>, vector<32x32xbf16>, vector<24x32xf32> -> vector<24x32xf32>
    %600 = vector.broadcast %570 : vector<1x32xf32> to vector<24x32xf32>
    %601 = arith.addf %599, %600 : vector<24x32xf32>
    %602 = vector.shape_cast %601 : vector<24x32xf32> to vector<1x24x32xf32>
    %cst_273 = arith.constant dense<0.000000e+00> : vector<24x32xf32>
    %603 = tpu.matmul %594, %549, %cst_273 {dimension_numbers = #tpu.dot_dimension_numbers<[1], [0], [0], [1], [0, 0, 1, 1], [], []>} : vector<24x32xbf16>, vector<32x32xbf16>, vector<24x32xf32> -> vector<24x32xf32>
    %604 = vector.broadcast %571 : vector<1x32xf32> to vector<24x32xf32>
    %605 = arith.addf %603, %604 : vector<24x32xf32>
    %606 = vector.shape_cast %605 : vector<24x32xf32> to vector<1x24x32xf32>
    %607 = vector.shape_cast %598 : vector<1x24x32xf32> to vector<1x1x24x32xf32>
    %608 = vector.broadcast %607 : vector<1x1x24x32xf32> to vector<4x1x24x32xf32>
    %609 = vector.broadcast %381 : vector<4x1x1x32xf32> to vector<4x1x24x32xf32>
    %610 = arith.mulf %608, %609 : vector<4x1x24x32xf32>
    %611 = vector.shape_cast %610 : vector<4x1x24x32xf32> to vector<4x24x32xf32>
    %612 = vector.shape_cast %602 : vector<1x24x32xf32> to vector<1x1x24x32xf32>
    %613 = vector.shape_cast %612 : vector<1x1x24x32xf32> to vector<1x1x24x32xf32>
    %614 = vector.broadcast %613 : vector<1x1x24x32xf32> to vector<4x1x24x32xf32>
    %615 = vector.shape_cast %614 : vector<4x1x24x32xf32> to vector<4x24x32xf32>
    %616 = vector.shape_cast %606 : vector<1x24x32xf32> to vector<1x1x24x32xf32>
    %617 = vector.broadcast %616 : vector<1x1x24x32xf32> to vector<4x1x24x32xf32>
    %618 = vector.broadcast %381 : vector<4x1x1x32xf32> to vector<4x1x24x32xf32>
    %619 = arith.mulf %617, %618 : vector<4x1x24x32xf32>
    %620 = vector.shape_cast %619 : vector<4x1x24x32xf32> to vector<4x24x32xf32>
    %621 = arith.truncf %611 : vector<4x24x32xf32> to vector<4x24x32xbf16>
    %622 = arith.truncf %615 : vector<4x24x32xf32> to vector<4x24x32xbf16>
    "tpu.trace_start"() <{level = 10 : i32, message = "zqd,zkd->zqk"}> : () -> ()
    %cst_274 = arith.constant dense<0.000000e+00> : vector<4x24x24xf32>
    %623 = tpu.matmul %621, %622, %cst_274 {dimension_numbers = #tpu.dot_dimension_numbers<[2], [2], [1], [1], [0, 0, 0, 1, 1, 1], [0], [0]>} : vector<4x24x32xbf16>, vector<4x24x32xbf16>, vector<4x24x24xf32> -> vector<4x24x24xf32>
    "tpu.trace_stop"() : () -> ()
    %cst_275 = arith.constant 0.353553385 : f32
    %624 = vector.broadcast %cst_275 : f32 to vector<4x24x24xf32>
    %625 = arith.mulf %623, %624 : vector<4x24x24xf32>
    %626 = vector.broadcast %382 : vector<1x1x24xf32> to vector<4x24x24xf32>
    %627 = arith.addf %625, %626 : vector<4x24x24xf32>
    %cst_276 = arith.constant dense<0xFF800000> : vector<4x24xf32>
    %628 = vector.multi_reduction <maximumf>, %627, %cst_276 [2] : vector<4x24x24xf32> to vector<4x24xf32>
    %629 = vector.shape_cast %628 : vector<4x24xf32> to vector<4x24x1xf32>
    %630 = vector.broadcast %629 : vector<4x24x1xf32> to vector<4x24x24xf32>
    %631 = arith.subf %627, %630 : vector<4x24x24xf32>
    %632 = math.exp %631 : vector<4x24x24xf32>
    %cst_277 = arith.constant dense<0.000000e+00> : vector<4x24xf32>
    %633 = vector.multi_reduction <add>, %632, %cst_277 [2] : vector<4x24x24xf32> to vector<4x24xf32>
    %634 = vector.shape_cast %633 : vector<4x24xf32> to vector<4x24x1xf32>
    %635 = vector.broadcast %634 : vector<4x24x1xf32> to vector<4x24x24xf32>
    %636 = arith.divf %632, %635 : vector<4x24x24xf32>
    %637 = arith.truncf %636 : vector<4x24x24xf32> to vector<4x24x24xbf16>
    %638 = arith.truncf %620 : vector<4x24x32xf32> to vector<4x24x32xbf16>
    "tpu.trace_start"() <{level = 10 : i32, message = "zqk,zkd->zqd"}> : () -> ()
    %cst_278 = arith.constant dense<0.000000e+00> : vector<4x24x32xf32>
    %639 = tpu.matmul %637, %638, %cst_278 {dimension_numbers = #tpu.dot_dimension_numbers<[2], [1], [1], [2], [0, 0, 0, 1, 1, 2], [0], [0]>} : vector<4x24x24xbf16>, vector<4x24x32xbf16>, vector<4x24x32xf32> -> vector<4x24x32xf32>
    "tpu.trace_stop"() : () -> ()
    %640 = vector.extract_strided_slice %639 {offsets = [0, 0, 0], sizes = [1, 24, 32], strides = [1, 1, 1]} : vector<4x24x32xf32> to vector<1x24x32xf32>
    %641 = vector.shape_cast %640 : vector<1x24x32xf32> to vector<24x32xf32>
    %642 = vector.extract_strided_slice %639 {offsets = [1, 0, 0], sizes = [1, 24, 32], strides = [1, 1, 1]} : vector<4x24x32xf32> to vector<1x24x32xf32>
    %643 = vector.shape_cast %642 : vector<1x24x32xf32> to vector<24x32xf32>
    %644 = arith.addf %641, %643 : vector<24x32xf32>
    %645 = vector.extract_strided_slice %639 {offsets = [2, 0, 0], sizes = [1, 24, 32], strides = [1, 1, 1]} : vector<4x24x32xf32> to vector<1x24x32xf32>
    %646 = vector.shape_cast %645 : vector<1x24x32xf32> to vector<24x32xf32>
    %647 = arith.addf %644, %646 : vector<24x32xf32>
    %648 = vector.extract_strided_slice %639 {offsets = [3, 0, 0], sizes = [1, 24, 32], strides = [1, 1, 1]} : vector<4x24x32xf32> to vector<1x24x32xf32>
    %649 = vector.shape_cast %648 : vector<1x24x32xf32> to vector<24x32xf32>
    %650 = arith.addf %647, %649 : vector<24x32xf32>
    %651 = arith.truncf %650 : vector<24x32xf32> to vector<24x32xbf16>
    %cst_279 = arith.constant dense<0.000000e+00> : vector<24x32xf32>
    %652 = tpu.matmul %651, %553, %cst_279 {dimension_numbers = #tpu.dot_dimension_numbers<[1], [0], [0], [1], [0, 0, 1, 1], [], []>} : vector<24x32xbf16>, vector<32x32xbf16>, vector<24x32xf32> -> vector<24x32xf32>
    %653 = arith.addf %564, %652 : vector<24x32xf32>
    %654 = vector.broadcast %555 : vector<1x32xf32> to vector<24x32xf32>
    %655 = arith.addf %653, %654 : vector<24x32xf32>
    %cst_280 = arith.constant dense<0.000000e+00> : vector<24xf32>
    %656 = vector.multi_reduction <add>, %655, %cst_280 [1] : vector<24x32xf32> to vector<24xf32>
    %657 = vector.shape_cast %656 : vector<24xf32> to vector<24x1xf32>
    %cst_281 = arith.constant 3.200000e+01 : f32
    %658 = vector.broadcast %cst_281 : f32 to vector<24x1xf32>
    %659 = arith.divf %657, %658 : vector<24x1xf32>
    %660 = vector.broadcast %659 : vector<24x1xf32> to vector<24x32xf32>
    %661 = arith.subf %655, %660 : vector<24x32xf32>
    %662 = arith.mulf %661, %661 : vector<24x32xf32>
    %cst_282 = arith.constant dense<0.000000e+00> : vector<24xf32>
    %663 = vector.multi_reduction <add>, %662, %cst_282 [1] : vector<24x32xf32> to vector<24xf32>
    %664 = vector.shape_cast %663 : vector<24xf32> to vector<24x1xf32>
    %cst_283 = arith.constant 3.200000e+01 : f32
    %665 = vector.broadcast %cst_283 : f32 to vector<24x1xf32>
    %666 = arith.divf %664, %665 : vector<24x1xf32>
    %667 = vector.broadcast %659 : vector<24x1xf32> to vector<24x32xf32>
    %668 = arith.subf %655, %667 : vector<24x32xf32>
    %cst_284 = arith.constant 9.99999974E-6 : f32
    %669 = vector.broadcast %cst_284 : f32 to vector<24x1xf32>
    %670 = arith.addf %666, %669 : vector<24x1xf32>
    %671 = math.rsqrt %670 : vector<24x1xf32>
    %672 = vector.broadcast %671 : vector<24x1xf32> to vector<24x32xf32>
    %673 = arith.mulf %668, %672 : vector<24x32xf32>
    %674 = vector.broadcast %567 : vector<1x32xf32> to vector<24x32xf32>
    %675 = arith.mulf %673, %674 : vector<24x32xf32>
    %676 = vector.broadcast %568 : vector<1x32xf32> to vector<24x32xf32>
    %677 = arith.addf %675, %676 : vector<24x32xf32>
    %678 = arith.truncf %677 : vector<24x32xf32> to vector<24x32xbf16>
    %cst_285 = arith.constant dense<0.000000e+00> : vector<24x128xf32>
    %679 = tpu.matmul %678, %557, %cst_285 {dimension_numbers = #tpu.dot_dimension_numbers<[1], [0], [0], [1], [0, 0, 1, 1], [], []>} : vector<24x32xbf16>, vector<32x128xbf16>, vector<24x128xf32> -> vector<24x128xf32>
    %680 = vector.broadcast %559 : vector<1x128xf32> to vector<24x128xf32>
    %681 = arith.addf %679, %680 : vector<24x128xf32>
    %682 = arith.mulf %681, %681 : vector<24x128xf32>
    %683 = arith.mulf %681, %682 : vector<24x128xf32>
    %cst_286 = arith.constant 4.471500e-02 : f32
    %684 = vector.broadcast %cst_286 : f32 to vector<24x128xf32>
    %685 = arith.mulf %684, %683 : vector<24x128xf32>
    %686 = arith.addf %681, %685 : vector<24x128xf32>
    %cst_287 = arith.constant 0.797884583 : f32
    %687 = vector.broadcast %cst_287 : f32 to vector<24x128xf32>
    %688 = arith.mulf %687, %686 : vector<24x128xf32>
    %689 = math.tanh %688 : vector<24x128xf32>
    %cst_288 = arith.constant 1.000000e+00 : f32
    %690 = vector.broadcast %cst_288 : f32 to vector<24x128xf32>
    %691 = arith.addf %690, %689 : vector<24x128xf32>
    %cst_289 = arith.constant 5.000000e-01 : f32
    %692 = vector.broadcast %cst_289 : f32 to vector<24x128xf32>
    %693 = arith.mulf %692, %691 : vector<24x128xf32>
    %694 = arith.mulf %681, %693 : vector<24x128xf32>
    %695 = arith.truncf %694 : vector<24x128xf32> to vector<24x128xbf16>
    %cst_290 = arith.constant dense<0.000000e+00> : vector<24x32xf32>
    %696 = tpu.matmul %695, %561, %cst_290 {dimension_numbers = #tpu.dot_dimension_numbers<[1], [0], [0], [1], [0, 0, 1, 1], [], []>} : vector<24x128xbf16>, vector<128x32xbf16>, vector<24x32xf32> -> vector<24x32xf32>
    %697 = arith.addf %655, %696 : vector<24x32xf32>
    %698 = vector.broadcast %563 : vector<1x32xf32> to vector<24x32xf32>
    %699 = arith.addf %697, %698 : vector<24x32xf32>
    %700 = vector.shape_cast %699 : vector<24x32xf32> to vector<1x24x32xf32>
    %701 = vector.shape_cast %700 : vector<1x24x32xf32> to vector<24x32xf32>
    %c0_291 = arith.constant 0 : index
    %c0_292 = arith.constant 0 : index
    %702 = vector.load %arg44[%c0_291, %c0_292] : memref<1x32xf32, #tpu.memory_space<vmem>>, vector<1x32xf32>
    %c0_293 = arith.constant 0 : index
    %c0_294 = arith.constant 0 : index
    %703 = vector.load %arg45[%c0_293, %c0_294] : memref<1x32xf32, #tpu.memory_space<vmem>>, vector<1x32xf32>
    %cst_295 = arith.constant dense<0.000000e+00> : vector<24xf32>
    %704 = vector.multi_reduction <add>, %701, %cst_295 [1] : vector<24x32xf32> to vector<24xf32>
    %705 = vector.shape_cast %704 : vector<24xf32> to vector<24x1xf32>
    %cst_296 = arith.constant 3.200000e+01 : f32
    %706 = vector.broadcast %cst_296 : f32 to vector<24x1xf32>
    %707 = arith.divf %705, %706 : vector<24x1xf32>
    %708 = vector.broadcast %707 : vector<24x1xf32> to vector<24x32xf32>
    %709 = arith.subf %701, %708 : vector<24x32xf32>
    %710 = arith.mulf %709, %709 : vector<24x32xf32>
    %cst_297 = arith.constant dense<0.000000e+00> : vector<24xf32>
    %711 = vector.multi_reduction <add>, %710, %cst_297 [1] : vector<24x32xf32> to vector<24xf32>
    %712 = vector.shape_cast %711 : vector<24xf32> to vector<24x1xf32>
    %cst_298 = arith.constant 3.200000e+01 : f32
    %713 = vector.broadcast %cst_298 : f32 to vector<24x1xf32>
    %714 = arith.divf %712, %713 : vector<24x1xf32>
    %715 = vector.broadcast %707 : vector<24x1xf32> to vector<24x32xf32>
    %716 = arith.subf %701, %715 : vector<24x32xf32>
    %cst_299 = arith.constant 9.99999974E-6 : f32
    %717 = vector.broadcast %cst_299 : f32 to vector<24x1xf32>
    %718 = arith.addf %714, %717 : vector<24x1xf32>
    %719 = math.rsqrt %718 : vector<24x1xf32>
    %720 = vector.broadcast %719 : vector<24x1xf32> to vector<24x32xf32>
    %721 = arith.mulf %716, %720 : vector<24x32xf32>
    %722 = vector.broadcast %702 : vector<1x32xf32> to vector<24x32xf32>
    %723 = arith.mulf %721, %722 : vector<24x32xf32>
    %724 = vector.broadcast %703 : vector<1x32xf32> to vector<24x32xf32>
    %725 = arith.addf %723, %724 : vector<24x32xf32>
    %726 = arith.truncf %725 : vector<24x32xf32> to vector<24x32xbf16>
    %c0_300 = arith.constant 0 : index
    %c0_301 = arith.constant 0 : index
    %727 = vector.load %arg46[%c0_300, %c0_301] : memref<32x128xbf16, #tpu.memory_space<vmem>>, vector<32x128xbf16>
    %cst_302 = arith.constant dense<0.000000e+00> : vector<24x128xf32>
    %728 = tpu.matmul %726, %727, %cst_302 {dimension_numbers = #tpu.dot_dimension_numbers<[1], [0], [0], [1], [0, 0, 1, 1], [], []>} : vector<24x32xbf16>, vector<32x128xbf16>, vector<24x128xf32> -> vector<24x128xf32>
    %c0_303 = arith.constant 0 : index
    %c0_304 = arith.constant 0 : index
    %729 = vector.load %arg47[%c0_303, %c0_304] : memref<1x128xf32, #tpu.memory_space<vmem>>, vector<1x128xf32>
    %730 = vector.broadcast %729 : vector<1x128xf32> to vector<24x128xf32>
    %731 = arith.addf %728, %730 : vector<24x128xf32>
    %732 = vector.shape_cast %731 : vector<24x128xf32> to vector<1x24x128xf32>
    %c0_305 = arith.constant 0 : index
    %c0_306 = arith.constant 0 : index
    %c0_307 = arith.constant 0 : index
    %733 = vector.load %arg48[%c0_305, %c0_306, %c0_307] : memref<1x24x128xf32, #tpu.memory_space<vmem>>, vector<1x24x128xf32>
    tpu.vector_store %arg48[%c0_305, %c0_306, %c0_307], %732 {strides = array<i32>} : memref<1x24x128xf32, #tpu.memory_space<vmem>>, vector<1x24x128xf32>,
    %c0_308 = arith.constant 0 : index
    %c0_309 = arith.constant 0 : index
    %c0_310 = arith.constant 0 : index
    %734 = vector.load %arg5[%c0_308, %c0_309, %c0_310] : memref<1x24x128xf32, #tpu.memory_space<vmem>>, vector<1x24x128xf32>
    %735 = arith.subf %732, %734 : vector<1x24x128xf32>
    %736 = arith.mulf %735, %735 : vector<1x24x128xf32>
    %cst_311 = arith.constant dense<0.000000e+00> : vector<1x24xf32>
    %737 = vector.multi_reduction <add>, %736, %cst_311 [2] : vector<1x24x128xf32> to vector<1x24xf32>
    %738 = vector.shape_cast %737 : vector<1x24xf32> to vector<1x24x1xf32>
    %cst_312 = arith.constant 0.020833334 : f32
    %739 = vector.broadcast %cst_312 : f32 to vector<1x24x1xf32>
    %740 = arith.mulf %738, %739 : vector<1x24x1xf32>
    %c0_313 = arith.constant 0 : index
    %c0_314 = arith.constant 0 : index
    %c0_315 = arith.constant 0 : index
    %741 = vector.load %arg6[%c0_313, %c0_314, %c0_315] : memref<1x24x1xf32, #tpu.memory_space<vmem>>, vector<1x24x1xf32>
    %742 = arith.mulf %740, %741 : vector<1x24x1xf32>
    %cst_316 = arith.constant dense<0.000000e+00> : vector<1x1xf32>
    %743 = vector.multi_reduction <add>, %742, %cst_316 [1] : vector<1x24x1xf32> to vector<1x1xf32>
    %744 = vector.shape_cast %743 : vector<1x1xf32> to vector<1x1x1xf32>
    %745 = vector.shape_cast %744 : vector<1x1x1xf32> to vector<1x1x1xf32>
    %746 = vector.broadcast %745 : vector<1x1x1xf32> to vector<1x1x128xf32>
    %c0_317 = arith.constant 0 : index
    %c0_318 = arith.constant 0 : index
    %c0_319 = arith.constant 0 : index
    %747 = vector.load %arg49[%c0_317, %c0_318, %c0_319] : memref<1x1x128xf32, #tpu.memory_space<vmem>>, vector<1x1x128xf32>
    tpu.vector_store %arg49[%c0_317, %c0_318, %c0_319], %746 {strides = array<i32>} : memref<1x1x128xf32, #tpu.memory_space<vmem>>, vector<1x1x128xf32>,
    return
  }
  func.func @transform_0(%arg0: i32) -> (i32, i32, i32) {
    %c0_i32 = arith.constant 0 : i32
    %c0_i32_0 = arith.constant 0 : i32
    %c0_i32_1 = arith.constant 0 : i32
    return %arg0, %c0_i32, %c0_i32_0 : i32, i32, i32
  }
  func.func @transform_1(%arg0: i32) -> (i32, i32, i32) {
    %c0_i32 = arith.constant 0 : i32
    %c0_i32_0 = arith.constant 0 : i32
    %c0_i32_1 = arith.constant 0 : i32
    return %arg0, %c0_i32, %c0_i32_0 : i32, i32, i32
  }
  func.func @transform_2(%arg0: i32) -> (i32, i32, i32) {
    %c0_i32 = arith.constant 0 : i32
    %c0_i32_0 = arith.constant 0 : i32
    %c0_i32_1 = arith.constant 0 : i32
    return %arg0, %c0_i32, %c0_i32_0 : i32, i32, i32
  }
  func.func @transform_3(%arg0: i32) -> (i32, i32, i32) {
    %c0_i32 = arith.constant 0 : i32
    %c0_i32_0 = arith.constant 0 : i32
    %c0_i32_1 = arith.constant 0 : i32
    return %arg0, %c0_i32, %c0_i32_0 : i32, i32, i32
  }
  func.func @transform_4(%arg0: i32) -> (i32, i32, i32) {
    %c0_i32 = arith.constant 0 : i32
    %c0_i32_0 = arith.constant 0 : i32
    %c0_i32_1 = arith.constant 0 : i32
    return %arg0, %c0_i32, %c0_i32_0 : i32, i32, i32
  }
  func.func @transform_5(%arg0: i32) -> (i32, i32, i32) {
    %c0_i32 = arith.constant 0 : i32
    %c0_i32_0 = arith.constant 0 : i32
    %c0_i32_1 = arith.constant 0 : i32
    return %arg0, %c0_i32, %c0_i32_0 : i32, i32, i32
  }
  func.func @transform_6(%arg0: i32) -> (i32, i32) {
    %c0_i32 = arith.constant 0 : i32
    %c0_i32_0 = arith.constant 0 : i32
    %c0_i32_1 = arith.constant 0 : i32
    return %c0_i32, %c0_i32_0 : i32, i32
  }
  func.func @transform_7(%arg0: i32) -> (i32, i32) {
    %c0_i32 = arith.constant 0 : i32
    %c0_i32_0 = arith.constant 0 : i32
    %c0_i32_1 = arith.constant 0 : i32
    return %c0_i32, %c0_i32_0 : i32, i32
  }
  func.func @transform_8(%arg0: i32) -> (i32, i32, i32) {
    %c0_i32 = arith.constant 0 : i32
    %c0_i32_0 = arith.constant 0 : i32
    %c0_i32_1 = arith.constant 0 : i32
    %c0_i32_2 = arith.constant 0 : i32
    return %c0_i32, %c0_i32_0, %c0_i32_1 : i32, i32, i32
  }
  func.func @transform_9(%arg0: i32) -> (i32, i32, i32) {
    %c0_i32 = arith.constant 0 : i32
    %c0_i32_0 = arith.constant 0 : i32
    %c0_i32_1 = arith.constant 0 : i32
    %c0_i32_2 = arith.constant 0 : i32
    return %c0_i32, %c0_i32_0, %c0_i32_1 : i32, i32, i32
  }
  func.func @transform_10(%arg0: i32) -> (i32, i32, i32) {
    %c0_i32 = arith.constant 0 : i32
    %c0_i32_0 = arith.constant 0 : i32
    %c0_i32_1 = arith.constant 0 : i32
    %c0_i32_2 = arith.constant 0 : i32
    return %c0_i32, %c0_i32_0, %c0_i32_1 : i32, i32, i32
  }
  func.func @transform_11(%arg0: i32) -> (i32, i32, i32) {
    %c0_i32 = arith.constant 0 : i32
    %c0_i32_0 = arith.constant 0 : i32
    %c0_i32_1 = arith.constant 0 : i32
    %c0_i32_2 = arith.constant 0 : i32
    return %c0_i32, %c0_i32_0, %c0_i32_1 : i32, i32, i32
  }
  func.func @transform_12(%arg0: i32) -> (i32, i32, i32) {
    %c0_i32 = arith.constant 0 : i32
    %c0_i32_0 = arith.constant 0 : i32
    %c0_i32_1 = arith.constant 0 : i32
    %c0_i32_2 = arith.constant 0 : i32
    return %c0_i32, %c0_i32_0, %c0_i32_1 : i32, i32, i32
  }
  func.func @transform_13(%arg0: i32) -> (i32, i32, i32, i32) {
    %c0_i32 = arith.constant 0 : i32
    %c0_i32_0 = arith.constant 0 : i32
    %c0_i32_1 = arith.constant 0 : i32
    %c0_i32_2 = arith.constant 0 : i32
    %c0_i32_3 = arith.constant 0 : i32
    return %c0_i32, %c0_i32_0, %c0_i32_1, %c0_i32_2 : i32, i32, i32, i32
  }
  func.func @transform_14(%arg0: i32) -> (i32, i32, i32, i32) {
    %c0_i32 = arith.constant 0 : i32
    %c0_i32_0 = arith.constant 0 : i32
    %c0_i32_1 = arith.constant 0 : i32
    %c0_i32_2 = arith.constant 0 : i32
    %c0_i32_3 = arith.constant 0 : i32
    return %c0_i32, %c0_i32_0, %c0_i32_1, %c0_i32_2 : i32, i32, i32, i32
  }
  func.func @transform_15(%arg0: i32) -> (i32, i32, i32) {
    %c0_i32 = arith.constant 0 : i32
    %c0_i32_0 = arith.constant 0 : i32
    %c0_i32_1 = arith.constant 0 : i32
    %c0_i32_2 = arith.constant 0 : i32
    return %c0_i32, %c0_i32_0, %c0_i32_1 : i32, i32, i32
  }
  func.func @transform_16(%arg0: i32) -> (i32, i32, i32) {
    %c0_i32 = arith.constant 0 : i32
    %c0_i32_0 = arith.constant 0 : i32
    %c0_i32_1 = arith.constant 0 : i32
    %c0_i32_2 = arith.constant 0 : i32
    return %c0_i32, %c0_i32_0, %c0_i32_1 : i32, i32, i32
  }
  func.func @transform_17(%arg0: i32) -> (i32, i32, i32) {
    %c0_i32 = arith.constant 0 : i32
    %c0_i32_0 = arith.constant 0 : i32
    %c0_i32_1 = arith.constant 0 : i32
    %c0_i32_2 = arith.constant 0 : i32
    return %c0_i32, %c0_i32_0, %c0_i32_1 : i32, i32, i32
  }
  func.func @transform_18(%arg0: i32) -> (i32, i32, i32) {
    %c0_i32 = arith.constant 0 : i32
    %c0_i32_0 = arith.constant 0 : i32
    %c0_i32_1 = arith.constant 0 : i32
    %c0_i32_2 = arith.constant 0 : i32
    return %c0_i32, %c0_i32_0, %c0_i32_1 : i32, i32, i32
  }
  func.func @transform_19(%arg0: i32) -> (i32, i32, i32) {
    %c0_i32 = arith.constant 0 : i32
    %c0_i32_0 = arith.constant 0 : i32
    %c0_i32_1 = arith.constant 0 : i32
    %c0_i32_2 = arith.constant 0 : i32
    return %c0_i32, %c0_i32_0, %c0_i32_1 : i32, i32, i32
  }
  func.func @transform_20(%arg0: i32) -> (i32, i32, i32) {
    %c0_i32 = arith.constant 0 : i32
    %c0_i32_0 = arith.constant 0 : i32
    %c0_i32_1 = arith.constant 0 : i32
    %c0_i32_2 = arith.constant 0 : i32
    return %c0_i32, %c0_i32_0, %c0_i32_1 : i32, i32, i32
  }
  func.func @transform_21(%arg0: i32) -> (i32, i32, i32) {
    %c0_i32 = arith.constant 0 : i32
    %c0_i32_0 = arith.constant 0 : i32
    %c0_i32_1 = arith.constant 0 : i32
    %c0_i32_2 = arith.constant 0 : i32
    return %c0_i32, %c0_i32_0, %c0_i32_1 : i32, i32, i32
  }
  func.func @transform_22(%arg0: i32) -> (i32, i32, i32) {
    %c0_i32 = arith.constant 0 : i32
    %c0_i32_0 = arith.constant 0 : i32
    %c0_i32_1 = arith.constant 0 : i32
    %c0_i32_2 = arith.constant 0 : i32
    return %c0_i32, %c0_i32_0, %c0_i32_1 : i32, i32, i32
  }
  func.func @transform_23(%arg0: i32) -> (i32, i32, i32) {
    %c0_i32 = arith.constant 0 : i32
    %c0_i32_0 = arith.constant 0 : i32
    %c0_i32_1 = arith.constant 0 : i32
    %c0_i32_2 = arith.constant 0 : i32
    return %c0_i32, %c0_i32_0, %c0_i32_1 : i32, i32, i32
  }
  func.func @transform_24(%arg0: i32) -> (i32, i32, i32) {
    %c0_i32 = arith.constant 0 : i32
    %c0_i32_0 = arith.constant 0 : i32
    %c0_i32_1 = arith.constant 0 : i32
    %c0_i32_2 = arith.constant 0 : i32
    return %c0_i32, %c0_i32_0, %c0_i32_1 : i32, i32, i32
  }
  func.func @transform_25(%arg0: i32) -> (i32, i32, i32) {
    %c0_i32 = arith.constant 0 : i32
    %c0_i32_0 = arith.constant 0 : i32
    %c0_i32_1 = arith.constant 0 : i32
    %c0_i32_2 = arith.constant 0 : i32
    return %c0_i32, %c0_i32_0, %c0_i32_1 : i32, i32, i32
  }
  func.func @transform_26(%arg0: i32) -> (i32, i32) {
    %c0_i32 = arith.constant 0 : i32
    %c0_i32_0 = arith.constant 0 : i32
    %c0_i32_1 = arith.constant 0 : i32
    return %c0_i32, %c0_i32_0 : i32, i32
  }
  func.func @transform_27(%arg0: i32) -> (i32, i32) {
    %c0_i32 = arith.constant 0 : i32
    %c0_i32_0 = arith.constant 0 : i32
    %c0_i32_1 = arith.constant 0 : i32
    return %c0_i32, %c0_i32_0 : i32, i32
  }
  func.func @transform_28(%arg0: i32) -> (i32, i32) {
    %c0_i32 = arith.constant 0 : i32
    %c0_i32_0 = arith.constant 0 : i32
    %c0_i32_1 = arith.constant 0 : i32
    return %c0_i32, %c0_i32_0 : i32, i32
  }
  func.func @transform_29(%arg0: i32) -> (i32, i32) {
    %c0_i32 = arith.constant 0 : i32
    %c0_i32_0 = arith.constant 0 : i32
    %c0_i32_1 = arith.constant 0 : i32
    return %c0_i32, %c0_i32_0 : i32, i32
  }
  func.func @transform_30(%arg0: i32) -> (i32, i32, i32) {
    %c0_i32 = arith.constant 0 : i32
    %c0_i32_0 = arith.constant 0 : i32
    %c0_i32_1 = arith.constant 0 : i32
    %c0_i32_2 = arith.constant 0 : i32
    return %c0_i32, %c0_i32_0, %c0_i32_1 : i32, i32, i32
  }
  func.func @transform_31(%arg0: i32) -> (i32, i32, i32) {
    %c0_i32 = arith.constant 0 : i32
    %c0_i32_0 = arith.constant 0 : i32
    %c0_i32_1 = arith.constant 0 : i32
    %c0_i32_2 = arith.constant 0 : i32
    return %c0_i32, %c0_i32_0, %c0_i32_1 : i32, i32, i32
  }
  func.func @transform_32(%arg0: i32) -> (i32, i32, i32) {
    %c0_i32 = arith.constant 0 : i32
    %c0_i32_0 = arith.constant 0 : i32
    %c0_i32_1 = arith.constant 0 : i32
    %c0_i32_2 = arith.constant 0 : i32
    return %c0_i32, %c0_i32_0, %c0_i32_1 : i32, i32, i32
  }
  func.func @transform_33(%arg0: i32) -> (i32, i32, i32) {
    %c0_i32 = arith.constant 0 : i32
    %c0_i32_0 = arith.constant 0 : i32
    %c0_i32_1 = arith.constant 0 : i32
    %c0_i32_2 = arith.constant 0 : i32
    return %c0_i32, %c0_i32_0, %c0_i32_1 : i32, i32, i32
  }
  func.func @transform_34(%arg0: i32) -> (i32, i32, i32) {
    %c0_i32 = arith.constant 0 : i32
    %c0_i32_0 = arith.constant 0 : i32
    %c0_i32_1 = arith.constant 0 : i32
    %c0_i32_2 = arith.constant 0 : i32
    return %c0_i32, %c0_i32_0, %c0_i32_1 : i32, i32, i32
  }
  func.func @transform_35(%arg0: i32) -> (i32, i32, i32) {
    %c0_i32 = arith.constant 0 : i32
    %c0_i32_0 = arith.constant 0 : i32
    %c0_i32_1 = arith.constant 0 : i32
    %c0_i32_2 = arith.constant 0 : i32
    return %c0_i32, %c0_i32_0, %c0_i32_1 : i32, i32, i32
  }
  func.func @transform_36(%arg0: i32) -> (i32, i32, i32) {
    %c0_i32 = arith.constant 0 : i32
    %c0_i32_0 = arith.constant 0 : i32
    %c0_i32_1 = arith.constant 0 : i32
    %c0_i32_2 = arith.constant 0 : i32
    return %c0_i32, %c0_i32_0, %c0_i32_1 : i32, i32, i32
  }
  func.func @transform_37(%arg0: i32) -> (i32, i32, i32) {
    %c0_i32 = arith.constant 0 : i32
    %c0_i32_0 = arith.constant 0 : i32
    %c0_i32_1 = arith.constant 0 : i32
    %c0_i32_2 = arith.constant 0 : i32
    return %c0_i32, %c0_i32_0, %c0_i32_1 : i32, i32, i32
  }
  func.func @transform_38(%arg0: i32) -> (i32, i32, i32) {
    %c0_i32 = arith.constant 0 : i32
    %c0_i32_0 = arith.constant 0 : i32
    %c0_i32_1 = arith.constant 0 : i32
    %c0_i32_2 = arith.constant 0 : i32
    return %c0_i32, %c0_i32_0, %c0_i32_1 : i32, i32, i32
  }
  func.func @transform_39(%arg0: i32) -> (i32, i32, i32) {
    %c0_i32 = arith.constant 0 : i32
    %c0_i32_0 = arith.constant 0 : i32
    %c0_i32_1 = arith.constant 0 : i32
    %c0_i32_2 = arith.constant 0 : i32
    return %c0_i32, %c0_i32_0, %c0_i32_1 : i32, i32, i32
  }
  func.func @transform_40(%arg0: i32) -> (i32, i32, i32) {
    %c0_i32 = arith.constant 0 : i32
    %c0_i32_0 = arith.constant 0 : i32
    %c0_i32_1 = arith.constant 0 : i32
    %c0_i32_2 = arith.constant 0 : i32
    return %c0_i32, %c0_i32_0, %c0_i32_1 : i32, i32, i32
  }
  func.func @transform_41(%arg0: i32) -> (i32, i32, i32) {
    %c0_i32 = arith.constant 0 : i32
    %c0_i32_0 = arith.constant 0 : i32
    %c0_i32_1 = arith.constant 0 : i32
    %c0_i32_2 = arith.constant 0 : i32
    return %c0_i32, %c0_i32_0, %c0_i32_1 : i32, i32, i32
  }
  func.func @transform_42(%arg0: i32) -> (i32, i32, i32) {
    %c0_i32 = arith.constant 0 : i32
    %c0_i32_0 = arith.constant 0 : i32
    %c0_i32_1 = arith.constant 0 : i32
    %c0_i32_2 = arith.constant 0 : i32
    return %c0_i32, %c0_i32_0, %c0_i32_1 : i32, i32, i32
  }
  func.func @transform_43(%arg0: i32) -> (i32, i32) {
    %c0_i32 = arith.constant 0 : i32
    %c0_i32_0 = arith.constant 0 : i32
    %c0_i32_1 = arith.constant 0 : i32
    return %c0_i32, %c0_i32_0 : i32, i32
  }
  func.func @transform_44(%arg0: i32) -> (i32, i32) {
    %c0_i32 = arith.constant 0 : i32
    %c0_i32_0 = arith.constant 0 : i32
    %c0_i32_1 = arith.constant 0 : i32
    return %c0_i32, %c0_i32_0 : i32, i32
  }
  func.func @transform_45(%arg0: i32) -> (i32, i32) {
    %c0_i32 = arith.constant 0 : i32
    %c0_i32_0 = arith.constant 0 : i32
    %c0_i32_1 = arith.constant 0 : i32
    return %c0_i32, %c0_i32_0 : i32, i32
  }
  func.func @transform_46(%arg0: i32) -> (i32, i32) {
    %c0_i32 = arith.constant 0 : i32
    %c0_i32_0 = arith.constant 0 : i32
    %c0_i32_1 = arith.constant 0 : i32
    return %c0_i32, %c0_i32_0 : i32, i32
  }
  func.func @transform_47(%arg0: i32) -> (i32, i32, i32) {
    %c0_i32 = arith.constant 0 : i32
    %c0_i32_0 = arith.constant 0 : i32
    %c0_i32_1 = arith.constant 0 : i32
    return %arg0, %c0_i32, %c0_i32_0 : i32, i32, i32
  }
  func.func @transform_48(%arg0: i32) -> (i32, i32, i32) {
    %c0_i32 = arith.constant 0 : i32
    %c0_i32_0 = arith.constant 0 : i32
    %c0_i32_1 = arith.constant 0 : i32
    return %arg0, %c0_i32, %c0_i32_0 : i32, i32, i32
  }
}

</mosaic_0001>

<bundles_post_ra>
// kernel: mae_forward.1
= control target key start
LH: loop header
LB: loop body
LE: loop exit
PB: predicated region body
PF: predicated region fallthrough
CT: control target
= control target key end

     0   :  { %s8248_s6 = smov 1   ;;  %s8249_s10 = smov 2   ;;  %s9440_s0 = inlined_call_operand.smem [shape: u32[49], index: -1, kind: input, shape index: {}] }
   0x1   :  { %s8307_s5 = sld [smem:[%s9440_s0]]   ;;  %s8250_s14 = smov 3  }
   0x2   :  { %s8312_s9 = sld [smem:[%s9440_s0 + %s8248_s6]]   ;;  %s8251_s18 = smov 4  }
   0x3   :  { %s8317_s13 = sld [smem:[%s9440_s0 + %s8249_s10]]   ;;  %s8252_s22 = smov 5  }
   0x4   :  { %s8322_s17 = sld [smem:[%s9440_s0 + %s8250_s14]]   ;;  %s8253_s26 = smov 6  }
   0x5   :  { %s8327_s21 = sld [smem:[%s9440_s0 + %s8251_s18]]   ;;  %s8254_s30 = smov 7  }
   0x6   :  { %s8332_s25 = sld [smem:[%s9440_s0 + %s8252_s22]]   ;;  %s8255_s4 = smov 8  }
   0x7   :  { %9473 = sst [smem:[#allocation2_spill]] %s8307_s5  ;;  %s8256_s10 = smov 9  }
   0x8   :  { %9474 = sst [smem:[#allocation3_spill]] %s8312_s9  ;;  %s8257_s15 = smov 10  }
   0x9   :  { %9475 = sst [smem:[#allocation4_spill]] %s8317_s13  ;;  %s8258_s20 = smov 11  }
   0xa   :  { %9476 = sst [smem:[#allocation5_spill]] %s8322_s17  ;;  %s8260_s1 = smov 13  }
   0xb   :  { %9477 = sst [smem:[#allocation6_spill]] %s8327_s21  ;;  %s8261_s7 = smov 14  }
   0xc   :  { %9478 = sst [smem:[#allocation7_spill]] %s8332_s25  ;;  %s8263_s22 = smov 16  }
   0xd   :  { %s8337_s29 = sld [smem:[%s9440_s0 + %s8253_s26]]   ;;  %s8259_s26 = smov 12  }
   0xe   :  { %s8342_s3 = sld [smem:[%s9440_s0 + %s8254_s30]]   ;;  %s8264_s28 = smov 17  }
   0xf   :  { %s8347_s8 = sld [smem:[%s9440_s0 + %s8255_s4]]  }
  0x10   :  { %s8352_s14 = sld [smem:[%s9440_s0 + %s8256_s10]]  }
  0x11   :  { %s8357_s19 = sld [smem:[%s9440_s0 + %s8257_s15]]   ;;  %s8262_s15 = smov 15  }
  0x12   :  { %s8362_s24 = sld [smem:[%s9440_s0 + %s8258_s20]]  }
  0x13   :  { %s8367_s30 = sld [smem:[%s9440_s0 + %s8259_s26]]  }
  0x14   :  { %9479 = sst [smem:[#allocation8_spill]] %s8342_s3 }
  0x15   :  { %9480 = sst [smem:[#allocation9_spill]] %s8347_s8 }
  0x16   :  { %9481 = sst [smem:[#allocation10_spill]] %s8352_s14 }
  0x17   :  { %s8372_s6 = sld [smem:[%s9440_s0 + %s8260_s1]]  }
  0x18   :  { %s8377_s12 = sld [smem:[%s9440_s0 + %s8261_s7]]   ;;  %s8265_s7 = smov 18  }
  0x19   :  { %9482 = sst [smem:[#allocation11_spill]] %s8367_s30 }
  0x1a   :  { %s8382_s20 = sld [smem:[%s9440_s0 + %s8262_s15]]   ;;  %s8266_s15 = smov 19  }
  0x1b   :  { %s8387_s27 = sld [smem:[%s9440_s0 + %s8263_s22]]   ;;  %s8267_s22 = smov 20  }
  0x1c   :  { %s8392_s4 = sld [smem:[%s9440_s0 + %s8264_s28]]   ;;  %s8268_s28 = smov 21  }
  0x1d   :  { %9483 = sst [smem:[#allocation12_spill]] %s8372_s6 }
  0x1e   :  { %9484 = sst [smem:[#allocation13_spill]] %s8377_s12 }
  0x1f   :  { %s8397_s25 = sld [smem:[%s9440_s0 + %s8265_s7]]   ;;  %s8269_s7 = smov 22  }
  0x20   :  { %s8402_s21 = sld [smem:[%s9440_s0 + %s8266_s15]]   ;;  %s8270_s15 = smov 23  }
  0x21   :  { %s8407_s30 = sld [smem:[%s9440_s0 + %s8267_s22]]   ;;  %s8271_s22 = smov 24  }
  0x22   :  { %9485 = sst [smem:[#allocation14_spill]] %s8392_s4 }
  0x23   :  { %s8412_s12 = sld [smem:[%s9440_s0 + %s8268_s28]]   ;;  %s8272_s28 = smov 25  }
  0x24   :  { %s8417_s13 = sld [smem:[%s9440_s0 + %s8269_s7]]   ;;  %s8273_s7 = smov 26  }
  0x25   :  { %s8422_s17 = sld [smem:[%s9440_s0 + %s8270_s15]]   ;;  %s8274_s15 = smov 27  }
  0x27   :  { %9486 = sst [smem:[#allocation15_spill]] %s8407_s30 }
  0x28   :  { %s8427_s30 = sld [smem:[%s9440_s0 + %s8271_s22]]   ;;  %s8275_s22 = smov 28  }
  0x29   :  { %9487 = sst [smem:[#allocation16_spill]] %s8412_s12 }
  0x2a   :  { %9488 = sst [smem:[#allocation17_spill]] %s8417_s13 }
  0x2b   :  { %9489 = sst [smem:[#allocation18_spill]] %s8422_s17 }
  0x2c   :  { %s8432_s12 = sld [smem:[%s9440_s0 + %s8272_s28]]   ;;  %s8276_s28 = smov 29  }
  0x2d   :  { %s8437_s13 = sld [smem:[%s9440_s0 + %s8273_s7]]   ;;  %s8277_s7 = smov 30  }
  0x2e   :  { %9490 = sst [smem:[#allocation19_spill]] %s8427_s30 }
  0x2f   :  { %s8442_s17 = sld [smem:[%s9440_s0 + %s8274_s15]]   ;;  %s8278_s15 = smov 31  }
  0x30   :  { %s8447_s30 = sld [smem:[%s9440_s0 + %s8275_s22]]   ;;  %s8279_s22 = smov 32  }
  0x32   :  { %9491 = sst [smem:[#allocation20_spill]] %s8432_s12 }
  0x33   :  { %9492 = sst [smem:[#allocation21_spill]] %s8437_s13 }
  0x34   :  { %s8452_s12 = sld [smem:[%s9440_s0 + %s8276_s28]]   ;;  %s8280_s28 = smov 33  }
  0x35   :  { %9493 = sst [smem:[#allocation22_spill]] %s8442_s17 }
  0x36   :  { %9494 = sst [smem:[#allocation23_spill]] %s8447_s30 }
  0x37   :  { %s8457_s13 = sld [smem:[%s9440_s0 + %s8277_s7]]   ;;  %s8281_s7 = smov 34  }
  0x38   :  { %s8462_s17 = sld [smem:[%s9440_s0 + %s8278_s15]]   ;;  %s8282_s15 = smov 35  }
  0x39   :  { %s8467_s30 = sld [smem:[%s9440_s0 + %s8279_s22]]   ;;  %s8283_s22 = smov 36  }
  0x3a   :  { %9495 = sst [smem:[#allocation24_spill]] %s8452_s12 }
  0x3b   :  { %s8472_s12 = sld [smem:[%s9440_s0 + %s8280_s28]]   ;;  %s8284_s28 = smov 37  }
  0x3d   :  { %9496 = sst [smem:[#allocation25_spill]] %s8457_s13 }
  0x3e   :  { %9497 = sst [smem:[#allocation26_spill]] %s8462_s17 }
  0x3f   :  { %9498 = sst [smem:[#allocation27_spill]] %s8467_s30 }
  0x40   :  { %s8477_s13 = sld [smem:[%s9440_s0 + %s8281_s7]]   ;;  %s8285_s7 = smov 38  }
  0x41   :  { %9499 = sst [smem:[#allocation28_spill]] %s8472_s12 }
  0x42   :  { %s8482_s17 = sld [smem:[%s9440_s0 + %s8282_s15]]   ;;  %s8286_s15 = smov 39  }
  0x43   :  { %s8487_s30 = sld [smem:[%s9440_s0 + %s8283_s22]]   ;;  %s8287_s22 = smov 40  }
  0x44   :  { %s8492_s12 = sld [smem:[%s9440_s0 + %s8284_s28]]   ;;  %s8288_s28 = smov 41  }
  0x46   :  { %9500 = sst [smem:[#allocation29_spill]] %s8477_s13 }
  0x47   :  { %s8497_s13 = sld [smem:[%s9440_s0 + %s8285_s7]]   ;;  %s8289_s7 = smov 42  }
  0x48   :  { %9501 = sst [smem:[#allocation30_spill]] %s8482_s17 }
  0x49   :  { %9502 = sst [smem:[#allocation31_spill]] %s8487_s30 }
  0x4a   :  { %9503 = sst [smem:[#allocation32_spill]] %s8492_s12 }
  0x4b   :  { %s8502_s17 = sld [smem:[%s9440_s0 + %s8286_s15]]   ;;  %s8290_s15 = smov 43  }
  0x4c   :  { %s8507_s30 = sld [smem:[%s9440_s0 + %s8287_s22]]   ;;  %s8291_s22 = smov 44  }
  0x4d   :  { %9504 = sst [smem:[#allocation33_spill]] %s8497_s13 }
  0x4e   :  { %s8512_s12 = sld [smem:[%s9440_s0 + %s8288_s28]]   ;;  %s8292_s28 = smov 45  }
  0x4f   :  { %s8517_s13 = sld [smem:[%s9440_s0 + %s8289_s7]]   ;;  %s8293_s7 = smov 46  }
  0x51   :  { %9505 = sst [smem:[#allocation34_spill]] %s8502_s17 }
  0x52   :  { %9506 = sst [smem:[#allocation35_spill]] %s8507_s30 }
  0x53   :  { %s8522_s17 = sld [smem:[%s9440_s0 + %s8290_s15]]   ;;  %s8294_s15 = smov 47  }
  0x54   :  { %9507 = sst [smem:[#allocation36_spill]] %s8512_s12 }
  0x55   :  { %9508 = sst [smem:[#allocation37_spill]] %s8517_s13 }
  0x56   :  { %s8527_s30 = sld [smem:[%s9440_s0 + %s8291_s22]]   ;;  %s8295_s22 = smov 48  }
  0x57   :  { %s8532_s12 = sld [smem:[%s9440_s0 + %s8292_s28]]   ;;  %s8549_s28 = smov 0  }
  0x58   :  { %s8537_s13 = sld [smem:[%s9440_s0 + %s8293_s7]]  }
  0x59   :  { %9509 = sst [smem:[#allocation38_spill]] %s8522_s17 }
  0x5a   :  { %s8542_s17 = sld [smem:[%s9440_s0 + %s8294_s15]]  }
  0x5c   :  { %9510 = sst [smem:[#allocation39_spill]] %s8527_s30 }
  0x5d   :  { %s8547_s30 = sld [smem:[%s9440_s0 + %s8295_s22]]  }
  0x5e LB: > { %s9511_s8 = sld [smem:[#allocation9_spill]]  ;;  %s6862_s1 = sadd.s32 4294967295, %s8246_s28   ;;  %s8246_s28 = sphi %s8549_s28, %s108_s28  }
  0x5f   : > { %s9512_s6 = sld [smem:[#allocation12_spill]]  ;;  %p6866_p0 = scmp.ge.s32.totalorder %s8246_s28, 1 }
  0x60   : > { %s9513_s4 = sld [smem:[#allocation14_spill]]  ;;  %p1363_p1 = scmp.lt.s32.totalorder %s8246_s28, 3 }
  0x62   : > { %p1364_p2 = pnand %p6866_p0, %p1363_p1 }
  0x63   : > { %s9514_s5 = sld [smem:[#allocation2_spill]] (!%p1364_p2)  ;;  %p1504_p3 = scmp.lt.s32.totalorder (!%p1364_p2), %s6862_s1, 1 }
  0x64   : > { %1367 = sbr.rel (%p1364_p2) target bundleno = 10816 (0x2a40), region = 208  ;;  %s9515_s3 = sld [smem:[#allocation8_spill]] (!%p1364_p2) }
  0x65   : > { %s9516_s9 = sld [smem:[#allocation3_spill]] (!%p1364_p2) }
  0x66   : > { %s9517_s14 = sld [smem:[#allocation10_spill]] (!%p1364_p2) }
  0x67   : > { %s9518_s11 = sld [smem:[#allocation15_spill]] (!%p1364_p2) }
  0x68   : > { %s9519_s15 = sld [smem:[#allocation16_spill]] (!%p1364_p2) }
  0x69   : > { %v7972_v0 = vld [vmem:[%s8337_s29 + $0x10] sm:$0xff]   ;;  %v8296_v1 = vmov 0.0   ;;  %v7973_v2 = vld [vmem:[%s8337_s29 + $0x8] sm:$0xff]   ;;  %vm8297_vm0 = vmmov 0   ;;  %s9550_s1 = smov (!%p1504_p3, %s6862_s1), 1  ;;  %v7974_v3 = vld [vmem:[%s8337_s29] sm:$0xff]   ;;  %v1775_v38 = vlaneseq }
  0x6a   : > { %7378 = vmatprep.subr.bf16.mxu0 %v8296_v1  ;;  %7388 = vmatprep.subr.mxu1 %v8296_v1  ;;  %s7155_s0 = sshll.u32 %s9550_s1, 4  ;;  %vm1576_vm1 = vcmask 392192   ;;  %v1626_v7 = vld [vmem:[%s8357_s19] sm:$0xff]  ;;  %v8298_v8 = vmov 0   ;;  %s6869_s7 = sshll.u32 %s9550_s1, 3  ;;  %v1622_v13 = vld [vmem:[%s9511_s8 + $0x8] sm:$0xff] }
  0x6b   : > { %7379 = vmatpush3.bf16.msra.mxu0 %v7972_v0  ;;  %7384 = vmatprep.mubr.msk.bf16.mxu0 %vm8297_vm0, %v8296_v1  ;;  %s1508_s2 = scalar_lea.vmem %s9514_s5, %s7155_s0  ;;  %v6875_v10 = vld [vmem:[%s9515_s3] ss:$0 sm:$0xff]  ;;  %s1512_s10 = scalar_lea.vmem %s9516_s9, %s6869_s7  ;;  %vm1640_vm2 = vcmask 130048   ;;  %vm1760_vm3 = vcmask 261120   ;;  %v7975_v33 = vld [vmem:[%s8387_s27 + $0x8] sm:$0xff]   ;;  %v8596_v39 = vshrl.u32 %v1775_v38, 7 }
  0x6c   : > { %7380 = vmatprep.subr.bf16.mxu0 %v8296_v1  ;;  %7392 = vmatprep.mubr.msk.f32.mxu1 %vm8297_vm0, %v8296_v1  ;;  %v1542_v4 = vld [vmem:[%s1508_s2] sm:$0xff]  ;;  %v1543_v5 = vld [vmem:[%s1508_s2 + $0x8] sm:$0xff]  ;;  %vm2239_vm4 = vcmask 1043456   ;;  %vm2183_vm5 = vcmask 64512   ;;  %s9520_s16 = sld [smem:[#allocation17_spill]]  ;;  %s8910_s2 = smul.u32 24, %s9550_s1 }
  0x6d   : > { %v1544_v6 = vpack.c.bf16 %v1543_v5, %v1542_v4  ;;  %7970 = vset.pattern.permute.xlu0 %v8298_v8  ;;  %7971 = vset.pattern.permute.xlu1 %v8298_v8  ;;  %v1621_v16 = vld [vmem:[%s9511_s8] sm:$0xff]  ;;  %v8599_v40 = vsub.s32 0, %v8596_v39  ;;  %v8605_v42 = vsub.s32 1, %v8596_v39  ;;  %v7977_v49 = vld [vmem:[%s9513_s4 + $0x8] sm:$0xff]   ;;  %v8632_v63 = vsub.s32 2, %v8596_v39  ;;  %s9521_s18 = sld [smem:[#allocation19_spill]] }
  0x6e   : > { %1630 = vperm.xlu0 %7970, %v1626_v7   ;;  %v1625_v20 = vld [vmem:[%s1512_s10] sm:$0xff]  ;;  %v7979_v52 = vld [vmem:[%s8397_s25 + $0x8] sm:$0xff]   ;;  %s9522_s22 = sld [smem:[#allocation18_spill]]  ;;  %vm4447_vm6 = vcmask 195584   ;;  %vm6656_vm7 = vcmask 7168  }
  0x6f   : > { %7381 = vmatpush3.bf16.msra.mxu0 %v7973_v2  ;;  %v6880_v21 = vld [vmem:[%s9517_s14] ss:$0 sm:$0xff]  ;;  %v8638_v5 = vld [vmem:[%s9512_s6 + $0x1] ss:$0 sm:$0xff]  ;;  %s9523_s23 = sld [smem:[#allocation20_spill]] }
  0x70   : > { %7382 = vmatprep.subr.bf16.mxu0 %v8296_v1  ;;  %v7976_v34 = vld [vmem:[%s8387_s27] sm:$0xff]   ;;  %s9524_s26 = sld [smem:[#allocation5_spill]] }
  0x71   : > { %v8602_v41 = vld [vmem:[%s8382_s20] sm:$0xf]  ;;  %s9525_s0 = sld [smem:[#allocation23_spill]] }
  0x72   : > { %v1778_v43 = vrot.slane %v8602_v41, %v8599_v40  ;;  %v1783_v46 = vrot.slane %v8602_v41, %v8605_v42  ;;  %v7978_v51 = vld [vmem:[%s9513_s4] sm:$0xff]   ;;  %s9526_s10 = sld [smem:[#allocation21_spill]] }
  0x73   : > { %7383 = vmatpush3.bf16.msra.mxu0 %v7974_v3  ;;  %v7980_v53 = vld [vmem:[%s8397_s25] sm:$0xff]   ;;  %s9527_s3 = sld [smem:[#allocation22_spill]] }
  0x74   : > { %7419 = vmatprep.subr.bf16.mxu0 %v8296_v1  ;;  %v1732_v56 = vld [vmem:[%s8402_s21] sm:$0x7]  ;;  %s9540_s8 = sld [smem:[#allocation33_spill]] }
  0x75   : > { %v1848_v58 = vrot.slane %v1732_v56, %v8605_v42  ;;  %v1789_v60 = vrot.slane %v1732_v56, %v8599_v40  ;;  %v8635_v4 = vld [vmem:[%s9512_s6] ss:$0 sm:$0xff]  ;;  %v1904_v8 = vrot.slane %v1732_v56, %v8632_v63  ;;  %s9541_s9 = sld [smem:[#allocation34_spill]] }
  0x76   : > { %7385 = vmatmul.mubr.msk.bf16.vlgmr.msra.gmra.mxu0 %vm1576_vm1, %v1544_v6  ;;  %s1522_s7 = scalar_lea.vmem %s9524_s26, %s8910_s2  ;;  %s9528_s26 = sld [smem:[#allocation24_spill]] }
  0x77   : > { %7421 = vmatprep.mubr.msk.bf16.mxu0 %vm8297_vm0, %v8296_v1  ;;  %s9543_s14 = sld [smem:[#allocation35_spill]] }
  0xe9   : > { %v1631_v22 = vpop.permute.xlu0 %1630 }
  0xea   : > { %v1639_v23 = vmul.f32 %v6880_v21, %v1631_v22 }
 0x136   : > { %v1614_v9 = vpop.f32.mrf.mxu0 }
 0x137   : > { %v1615_v14 = vadd.f32 %v6875_v10, %v1614_v9 }
 0x138   : > { %v7386_v11 = vpop.f32.mrf.mxu0 }
 0x139   : > { %v1623_v19 = vadd.f32 %v1621_v16, %v1615_v14 }
 0x13a   : > { %v1617_v12 = vpop.f32.mrf.mxu0 }
 0x13b   : > { %v1618_v15 = vadd.f32 %v6875_v10, %v1617_v12 }
 0x13c   : > { %v7387_v17 = vpop.f32.mrf.mxu0 }
 0x13d   : > { %v1624_v18 = vadd.f32 %v1622_v13, %v1618_v15  ;;  %v8649_v17 = vld [vmem:[%s9512_s6 + $0x2] ss:$0 sm:$0xff] }
 0x13f   : > { %7389 = vmatpush3.msra.mxu1 %v1624_v18  ;;  %v8652_v18 = vld [vmem:[%s9512_s6 + $0x3] ss:$0 sm:$0xff]  ;;  %s9539_s6 = sld [smem:[#allocation32_spill]] }
 0x140   : > { %7390 = vmatprep.subr.mxu1 %v8296_v1 }
 0x141   : > { %7391 = vmatpush3.msra.mxu1 %v1623_v19 }
 0x142   : > { %7393 = vmatmul.mubr.msk.f32.vlgmr.msra.gmra.mxu1 %vm1640_vm2, %v1625_v20  ;;  %7395 = vmatprep.subr.bf16.mxu1 %v8296_v1 }
 0x143   : > { %7399 = vmatprep.mubr.msk.bf16.mxu1 %vm8297_vm0, %v8296_v1  ;;  %7396 = vmatpush3.bf16.msra.mxu1 %v7975_v33 }
 0x144   : > { %7397 = vmatprep.subr.bf16.mxu1 %v8296_v1 }
 0x147   : > { %7398 = vmatpush3.bf16.msra.mxu1 %v7976_v34  ;;  %v8679_v34 = vld [vmem:[%s8362_s24] ss:$0 sm:$0xff] }
 0x148   : > { %7403 = vmatprep.subr.bf16.mxu1 %v8296_v1 }
 0x202   : > { %v1710_v24 = vpop.f32.mrf.mxu1 }
 0x203   : > { %v8586_v25 = vadd.f32 %v1710_v24, %v1639_v23 }
 0x204   : > { %v7394_v26 = vpop.f32.mrf.mxu1 }
 0x205   : > { %v1761_v27 = vsel %vm1760_vm3, %v8586_v25, 0.0 }
 0x206   : > { %1762 = vadd.xlane.f32.xlu0 %v1761_v27 }
 0x28f   : > { %v1763_v28 = vpop.xlane.xlu0 %1762 }
 0x290   : > { %v1765_v29 = vmul.f32 0.03125, %v1763_v28 }
 0x292   : > { %v1766_v30 = vsub.f32 %v8586_v25, %v1765_v29 }
 0x294   : > { %v1767_v31 = vmul.f32 %v1766_v30, %v1766_v30 }
 0x296   : > { %v1768_v32 = vsel %vm1760_vm3, %v1767_v31, 0.0 }
 0x297   : > { %1769 = vadd.xlane.f32.xlu1 %v1768_v32 }
 0x320   : > { %v1770_v35 = vpop.xlane.xlu1 %1769 }
 0x321   : > { %v1771_v36 = vmul.f32 0.03125, %v1770_v35 }
 0x323   : > { %v1772_v37 = vadd.f32 1e-05, %v1771_v36 }
 0x325   : > { %8051 = vrsqrt.f32 %v1772_v37 }
 0x332   : > { %v8052_v44 = vpop.eup %8051 }
 0x333   : > { %v1774_v45 = vmul.f32 %v8052_v44, %v1766_v30 }
 0x335   : > { %v1779_v47 = vmul.f32 %v1778_v43, %v1774_v45 }
 0x337   : > { %v1784_v48 = vadd.f32 %v1783_v46, %v1779_v47 }
 0x339   : > { %v1785_v50 = vpack.c.bf16 %v1784_v48, %v1784_v48 }
 0x33b   : > { %7400 = vmatmul.mubr.msk.bf16.vlgmr.msra.gmra.mxu1 %vm1760_vm3, %v1785_v50 }
 0x33c   : > { %7404 = vmatpush3.bf16.msra.mxu1 %v7977_v49  ;;  %7407 = vmatprep.mubr.msk.bf16.mxu1 %vm8297_vm0, %v8296_v1 }
 0x33d   : > { %7405 = vmatprep.subr.bf16.mxu1 %v8296_v1 }
 0x340   : > { %7406 = vmatpush3.bf16.msra.mxu1 %v7978_v51 }
 0x341   : > { %7411 = vmatprep.subr.bf16.mxu1 %v8296_v1 }
 0x343   : > { %7408 = vmatmul.mubr.msk.bf16.vlgmr.msra.gmra.mxu1 %vm1760_vm3, %v1785_v50 }
 0x344   : > { %7412 = vmatpush3.bf16.msra.mxu1 %v7979_v52  ;;  %7415 = vmatprep.mubr.msk.bf16.mxu1 %vm8297_vm0, %v8296_v1 }
 0x345   : > { %7413 = vmatprep.subr.bf16.mxu1 %v8296_v1 }
 0x348   : > { %7414 = vmatpush3.bf16.msra.mxu1 %v7980_v53 }
 0x349   : > { %7425 = vmatprep.subr.bf16.mxu1 %v8296_v1 }
 0x34b   : > { %7416 = vmatmul.mubr.msk.bf16.vlgmr.msra.gmra.mxu1 %vm1760_vm3, %v1785_v50 }
 0x34c   : > { %7427 = vmatprep.mubr.msk.bf16.mxu1 %vm8297_vm0, %v8296_v1 }
 0x3fb   : > { %v1839_v54 = vpop.f32.mrf.mxu1 }
 0x3fc   : > { %v1840_v2 = vadd.f32 %v1839_v54, %v1789_v60 }
 0x3fd   : > { %v7401_v55 = vpop.f32.mrf.mxu1 }
 0x3fe   : > { %v1981_v10 = vmul.f32 %v8635_v4, %v1840_v2  ;;  %v1982_v11 = vmul.f32 %v8638_v5, %v1840_v2  ;;  %v1983_v23 = vmul.f32 %v8649_v17, %v1840_v2  ;;  %v1984_v24 = vmul.f32 %v8652_v18, %v1840_v2 }
 0x3ff   : > { %v1842_v57 = vpop.f32.mrf.mxu1 }
 0x400   : > { %v1989_v15 = vpack.c.bf16 %v1981_v10, %v1981_v10  ;;  %v1990_v16 = vpack.c.bf16 %v1982_v11, %v1982_v11  ;;  %v1991_v28 = vpack.c.bf16 %v1983_v23, %v1983_v23  ;;  %v1992_v29 = vpack.c.bf16 %v1984_v24, %v1984_v24 }
 0x401   : > { %v7402_v59 = vpop.f32.mrf.mxu1 }
 0x403   : > { %v1895_v61 = vpop.f32.mrf.mxu1 }
 0x404   : > { %v1896_v62 = vadd.f32 %v1895_v61, %v1848_v58 }
 0x405   : > { %v7409_v0 = vpop.f32.mrf.mxu1 }
 0x406   : > { %v1993_v3 = vpack.c.bf16 %v1896_v62, %v1896_v62 }
 0x407   : > { %v1898_v6 = vpop.f32.mrf.mxu1 }
 0x408   : > { %v1998_v7 = vsel %vm1760_vm3, %v1993_v3, 0 }
 0x409   : > { %v7410_v9 = vpop.f32.mrf.mxu1  ;;  %7420 = vmatpush3.bf16.xpose.msra.mxu0 %v1998_v7  ;;  %7426 = vmatpush3.bf16.xpose.msra.mxu1 %v1998_v7 }
 0x40a   : > { %7431 = vmatprep.subr.bf16.mxu0 %v8296_v1  ;;  %7437 = vmatprep.subr.bf16.mxu1 %v8296_v1 }
 0x40b   : > { %v1951_v12 = vpop.f32.mrf.mxu1 }
 0x40c   : > { %v8646_v13 = vadd.f32 %v1951_v12, %v1904_v8 }
 0x40d   : > { %v7417_v14 = vpop.f32.mrf.mxu1 }
 0x40e   : > { %v1985_v20 = vmul.f32 %v8635_v4, %v8646_v13  ;;  %v1986_v21 = vmul.f32 %v8638_v5, %v8646_v13 }
 0x40f   : > { %v1954_v19 = vpop.f32.mrf.mxu1 }
 0x410   : > { %7422 = vmatmul.mubr.msk.bf16.vlgmr.msra.gmra.mxu0 %vm1760_vm3, %v1989_v15  ;;  %7428 = vmatmul.mubr.msk.bf16.vlgmr.msra.gmra.mxu1 %vm1760_vm3, %v1990_v16  ;;  %v2232_v26 = vpack.c.bf16 %v1985_v20, %v1985_v20  ;;  %v2233_v27 = vpack.c.bf16 %v1986_v21, %v1986_v21 }
 0x411   : > { %v7418_v22 = vpop.f32.mrf.mxu1  ;;  %7432 = vmatpush3.bf16.xpose.msra.mxu0 %v1998_v7  ;;  %7438 = vmatpush3.bf16.xpose.msra.mxu1 %v1998_v7 }
 0x412   : > { %7433 = vmatprep.mubr.msk.bf16.mxu0 %vm8297_vm0, %v8296_v1  ;;  %7439 = vmatprep.mubr.msk.bf16.mxu1 %vm8297_vm0, %v8296_v1  ;;  %v2241_v30 = vsel %vm2239_vm4, %v2232_v26, 0  ;;  %v2287_v31 = vsel %vm2239_vm4, %v2233_v27, 0 }
 0x413   : > { %7443 = vmatprep.subr.bf16.mxu0 %v8296_v1  ;;  %7449 = vmatprep.subr.bf16.mxu1 %v8296_v1 }
 0x418   : > { %7434 = vmatmul.mubr.msk.bf16.vlgmr.msra.gmra.mxu0 %vm1760_vm3, %v1991_v28  ;;  %7440 = vmatmul.mubr.msk.bf16.vlgmr.msra.gmra.mxu1 %vm1760_vm3, %v1992_v29 }
 0x419   : > { %7444 = vmatpush3.bf16.msra.mxu0 %v2241_v30  ;;  %7450 = vmatpush3.bf16.msra.mxu1 %v2287_v31 }
 0x41a   : > { %7445 = vmatprep.mubr.msk.bf16.mxu0 %vm8297_vm0, %v8296_v1  ;;  %7455 = vmatprep.subr.bf16.mxu0 %v8296_v1 }
 0x41b   : > { %7451 = vmatprep.mubr.msk.bf16.mxu1 %vm8297_vm0, %v8296_v1  ;;  %7461 = vmatprep.subr.bf16.mxu1 %v8296_v1 }
 0x4d0   : > { %v2034_v32 = vpop.f32.mrf.mxu0  ;;  %v2077_v33 = vpop.f32.mrf.mxu1 }
 0x4d1   : > { %v2169_v35 = vmul.f32 0.35355338, %v2034_v32  ;;  %v2170_v36 = vmul.f32 0.35355338, %v2077_v33  ;;  %v1987_v32 = vmul.f32 %v8649_v17, %v8646_v13 }
 0x4d2   : > { %v7423_v37 = vpop.f32.mrf.mxu0  ;;  %v7429_v38 = vpop.f32.mrf.mxu1 }
 0x4d3   : > { %v2179_v43 = vadd.f32 %v8679_v34, %v2169_v35  ;;  %v2180_v47 = vadd.f32 %v8679_v34, %v2170_v36  ;;  %v2234_v37 = vpack.c.bf16 %v1987_v32, %v1987_v32  ;;  %v1988_v38 = vmul.f32 %v8652_v18, %v8646_v13 }
 0x4d4   : > { %v2037_v44 = vpop.f32.mrf.mxu0  ;;  %v2080_v45 = vpop.f32.mrf.mxu1 }
 0x4d5   : > { %v2184_v46 = vsel %vm2183_vm5, %v2179_v43, -inf  ;;  %v2187_v54 = vsel %vm2183_vm5, %v2180_v47, -inf  ;;  %v2333_v45 = vsel %vm2239_vm4, %v2234_v37, 0 }
 0x4d6   : > { %v7430_v48 = vpop.f32.mrf.mxu1  ;;  %2185 = vmax.xlane.f32.xlu1 %v2184_v46  ;;  %v7424_v49 = vpop.f32.mrf.mxu0 }
 0x4d8   : > { %v2120_v50 = vpop.f32.mrf.mxu0  ;;  %v2163_v51 = vpop.f32.mrf.mxu1 }
 0x4d9   : > { %v2171_v52 = vmul.f32 0.35355338, %v2120_v50  ;;  %v2172_v53 = vmul.f32 0.35355338, %v2163_v51 }
 0x4da   : > { %v7441_v55 = vpop.f32.mrf.mxu1  ;;  %2188 = vmax.xlane.f32.xlu1 %v2187_v54  ;;  %v7435_v56 = vpop.f32.mrf.mxu0 }
 0x4db   : > { %v2181_v57 = vadd.f32 %v8679_v34, %v2171_v52  ;;  %v2182_v61 = vadd.f32 %v8679_v34, %v2172_v53  ;;  %v7981_v55 = vld [vmem:[%s9518_s11 + $0x8] sm:$0xff]   ;;  %v7982_v56 = vld [vmem:[%s9518_s11] sm:$0xff]  }
 0x4dc   : > { %v2123_v58 = vpop.f32.mrf.mxu0  ;;  %v2166_v59 = vpop.f32.mrf.mxu1 }
 0x4dd   : > { %v2190_v60 = vsel %vm2183_vm5, %v2181_v57, -inf  ;;  %v2193_v2 = vsel %vm2183_vm5, %v2182_v61, -inf }
 0x4de   : > { %v7442_v62 = vpop.f32.mrf.mxu1  ;;  %2191 = vmax.xlane.f32.xlu1 %v2190_v60  ;;  %v7436_v0 = vpop.f32.mrf.mxu0 }
 0x4e2   : > { %2194 = vmax.xlane.f32.xlu1 %v2193_v2 }
 0x55f   : > { %v2186_v3 = vpop.xlane.xlu1 %2185 }
 0x560   : > { %v2196_v6 = vsub.f32 %v2179_v43, %v2186_v3 }
 0x562   : > { %v2200_v7 = vmul.f32 1.442695, %v2196_v6 }
 0x563   : > { %v2189_v8 = vpop.xlane.xlu1 %2188 }
 0x564   : > { %8053 = vpow2.f32 %v2200_v7  ;;  %v2197_v9 = vsub.f32 %v2180_v47, %v2189_v8  ;;  %v2235_v47 = vpack.c.bf16 %v1988_v38, %v1988_v38 }
 0x566   : > { %v2202_v10 = vmul.f32 1.442695, %v2197_v9  ;;  %v2379_v13 = vsel %vm2239_vm4, %v2235_v47, 0 }
 0x567   : > { %v2192_v11 = vpop.xlane.xlu1 %2191 }
 0x568   : > { %8055 = vpow2.f32 %v2202_v10  ;;  %v2198_v12 = vsub.f32 %v2181_v57, %v2192_v11 }
 0x56a   : > { %v2204_v14 = vmul.f32 1.442695, %v2198_v12 }
 0x56b   : > { %v2195_v15 = vpop.xlane.xlu1 %2194 }
 0x56c   : > { %8057 = vpow2.f32 %v2204_v14  ;;  %v2199_v16 = vsub.f32 %v2182_v61, %v2195_v15 }
 0x56e   : > { %v2206_v19 = vmul.f32 1.442695, %v2199_v16 }
 0x570   : > { %8059 = vpow2.f32 %v2206_v19 }
 0x571   : > { %v8054_v20 = vpop.eup %8053 }
 0x572   : > { %v2208_v21 = vsel %vm2183_vm5, %v8054_v20, 0.0 }
 0x573   : > { %2209 = vadd.xlane.f32.xlu1 %v2208_v21 }
 0x575   : > { %v8056_v22 = vpop.eup %8055 }
 0x576   : > { %v2211_v23 = vsel %vm2183_vm5, %v8056_v22, 0.0 }
 0x577   : > { %2212 = vadd.xlane.f32.xlu1 %v2211_v23 }
 0x579   : > { %v8058_v24 = vpop.eup %8057 }
 0x57a   : > { %v2214_v26 = vsel %vm2183_vm5, %v8058_v24, 0.0 }
 0x57b   : > { %2215 = vadd.xlane.f32.xlu1 %v2214_v26 }
 0x57d   : > { %v8060_v27 = vpop.eup %8059 }
 0x57e   : > { %v2217_v28 = vsel %vm2183_vm5, %v8060_v27, 0.0 }
 0x57f   : > { %2218 = vadd.xlane.f32.xlu1 %v2217_v28 }
 0x5fc   : > { %v2210_v29 = vpop.xlane.xlu1 %2209 }
 0x5fd   : > { %8061 = vrcp.f32 %v2210_v29 }
 0x600   : > { %v2213_v30 = vpop.xlane.xlu1 %2212 }
 0x601   : > { %8063 = vrcp.f32 %v2213_v30 }
 0x604   : > { %v2216_v31 = vpop.xlane.xlu1 %2215 }
 0x605   : > { %8065 = vrcp.f32 %v2216_v31 }
 0x608   : > { %v2219_v33 = vpop.xlane.xlu1 %2218 }
 0x609   : > { %8067 = vrcp.f32 %v2219_v33 }
 0x60a   : > { %v8062_v35 = vpop.eup %8061 }
 0x60b   : > { %v2221_v36 = vmul.f32 %v8062_v35, %v8054_v20  ;;  %v6907_v20 = vld [vmem:[%s9519_s15] ss:$0 sm:$0xff]  ;;  %v7983_v35 = vld [vmem:[%s9520_s16 + $0x8] sm:$0xff]  }
 0x60d   : > { %v2228_v43 = vpack.c.bf16 %v2221_v36, %v2221_v36 }
 0x60e   : > { %v8064_v44 = vpop.eup %8063 }
 0x60f   : > { %7446 = vmatmul.mubr.msk.bf16.vlgmr.msra.gmra.mxu0 %vm2183_vm5, %v2228_v43  ;;  %v2223_v46 = vmul.f32 %v8064_v44, %v8056_v22  ;;  %v8733_v43 = vsub.s32 3, %v8596_v39  ;;  %v2504_v44 = vrot.slane %v8602_v41, %v8632_v63  ;;  %v7985_v39 = vld [vmem:[%s9521_s18 + $0x38] sm:$0xff]  }
 0x610   : > { %7456 = vmatpush3.bf16.msra.mxu0 %v2333_v45  ;;  %7457 = vmatprep.mubr.msk.bf16.mxu0 %vm8297_vm0, %v8296_v1 }
 0x611   : > { %v2229_v48 = vpack.c.bf16 %v2223_v46, %v2223_v46  ;;  %7467 = vmatprep.subr.bf16.mxu0 %v8296_v1  ;;  %v2509_v47 = vrot.slane %v8602_v41, %v8733_v43  ;;  %v7987_v41 = vld [vmem:[%s9521_s18 + $0x28] sm:$0xff]  }
 0x612   : > { %v8066_v49 = vpop.eup %8065 }
 0x613   : > { %7452 = vmatmul.mubr.msk.bf16.vlgmr.msra.gmra.mxu1 %vm2183_vm5, %v2229_v48  ;;  %v2225_v50 = vmul.f32 %v8066_v49, %v8058_v24 }
 0x614   : > { %7462 = vmatpush3.bf16.msra.mxu1 %v2379_v13  ;;  %7463 = vmatprep.mubr.msk.bf16.mxu1 %vm8297_vm0, %v8296_v1 }
 0x615   : > { %v2230_v51 = vpack.c.bf16 %v2225_v50, %v2225_v50  ;;  %7475 = vmatprep.subr.bf16.mxu1 %v8296_v1  ;;  %v7986_v50 = vld [vmem:[%s9521_s18 + $0x30] sm:$0xff]  }
 0x616   : > { %v8068_v52 = vpop.eup %8067 }
 0x617   : > { %7458 = vmatmul.mubr.msk.bf16.vlgmr.msra.gmra.mxu0 %vm2183_vm5, %v2230_v51  ;;  %v2227_v53 = vmul.f32 %v8068_v52, %v8060_v27  ;;  %v7988_v51 = vld [vmem:[%s9521_s18 + $0x20] sm:$0xff]   ;;  %v7989_v52 = vld [vmem:[%s9521_s18 + $0x18] sm:$0xff]  }
 0x618   : > { %7471 = vmatprep.mubr.msk.bf16.mxu0 %vm8297_vm0, %v8296_v1  ;;  %7468 = vmatpush3.bf16.msra.mxu0 %v7981_v55  ;;  %v7992_v55 = vld [vmem:[%s9521_s18] sm:$0xff]  }
 0x619   : > { %v2231_v54 = vpack.c.bf16 %v2227_v53, %v2227_v53  ;;  %7469 = vmatprep.subr.bf16.mxu0 %v8296_v1  ;;  %v7990_v53 = vld [vmem:[%s9521_s18 + $0x10] sm:$0xff]  }
 0x61b   : > { %7464 = vmatmul.mubr.msk.bf16.vlgmr.msra.gmra.mxu1 %vm2183_vm5, %v2231_v54  ;;  %v7991_v54 = vld [vmem:[%s9521_s18 + $0x8] sm:$0xff]  }
 0x61c   : > { %7479 = vmatprep.mubr.msk.bf16.mxu1 %vm8297_vm0, %v8296_v1  ;;  %7470 = vmatpush3.bf16.msra.mxu0 %v7982_v56  ;;  %v6908_v56 = vld [vmem:[%s9522_s22] ss:$0 sm:$0xff] }
 0x61d   : > { %7483 = vmatprep.subr.bf16.mxu0 %v8296_v1  ;;  %7476 = vmatpush3.bf16.msra.mxu1 %v7983_v35  ;;  %v8774_v35 = vld [vmem:[%s8382_s20 + $0x4] sm:$0xf] }
 0x61e   : > { %7477 = vmatprep.subr.bf16.mxu1 %v8296_v1 }
 0x6cf   : > { %v2277_v57 = vpop.f32.mrf.mxu0 }
 0x6d1   : > { %v7447_v58 = vpop.f32.mrf.mxu0 }
 0x6d3   : > { %v2280_v59 = vpop.f32.mrf.mxu0  ;;  %v2323_v60 = vpop.f32.mrf.mxu1 }
 0x6d4   : > { %v2421_v3 = vadd.f32 %v2323_v60, %v2277_v57 }
 0x6d5   : > { %v7448_v61 = vpop.f32.mrf.mxu0  ;;  %v7453_v62 = vpop.f32.mrf.mxu1 }
 0x6d7   : > { %v2326_v0 = vpop.f32.mrf.mxu1  ;;  %v2369_v2 = vpop.f32.mrf.mxu0 }
 0x6d8   : > { %v2422_v8 = vadd.f32 %v2421_v3, %v2369_v2 }
 0x6d9   : > { %v7454_v6 = vpop.f32.mrf.mxu1  ;;  %v7459_v7 = vpop.f32.mrf.mxu0 }
 0x6db   : > { %v2372_v9 = vpop.f32.mrf.mxu0  ;;  %v2415_v10 = vpop.f32.mrf.mxu1 }
 0x6dc   : > { %v2423_v11 = vadd.f32 %v2422_v8, %v2415_v10 }
 0x6dd   : > { %v7460_v12 = vpop.f32.mrf.mxu0  ;;  %v7465_v14 = vpop.f32.mrf.mxu1 }
 0x6de   : > { %v2424_v15 = vpack.c.bf16 %v2423_v11, %v2423_v11  ;;  %v6920_v12 = vld [vmem:[%s9523_s23] ss:$0 sm:$0xff] }
 0x6df   : > { %v2418_v16 = vpop.f32.mrf.mxu1 }
 0x6e0   : > { %7472 = vmatmul.mubr.msk.bf16.vlgmr.msra.gmra.mxu0 %vm1760_vm3, %v2424_v15 }
 0x6e1   : > { %v7466_v19 = vpop.f32.mrf.mxu1  ;;  %7499 = vmatprep.mubr.msk.bf16.mxu0 %vm8297_vm0, %v8296_v1  ;;  %7484 = vmatpush3.bf16.msra.mxu0 %v7985_v39 }
 0x6e2   : > { %7485 = vmatprep.subr.bf16.mxu0 %v8296_v1 }
 0x6e5   : > { %7486 = vmatpush3.bf16.msra.mxu0 %v7986_v50 }
 0x6e6   : > { %7487 = vmatprep.subr.bf16.mxu0 %v8296_v1 }
 0x6e9   : > { %7488 = vmatpush3.bf16.msra.mxu0 %v7987_v41  ;;  %v6934_v41 = vld [vmem:[%s8402_s21 + $0x4] sm:$0x7] }
 0x6ea   : > { %7489 = vmatprep.subr.bf16.mxu0 %v8296_v1 }
 0x6ed   : > { %7490 = vmatpush3.bf16.msra.mxu0 %v7988_v51 }
 0x6ee   : > { %7491 = vmatprep.subr.bf16.mxu0 %v8296_v1 }
 0x6f1   : > { %7492 = vmatpush3.bf16.msra.mxu0 %v7989_v52  ;;  %v2817_v52 = vrot.slane %v6934_v41, %v8605_v42 }
 0x6f2   : > { %7493 = vmatprep.subr.bf16.mxu0 %v8296_v1 }
 0x6f5   : > { %7494 = vmatpush3.bf16.msra.mxu0 %v7990_v53 }
 0x6f6   : > { %7495 = vmatprep.subr.bf16.mxu0 %v8296_v1 }
 0x6f9   : > { %7496 = vmatpush3.bf16.msra.mxu0 %v7991_v54  ;;  %v2758_v54 = vrot.slane %v6934_v41, %v8599_v40 }
 0x6fa   : > { %7497 = vmatprep.subr.bf16.mxu0 %v8296_v1 }
 0x6fd   : > { %7498 = vmatpush3.bf16.msra.mxu0 %v7992_v55 }
 0x6fe   : > { %7533 = vmatprep.subr.bf16.mxu0 %v8296_v1 }
 0x7a0   : > { %v2474_v21 = vpop.f32.mrf.mxu0 }
 0x7a1   : > { %v2480_v22 = vadd.f32 %v2474_v21, %v8586_v25  ;;  %v7984_v25 = vld [vmem:[%s9520_s16] sm:$0xff]  }
 0x7a2   : > { %v7473_v23 = vpop.f32.mrf.mxu0  ;;  %7478 = vmatpush3.bf16.msra.mxu1 %v7984_v25  ;;  %v2747_v25 = vrot.slane %v8774_v35, %v8599_v40 }
 0x7a3   : > { %v8722_v24 = vadd.f32 %v6907_v20, %v2480_v22  ;;  %7503 = vmatprep.subr.bf16.mxu1 %v8296_v1 }
 0x7a4   : > { %v2477_v26 = vpop.f32.mrf.mxu0 }
 0x7a5   : > { %v2488_v27 = vsel %vm1760_vm3, %v8722_v24, 0.0 }
 0x7a6   : > { %2489 = vadd.xlane.f32.xlu0 %v2488_v27  ;;  %v7474_v28 = vpop.f32.mrf.mxu0 }
 0x82f   : > { %v2490_v29 = vpop.xlane.xlu0 %2489 }
 0x830   : > { %v2491_v30 = vmul.f32 0.03125, %v2490_v29 }
 0x832   : > { %v2492_v31 = vsub.f32 %v8722_v24, %v2491_v30  ;;  %v7993_v30 = vld [vmem:[%s8387_s27 + $0x18] sm:$0xff]  }
 0x834   : > { %v2493_v32 = vmul.f32 %v2492_v31, %v2492_v31 }
 0x836   : > { %v2494_v33 = vsel %vm1760_vm3, %v2493_v32, 0.0 }
 0x837   : > { %2495 = vadd.xlane.f32.xlu1 %v2494_v33 }
 0x8c0   : > { %v2496_v36 = vpop.xlane.xlu1 %2495 }
 0x8c1   : > { %v2497_v37 = vmul.f32 0.03125, %v2496_v36 }
 0x8c3   : > { %v2498_v38 = vadd.f32 1e-05, %v2497_v37 }
 0x8c5   : > { %8069 = vrsqrt.f32 %v2498_v38  ;;  %v2752_v38 = vrot.slane %v8774_v35, %v8605_v42 }
 0x8d2   : > { %v8070_v45 = vpop.eup %8069 }
 0x8d3   : > { %v2500_v46 = vmul.f32 %v8070_v45, %v2492_v31 }
 0x8d5   : > { %v2505_v48 = vmul.f32 %v2504_v44, %v2500_v46  ;;  %v7995_v46 = vld [vmem:[%s9513_s4 + $0x18] sm:$0xff]  }
 0x8d7   : > { %v2510_v49 = vadd.f32 %v2509_v47, %v2505_v48  ;;  %v7996_v48 = vld [vmem:[%s9513_s4 + $0x10] sm:$0xff]   ;;  %s9529_s4 = sld [smem:[#allocation4_spill]] }
 0x8d9   : > { %v2511_v13 = vpack.c.bf16 %v2510_v49, %v2510_v49  ;;  %v7997_v49 = vld [vmem:[%s8397_s25 + $0x18] sm:$0xff]  }
 0x8db   : > { %7480 = vmatmul.mubr.msk.bf16.vlgmr.msra.gmra.mxu1 %vm1760_vm3, %v2511_v13  ;;  %v7998_v13 = vld [vmem:[%s8397_s25 + $0x10] sm:$0xff]  }
 0x8dc   : > { %7507 = vmatprep.mubr.msk.bf16.mxu1 %vm8297_vm0, %v8296_v1  ;;  %7504 = vmatpush3.bf16.msra.mxu1 %v7993_v30 }
 0x8dd   : > { %7505 = vmatprep.subr.bf16.mxu1 %v8296_v1  ;;  %s1517_s5 = scalar_lea.vmem %s9529_s4, %s8910_s2  ;;  %s9533_s4 = sld [smem:[#allocation29_spill]] }
 0x99b   : > { %v2567_v57 = vpop.f32.mrf.mxu1 }
 0x99c   : > { %v2568_v58 = vadd.f32 %v6908_v56, %v2567_v57 }
 0x99d   : > { %v7481_v59 = vpop.f32.mrf.mxu1 }
 0x99e   : > { %v2573_v60 = vmul.f32 %v2568_v58, %v2568_v58 }
 0x99f   : > { %v2570_v61 = vpop.f32.mrf.mxu1 }
 0x9a0   : > { %v2574_v62 = vmul.f32 %v2573_v60, %v2568_v58 }
 0x9a1   : > { %v7482_v0 = vpop.f32.mrf.mxu1 }
 0x9a2   : > { %v2575_v2 = vmul.f32 0.044715, %v2574_v62  ;;  %v2873_v62 = vrot.slane %v6934_v41, %v8632_v63 }
 0x9a4   : > { %v2576_v3 = vadd.f32 %v2575_v2, %v2568_v58 }
 0x9a6   : > { %v2577_v6 = vmul.f32 0.7978846, %v2576_v3 }
 0x9a8   : > { %8071 = vtanh.f32 %v2577_v6 }
 0x9b5   : > { %v8072_v7 = vpop.eup %8071 }
 0x9b6   : > { %v2579_v8 = vadd.f32 1.0, %v8072_v7 }
 0x9b8   : > { %v2580_v9 = vmul.f32 0.5, %v2579_v8 }
 0x9ba   : > { %v2581_v10 = vmul.f32 %v2580_v9, %v2568_v58 }
 0x9bc   : > { %v2582_v11 = vpack.c.bf16 %v2581_v10, %v2581_v10 }
 0x9be   : > { %7500 = vmatmul.mubr.bf16.vlgmr.msra.gmra.mxu0 %v2582_v11 }
 0x9bf   : > { %7535 = vmatprep.mubr.msk.bf16.mxu0 %vm8297_vm0, %v8296_v1 }
 0xa7e   : > { %v2665_v14 = vpop.f32.mrf.mxu0 }
 0xa7f   : > { %v2671_v15 = vadd.f32 %v2665_v14, %v8722_v24  ;;  %v7994_v24 = vld [vmem:[%s8387_s27 + $0x10] sm:$0xff]  }
 0xa80   : > { %v7501_v16 = vpop.f32.mrf.mxu0  ;;  %7506 = vmatpush3.bf16.msra.mxu1 %v7994_v24 }
 0xa81   : > { %v8763_v19 = vadd.f32 %v6920_v12, %v2671_v15  ;;  %7511 = vmatprep.subr.bf16.mxu1 %v8296_v1 }
 0xa82   : > { %v2668_v20 = vpop.f32.mrf.mxu0 }
 0xa83   : > { %v2731_v21 = vsel %vm1760_vm3, %v8763_v19, 0.0 }
 0xa84   : > { %2732 = vadd.xlane.f32.xlu0 %v2731_v21  ;;  %v7502_v22 = vpop.f32.mrf.mxu0 }
 0xb0d   : > { %v2733_v23 = vpop.xlane.xlu0 %2732 }
 0xb0e   : > { %v2734_v26 = vmul.f32 0.03125, %v2733_v23 }
 0xb10   : > { %v2735_v27 = vsub.f32 %v8763_v19, %v2734_v26 }
 0xb12   : > { %v2736_v28 = vmul.f32 %v2735_v27, %v2735_v27 }
 0xb14   : > { %v2737_v29 = vsel %vm1760_vm3, %v2736_v28, 0.0 }
 0xb15   : > { %2738 = vadd.xlane.f32.xlu1 %v2737_v29 }
 0xb9e   : > { %v2739_v31 = vpop.xlane.xlu1 %2738 }
 0xb9f   : > { %v2740_v32 = vmul.f32 0.03125, %v2739_v31 }
 0xba1   : > { %v2741_v33 = vadd.f32 1e-05, %v2740_v32 }
 0xba3   : > { %8073 = vrsqrt.f32 %v2741_v33 }
 0xbb0   : > { %v8074_v36 = vpop.eup %8073 }
 0xbb1   : > { %v2743_v37 = vmul.f32 %v8074_v36, %v2735_v27 }
 0xbb3   : > { %v2748_v44 = vmul.f32 %v2747_v25, %v2743_v37 }
 0xbb5   : > { %v2753_v45 = vadd.f32 %v2752_v38, %v2748_v44 }
 0xbb7   : > { %v2754_v47 = vpack.c.bf16 %v2753_v45, %v2753_v45 }
 0xbb9   : > { %7508 = vmatmul.mubr.msk.bf16.vlgmr.msra.gmra.mxu1 %vm1760_vm3, %v2754_v47 }
 0xbba   : > { %7512 = vmatpush3.bf16.msra.mxu1 %v7995_v46  ;;  %7515 = vmatprep.mubr.msk.bf16.mxu1 %vm8297_vm0, %v8296_v1 }
 0xbbb   : > { %7513 = vmatprep.subr.bf16.mxu1 %v8296_v1 }
 0xbbe   : > { %7514 = vmatpush3.bf16.msra.mxu1 %v7996_v48 }
 0xbbf   : > { %7519 = vmatprep.subr.bf16.mxu1 %v8296_v1 }
 0xbc1   : > { %7516 = vmatmul.mubr.msk.bf16.vlgmr.msra.gmra.mxu1 %vm1760_vm3, %v2754_v47 }
 0xbc2   : > { %7520 = vmatpush3.bf16.msra.mxu1 %v7997_v49  ;;  %7523 = vmatprep.mubr.msk.bf16.mxu1 %vm8297_vm0, %v8296_v1 }
 0xbc3   : > { %7521 = vmatprep.subr.bf16.mxu1 %v8296_v1 }
 0xbc6   : > { %7522 = vmatpush3.bf16.msra.mxu1 %v7998_v13 }
 0xbc7   : > { %7527 = vmatprep.subr.bf16.mxu1 %v8296_v1 }
 0xbc9   : > { %7524 = vmatmul.mubr.msk.bf16.vlgmr.msra.gmra.mxu1 %vm1760_vm3, %v2754_v47 }
 0xbca   : > { %7529 = vmatprep.mubr.msk.bf16.mxu1 %vm8297_vm0, %v8296_v1 }
 0xc79   : > { %v2808_v39 = vpop.f32.mrf.mxu1 }
 0xc7a   : > { %v2809_v58 = vadd.f32 %v2808_v39, %v2758_v54 }
 0xc7b   : > { %v7509_v50 = vpop.f32.mrf.mxu1 }
 0xc7c   : > { %v2926_v2 = vmul.f32 %v8635_v4, %v2809_v58  ;;  %v2927_v3 = vmul.f32 %v8638_v5, %v2809_v58  ;;  %v2928_v16 = vmul.f32 %v8649_v17, %v2809_v58  ;;  %v2929_v20 = vmul.f32 %v8652_v18, %v2809_v58 }
 0xc7d   : > { %v2811_v51 = vpop.f32.mrf.mxu1 }
 0xc7e   : > { %v2934_v9 = vpack.c.bf16 %v2926_v2, %v2926_v2  ;;  %v2935_v10 = vpack.c.bf16 %v2927_v3, %v2927_v3  ;;  %v2937_v22 = vpack.c.bf16 %v2929_v20, %v2929_v20 }
 0xc7f   : > { %v7510_v53 = vpop.f32.mrf.mxu1 }
 0xc81   : > { %v2864_v55 = vpop.f32.mrf.mxu1 }
 0xc82   : > { %v2865_v56 = vadd.f32 %v2864_v55, %v2817_v52 }
 0xc83   : > { %v7517_v57 = vpop.f32.mrf.mxu1 }
 0xc84   : > { %v2938_v59 = vpack.c.bf16 %v2865_v56, %v2865_v56 }
 0xc85   : > { %v2867_v60 = vpop.f32.mrf.mxu1 }
 0xc86   : > { %v2943_v61 = vsel %vm1760_vm3, %v2938_v59, 0 }
 0xc87   : > { %v7518_v0 = vpop.f32.mrf.mxu1  ;;  %7528 = vmatpush3.bf16.xpose.msra.mxu1 %v2943_v61  ;;  %7534 = vmatpush3.bf16.xpose.msra.mxu0 %v2943_v61 }
 0xc88   : > { %7539 = vmatprep.subr.bf16.mxu1 %v8296_v1  ;;  %7545 = vmatprep.subr.bf16.mxu0 %v8296_v1 }
 0xc89   : > { %v2920_v6 = vpop.f32.mrf.mxu1 }
 0xc8a   : > { %v8806_v7 = vadd.f32 %v2920_v6, %v2873_v62 }
 0xc8b   : > { %v7525_v8 = vpop.f32.mrf.mxu1 }
 0xc8c   : > { %v2930_v12 = vmul.f32 %v8635_v4, %v8806_v7  ;;  %v2931_v14 = vmul.f32 %v8638_v5, %v8806_v7  ;;  %v2936_v5 = vpack.c.bf16 %v2928_v16, %v2928_v16 }
 0xc8d   : > { %v2923_v11 = vpop.f32.mrf.mxu1 }
 0xc8e   : > { %7530 = vmatmul.mubr.msk.bf16.vlgmr.msra.gmra.mxu1 %vm1760_vm3, %v2934_v9  ;;  %7536 = vmatmul.mubr.msk.bf16.vlgmr.msra.gmra.mxu0 %vm1760_vm3, %v2935_v10  ;;  %v3170_v4 = vpack.c.bf16 %v2930_v12, %v2930_v12  ;;  %v3171_v21 = vpack.c.bf16 %v2931_v14, %v2931_v14 }
 0xc8f   : > { %v7526_v15 = vpop.f32.mrf.mxu1  ;;  %7540 = vmatpush3.bf16.xpose.msra.mxu1 %v2943_v61  ;;  %7546 = vmatpush3.bf16.xpose.msra.mxu0 %v2943_v61 }
 0xc90   : > { %7541 = vmatprep.mubr.msk.bf16.mxu1 %vm8297_vm0, %v8296_v1  ;;  %7547 = vmatprep.mubr.msk.bf16.mxu0 %vm8297_vm0, %v8296_v1  ;;  %v3178_v23 = vsel %vm2239_vm4, %v3170_v4, 0  ;;  %v3224_v26 = vsel %vm2239_vm4, %v3171_v21, 0 }
 0xc91   : > { %7551 = vmatprep.subr.bf16.mxu1 %v8296_v1  ;;  %7557 = vmatprep.subr.bf16.mxu0 %v8296_v1 }
 0xc96   : > { %7542 = vmatmul.mubr.msk.bf16.vlgmr.msra.gmra.mxu1 %vm1760_vm3, %v2936_v5  ;;  %7548 = vmatmul.mubr.msk.bf16.vlgmr.msra.gmra.mxu0 %vm1760_vm3, %v2937_v22 }
 0xc97   : > { %7552 = vmatpush3.bf16.msra.mxu1 %v3178_v23  ;;  %7558 = vmatpush3.bf16.msra.mxu0 %v3224_v26  ;;  %v2932_v23 = vmul.f32 %v8649_v17, %v8806_v7  ;;  %v2933_v26 = vmul.f32 %v8652_v18, %v8806_v7 }
 0xc98   : > { %7553 = vmatprep.mubr.msk.bf16.mxu1 %vm8297_vm0, %v8296_v1  ;;  %7559 = vmatprep.mubr.msk.bf16.mxu0 %vm8297_vm0, %v8296_v1 }
 0xc99   : > { %7563 = vmatprep.subr.bf16.mxu1 %v8296_v1  ;;  %7569 = vmatprep.subr.bf16.mxu0 %v8296_v1 }
 0xd4e   : > { %v2979_v27 = vpop.f32.mrf.mxu1  ;;  %v3022_v28 = vpop.f32.mrf.mxu0 }
 0xd4f   : > { %v3114_v29 = vmul.f32 0.35355338, %v2979_v27  ;;  %v3115_v30 = vmul.f32 0.35355338, %v3022_v28 }
 0xd50   : > { %v7531_v24 = vpop.f32.mrf.mxu1  ;;  %v7537_v31 = vpop.f32.mrf.mxu0 }
 0xd51   : > { %v3118_v32 = vadd.f32 %v8679_v34, %v3114_v29  ;;  %v3119_v33 = vadd.f32 %v8679_v34, %v3115_v30  ;;  %v3172_v30 = vpack.c.bf16 %v2932_v23, %v2932_v23  ;;  %v3173_v31 = vpack.c.bf16 %v2933_v26, %v2933_v26 }
 0xd52   : > { %v2982_v25 = vpop.f32.mrf.mxu1  ;;  %v3025_v36 = vpop.f32.mrf.mxu0  ;;  %v3441_v23 = vrot.slane %v8774_v35, %v8632_v63 }
 0xd53   : > { %v3122_v37 = vsel %vm2183_vm5, %v3118_v32, -inf  ;;  %v3125_v38 = vsel %vm2183_vm5, %v3119_v33, -inf  ;;  %v3270_v25 = vsel %vm2239_vm4, %v3172_v30, 0  ;;  %v3316_v17 = vsel %vm2239_vm4, %v3173_v31, 0  ;;  %v8003_v31 = vld [vmem:[%s9521_s18 + $0x78] sm:$0xff]  }
 0xd54   : > { %3123 = vmax.xlane.f32.xlu0 %v3122_v37  ;;  %v7532_v44 = vpop.f32.mrf.mxu1  ;;  %3126 = vmax.xlane.f32.xlu1 %v3125_v38  ;;  %v7538_v45 = vpop.f32.mrf.mxu0 }
 0xd55   : > { %v7999_v45 = vld [vmem:[%s9518_s11 + $0x18] sm:$0xff]  }
 0xd56   : > { %v3065_v46 = vpop.f32.mrf.mxu1  ;;  %v3108_v47 = vpop.f32.mrf.mxu0 }
 0xd57   : > { %v3116_v48 = vmul.f32 0.35355338, %v3065_v46  ;;  %v3117_v49 = vmul.f32 0.35355338, %v3108_v47  ;;  %v8000_v46 = vld [vmem:[%s9518_s11 + $0x10] sm:$0xff]   ;;  %s9542_s11 = sld [smem:[#allocation36_spill]] }
 0xd58   : > { %v7543_v13 = vpop.f32.mrf.mxu1  ;;  %v7549_v39 = vpop.f32.mrf.mxu0 }
 0xd59   : > { %v3120_v50 = vadd.f32 %v8679_v34, %v3116_v48  ;;  %v3121_v41 = vadd.f32 %v8679_v34, %v3117_v49 }
 0xd5a   : > { %v3068_v51 = vpop.f32.mrf.mxu1  ;;  %v3111_v52 = vpop.f32.mrf.mxu0 }
 0xd5b   : > { %v3128_v53 = vsel %vm2183_vm5, %v3120_v50, -inf  ;;  %v3131_v54 = vsel %vm2183_vm5, %v3121_v41, -inf }
 0xd5c   : > { %3129 = vmax.xlane.f32.xlu0 %v3128_v53  ;;  %v7544_v55 = vpop.f32.mrf.mxu1  ;;  %3132 = vmax.xlane.f32.xlu1 %v3131_v54  ;;  %v7550_v56 = vpop.f32.mrf.mxu0 }
 0xddd   : > { %v3124_v57 = vpop.xlane.xlu0 %3123  ;;  %v3127_v58 = vpop.xlane.xlu1 %3126 }
 0xdde   : > { %v3134_v59 = vsub.f32 %v3118_v32, %v3124_v57  ;;  %v3135_v60 = vsub.f32 %v3119_v33, %v3127_v58 }
 0xde0   : > { %v3138_v61 = vmul.f32 1.442695, %v3134_v59  ;;  %v3140_v62 = vmul.f32 1.442695, %v3135_v60 }
 0xde2   : > { %8075 = vpow2.f32 %v3138_v61 }
 0xde3   : > { %8077 = vpow2.f32 %v3140_v62 }
 0xde5   : > { %v3130_v0 = vpop.xlane.xlu0 %3129  ;;  %v3133_v34 = vpop.xlane.xlu1 %3132 }
 0xde6   : > { %v3136_v2 = vsub.f32 %v3120_v50, %v3130_v0  ;;  %v3137_v3 = vsub.f32 %v3121_v41, %v3133_v34  ;;  %v6982_v34 = vld [vmem:[%s9519_s15 + $0x1] ss:$0 sm:$0xff]  ;;  %s9544_s15 = sld [smem:[#allocation37_spill]] }
 0xde8   : > { %v3142_v6 = vmul.f32 1.442695, %v3136_v2  ;;  %v3144_v8 = vmul.f32 1.442695, %v3137_v3 }
 0xdea   : > { %8079 = vpow2.f32 %v3142_v6 }
 0xdeb   : > { %8081 = vpow2.f32 %v3144_v8 }
 0xdef   : > { %v8076_v9 = vpop.eup %8075 }
 0xdf0   : > { %v8078_v10 = vpop.eup %8077  ;;  %v3146_v11 = vsel %vm2183_vm5, %v8076_v9, 0.0 }
 0xdf1   : > { %3147 = vadd.xlane.f32.xlu0 %v3146_v11  ;;  %v3149_v12 = vsel %vm2183_vm5, %v8078_v10, 0.0 }
 0xdf2   : > { %3150 = vadd.xlane.f32.xlu1 %v3149_v12 }
 0xdf7   : > { %v8080_v14 = vpop.eup %8079 }
 0xdf8   : > { %v8082_v15 = vpop.eup %8081  ;;  %v3152_v16 = vsel %vm2183_vm5, %v8080_v14, 0.0 }
 0xdf9   : > { %3153 = vadd.xlane.f32.xlu0 %v3152_v16  ;;  %v3155_v20 = vsel %vm2183_vm5, %v8082_v15, 0.0 }
 0xdfa   : > { %3156 = vadd.xlane.f32.xlu1 %v3155_v20 }
 0xe7a   : > { %v3148_v4 = vpop.xlane.xlu0 %3147 }
 0xe7b   : > { %8083 = vrcp.f32 %v3148_v4  ;;  %v3151_v21 = vpop.xlane.xlu1 %3150  ;;  %v8001_v4 = vld [vmem:[%s9520_s16 + $0x18] sm:$0xff]  }
 0xe7c   : > { %8085 = vrcp.f32 %v3151_v21 }
 0xe82   : > { %v3154_v5 = vpop.xlane.xlu0 %3153 }
 0xe83   : > { %8087 = vrcp.f32 %v3154_v5  ;;  %v3157_v22 = vpop.xlane.xlu1 %3156 }
 0xe84   : > { %8089 = vrcp.f32 %v3157_v22 }
 0xe88   : > { %v8084_v27 = vpop.eup %8083 }
 0xe89   : > { %v8086_v28 = vpop.eup %8085  ;;  %v3159_v29 = vmul.f32 %v8084_v27, %v8076_v9 }
 0xe8a   : > { %v3161_v24 = vmul.f32 %v8086_v28, %v8078_v10  ;;  %v3446_v28 = vrot.slane %v8774_v35, %v8733_v43  ;;  %v8005_v35 = vld [vmem:[%s9521_s18 + $0x68] sm:$0xff]  }
 0xe8b   : > { %v3166_v32 = vpack.c.bf16 %v3159_v29, %v3159_v29 }
 0xe8c   : > { %v3167_v33 = vpack.c.bf16 %v3161_v24, %v3161_v24 }
 0xe8d   : > { %7554 = vmatmul.mubr.msk.bf16.vlgmr.msra.gmra.mxu1 %vm2183_vm5, %v3166_v32  ;;  %v8004_v32 = vld [vmem:[%s9521_s18 + $0x70] sm:$0xff]  }
 0xe8e   : > { %7560 = vmatmul.mubr.msk.bf16.vlgmr.msra.gmra.mxu0 %vm2183_vm5, %v3167_v33  ;;  %7564 = vmatpush3.bf16.msra.mxu1 %v3270_v25  ;;  %v8006_v33 = vld [vmem:[%s9521_s18 + $0x60] sm:$0xff]   ;;  %v8007_v25 = vld [vmem:[%s9521_s18 + $0x58] sm:$0xff]  }
 0xe8f   : > { %7570 = vmatpush3.bf16.msra.mxu0 %v3316_v17  ;;  %7565 = vmatprep.mubr.msk.bf16.mxu1 %vm8297_vm0, %v8296_v1  ;;  %v8008_v17 = vld [vmem:[%s9521_s18 + $0x50] sm:$0xff]  }
 0xe90   : > { %v8088_v18 = vpop.eup %8087  ;;  %7571 = vmatprep.mubr.msk.bf16.mxu0 %vm8297_vm0, %v8296_v1  ;;  %7575 = vmatprep.subr.bf16.mxu1 %v8296_v1 }
 0xe91   : > { %v8090_v7 = vpop.eup %8089  ;;  %v3163_v36 = vmul.f32 %v8088_v18, %v8080_v14  ;;  %7583 = vmatprep.subr.bf16.mxu0 %v8296_v1  ;;  %v8009_v18 = vld [vmem:[%s9521_s18 + $0x48] sm:$0xff]  }
 0xe92   : > { %v3165_v37 = vmul.f32 %v8090_v7, %v8082_v15  ;;  %v8010_v7 = vld [vmem:[%s9521_s18 + $0x40] sm:$0xff]  }
 0xe93   : > { %v3168_v38 = vpack.c.bf16 %v3163_v36, %v3163_v36  ;;  %v6983_v36 = vld [vmem:[%s9522_s22 + $0x1] ss:$0 sm:$0xff] }
 0xe94   : > { %v3169_v44 = vpack.c.bf16 %v3165_v37, %v3165_v37 }
 0xe95   : > { %7566 = vmatmul.mubr.msk.bf16.vlgmr.msra.gmra.mxu1 %vm2183_vm5, %v3168_v38 }
 0xe96   : > { %7572 = vmatmul.mubr.msk.bf16.vlgmr.msra.gmra.mxu0 %vm2183_vm5, %v3169_v44  ;;  %7579 = vmatprep.mubr.msk.bf16.mxu1 %vm8297_vm0, %v8296_v1 }
 0xe97   : > { %7587 = vmatprep.mubr.msk.bf16.mxu0 %vm8297_vm0, %v8296_v1  ;;  %7576 = vmatpush3.bf16.msra.mxu1 %v7999_v45 }
 0xe98   : > { %7577 = vmatprep.subr.bf16.mxu1 %v8296_v1  ;;  %7584 = vmatpush3.bf16.msra.mxu0 %v8001_v4 }
 0xe99   : > { %7585 = vmatprep.subr.bf16.mxu0 %v8296_v1 }
 0xe9b   : > { %7578 = vmatpush3.bf16.msra.mxu1 %v8000_v46 }
 0xe9c   : > { %7591 = vmatprep.subr.bf16.mxu1 %v8296_v1 }
 0xf4d   : > { %v3214_v47 = vpop.f32.mrf.mxu1 }
 0xf4e   : > { %v3260_v48 = vpop.f32.mrf.mxu0 }
 0xf4f   : > { %v7555_v49 = vpop.f32.mrf.mxu1  ;;  %v3358_v51 = vadd.f32 %v3260_v48, %v3214_v47 }
 0xf50   : > { %v7561_v13 = vpop.f32.mrf.mxu0 }
 0xf51   : > { %v3217_v39 = vpop.f32.mrf.mxu1 }
 0xf52   : > { %v3263_v50 = vpop.f32.mrf.mxu0 }
 0xf53   : > { %v7556_v41 = vpop.f32.mrf.mxu1 }
 0xf54   : > { %v7562_v52 = vpop.f32.mrf.mxu0 }
 0xf55   : > { %v3306_v53 = vpop.f32.mrf.mxu1 }
 0xf56   : > { %v3359_v54 = vadd.f32 %v3358_v51, %v3306_v53  ;;  %v3352_v55 = vpop.f32.mrf.mxu0 }
 0xf57   : > { %v7567_v56 = vpop.f32.mrf.mxu1 }
 0xf58   : > { %v3360_v57 = vadd.f32 %v3359_v54, %v3352_v55  ;;  %v7573_v58 = vpop.f32.mrf.mxu0  ;;  %v6995_v55 = vld [vmem:[%s9523_s23 + $0x1] ss:$0 sm:$0xff] }
 0xf59   : > { %v3309_v59 = vpop.f32.mrf.mxu1 }
 0xf5a   : > { %v3361_v60 = vpack.c.bf16 %v3360_v57, %v3360_v57  ;;  %v3355_v61 = vpop.f32.mrf.mxu0 }
 0xf5b   : > { %v7568_v62 = vpop.f32.mrf.mxu1 }
 0xf5c   : > { %v7574_v0 = vpop.f32.mrf.mxu0  ;;  %7580 = vmatmul.mubr.msk.bf16.vlgmr.msra.gmra.mxu1 %vm1760_vm3, %v3361_v60  ;;  %v3715_v62 = vld [vmem:[%s1522_s7] sm:$0xff] }
 0xf5d   : > { %7607 = vmatprep.mubr.msk.bf16.mxu1 %vm8297_vm0, %v8296_v1  ;;  %7592 = vmatpush3.bf16.msra.mxu1 %v8003_v31 }
 0xf5e   : > { %7593 = vmatprep.subr.bf16.mxu1 %v8296_v1 }
 0xf61   : > { %7594 = vmatpush3.bf16.msra.mxu1 %v8004_v32  ;;  %v3714_v32 = vld [vmem:[%s1517_s5 + $0x10] sm:$0xff] }
 0xf62   : > { %7595 = vmatprep.subr.bf16.mxu1 %v8296_v1 }
 0xf65   : > { %7596 = vmatpush3.bf16.msra.mxu1 %v8005_v35 }
 0xf66   : > { %7597 = vmatprep.subr.bf16.mxu1 %v8296_v1 }
 0xf69   : > { %7598 = vmatpush3.bf16.msra.mxu1 %v8006_v33 }
 0xf6a   : > { %7599 = vmatprep.subr.bf16.mxu1 %v8296_v1 }
 0xf6d   : > { %7600 = vmatpush3.bf16.msra.mxu1 %v8007_v25 }
 0xf6e   : > { %7601 = vmatprep.subr.bf16.mxu1 %v8296_v1 }
 0xf71   : > { %7602 = vmatpush3.bf16.msra.mxu1 %v8008_v17 }
 0xf72   : > { %7603 = vmatprep.subr.bf16.mxu1 %v8296_v1 }
 0xf75   : > { %7604 = vmatpush3.bf16.msra.mxu1 %v8009_v18 }
 0xf76   : > { %7605 = vmatprep.subr.bf16.mxu1 %v8296_v1 }
 0xf79   : > { %7606 = vmatpush3.bf16.msra.mxu1 %v8010_v7 }
0x101c   : > { %v3411_v2 = vpop.f32.mrf.mxu1 }
0x101d   : > { %v3417_v3 = vadd.f32 %v3411_v2, %v8763_v19  ;;  %v8002_v19 = vld [vmem:[%s9520_s16 + $0x10] sm:$0xff]  }
0x101e   : > { %v7581_v6 = vpop.f32.mrf.mxu1  ;;  %7586 = vmatpush3.bf16.msra.mxu0 %v8002_v19 }
0x101f   : > { %v8873_v8 = vadd.f32 %v6982_v34, %v3417_v3  ;;  %7611 = vmatprep.subr.bf16.mxu0 %v8296_v1 }
0x1020   : > { %v3414_v9 = vpop.f32.mrf.mxu1 }
0x1021   : > { %v3425_v10 = vsel %vm1760_vm3, %v8873_v8, 0.0  ;;  %v8012_v9 = vld [vmem:[%s9525_s0] sm:$0xff]  }
0x1022   : > { %3426 = vadd.xlane.f32.xlu0 %v3425_v10  ;;  %v7582_v11 = vpop.f32.mrf.mxu1 }
0x10ab   : > { %v3427_v12 = vpop.xlane.xlu0 %3426 }
0x10ac   : > { %v3428_v14 = vmul.f32 0.03125, %v3427_v12 }
0x10ae   : > { %v3429_v15 = vsub.f32 %v8873_v8, %v3428_v14 }
0x10b0   : > { %v3430_v16 = vmul.f32 %v3429_v15, %v3429_v15 }
0x10b2   : > { %v3431_v20 = vsel %vm1760_vm3, %v3430_v16, 0.0 }
0x10b3   : > { %3432 = vadd.xlane.f32.xlu1 %v3431_v20  ;;  %v6997_v20 = vld [vmem:[%s9527_s3] ss:$0 sm:$0xff]  ;;  %s9531_s3 = sld [smem:[#allocation26_spill]] }
0x10b9   : > { %v3832_v7 = vld [vmem:[%s9531_s3] sm:$0xff] }
0x113c   : > { %v3433_v21 = vpop.xlane.xlu1 %3432 }
0x113d   : > { %v3434_v5 = vmul.f32 0.03125, %v3433_v21 }
0x113f   : > { %v3435_v22 = vadd.f32 1e-05, %v3434_v5  ;;  %v3716_v5 = vld [vmem:[%s1522_s7 + $0x8] sm:$0xff] }
0x1141   : > { %8091 = vrsqrt.f32 %v3435_v22  ;;  %v3717_v22 = vld [vmem:[%s1522_s7 + $0x10] sm:$0xff]  ;;  %s9535_s7 = sld [smem:[#allocation27_spill]] }
0x114e   : > { %v8092_v26 = vpop.eup %8091 }
0x114f   : > { %v3437_v27 = vmul.f32 %v8092_v26, %v3429_v15  ;;  %v6996_v15 = vld [vmem:[%s9526_s10] ss:$0 sm:$0xff]  ;;  %s9536_s10 = sld [smem:[#allocation31_spill]] }
0x1151   : > { %v3442_v29 = vmul.f32 %v3441_v23, %v3437_v27  ;;  %v6998_v23 = vld [vmem:[%s9528_s26] ss:$0 sm:$0xff]  ;;  %s9537_s26 = sld [smem:[#allocation13_spill]] }
0x1153   : > { %v3447_v30 = vadd.f32 %v3446_v28, %v3442_v29  ;;  %v3712_v28 = vld [vmem:[%s1517_s5] sm:$0xff] }
0x1155   : > { %v3448_v24 = vpack.c.bf16 %v3447_v30, %v3447_v30 }
0x1157   : > { %7588 = vmatmul.mubr.msk.bf16.vlgmr.msra.gmra.mxu0 %vm1760_vm3, %v3448_v24  ;;  %v3713_v24 = vld [vmem:[%s1517_s5 + $0x8] sm:$0xff]  ;;  %s9532_s5 = sld [smem:[#allocation28_spill]] }
0x1158   : > { %7615 = vmatprep.mubr.msk.bf16.mxu0 %vm8297_vm0, %v8296_v1 }
0x1217   : > { %v3504_v37 = vpop.f32.mrf.mxu0 }
0x1218   : > { %v3505_v38 = vadd.f32 %v6983_v36, %v3504_v37 }
0x1219   : > { %v7589_v44 = vpop.f32.mrf.mxu0 }
0x121a   : > { %v3510_v45 = vmul.f32 %v3505_v38, %v3505_v38 }
0x121b   : > { %v3507_v46 = vpop.f32.mrf.mxu0 }
0x121c   : > { %v3511_v47 = vmul.f32 %v3510_v45, %v3505_v38  ;;  %v3833_v46 = vld [vmem:[%s9531_s3 + $0x8] sm:$0xff] }
0x121d   : > { %v7590_v48 = vpop.f32.mrf.mxu0 }
0x121e   : > { %v3512_v49 = vmul.f32 0.044715, %v3511_v47 }
0x1220   : > { %v3513_v13 = vadd.f32 %v3512_v49, %v3505_v38 }
0x1222   : > { %v3514_v39 = vmul.f32 0.7978846, %v3513_v13 }
0x1224   : > { %8093 = vtanh.f32 %v3514_v39 }
0x1231   : > { %v8094_v50 = vpop.eup %8093 }
0x1232   : > { %v3516_v41 = vadd.f32 1.0, %v8094_v50 }
0x1234   : > { %v3517_v51 = vmul.f32 0.5, %v3516_v41  ;;  %v3834_v41 = vld [vmem:[%s9531_s3 + $0x10] sm:$0xff]  ;;  %s9538_s3 = sld [smem:[#allocation11_spill]] }
0x1236   : > { %v3518_v52 = vmul.f32 %v3517_v51, %v3505_v38 }
0x1238   : > { %v3519_v53 = vpack.c.bf16 %v3518_v52, %v3518_v52 }
0x123a   : > { %7608 = vmatmul.mubr.bf16.vlgmr.msra.gmra.mxu1 %v3519_v53 }
0x12fa   : > { %v3602_v54 = vpop.f32.mrf.mxu1 }
0x12fb   : > { %v3608_v56 = vadd.f32 %v3602_v54, %v8873_v8  ;;  %v8011_v8 = vld [vmem:[%s9525_s0 + $0x8] sm:$0xff]   ;;  %s9530_s0 = sld [smem:[#allocation25_spill]] }
0x12fc   : > { %v7609_v57 = vpop.f32.mrf.mxu1  ;;  %7612 = vmatpush3.bf16.msra.mxu0 %v8011_v8 }
0x12fd   : > { %v3615_v58 = vadd.f32 %v6995_v55, %v3608_v56  ;;  %7613 = vmatprep.subr.bf16.mxu0 %v8296_v1 }
0x12fe   : > { %v3605_v59 = vpop.f32.mrf.mxu1 }
0x12ff   : > { %v3618_v60 = vsel %vm1760_vm3, %v3615_v58, 0.0 }
0x1300   : > { %3619 = vadd.xlane.f32.xlu0 %v3618_v60  ;;  %v7610_v61 = vpop.f32.mrf.mxu1  ;;  %7614 = vmatpush3.bf16.msra.mxu0 %v8012_v9 }
0x1301   : > { %7619 = vmatprep.subr.mxu0 %v8296_v1  ;;  %v7002_v35 = vld [vmem:[%s9530_s0] ss:$0 sm:$0xff]  ;;  %s9534_s0 = sld [smem:[#allocation30_spill]] }
0x1316   : > { %3721 = vperm.xlu0 %7970, %v3715_v62  }
0x1389   : > { %v3620_v0 = vpop.xlane.xlu0 %3619 }
0x138a   : > { %v3621_v34 = vmul.f32 0.03125, %v3620_v0 }
0x138c   : > { %v3622_v2 = vsub.f32 %v3615_v58, %v3621_v34 }
0x138e   : > { %v3623_v3 = vmul.f32 %v3622_v2, %v3622_v2 }
0x1390   : > { %v3624_v6 = vsel %vm1760_vm3, %v3623_v3, 0.0 }
0x1391   : > { %3625 = vadd.xlane.f32.xlu1 %v3624_v6  ;;  %v3722_v33 = vpop.permute.xlu0 %3721 }
0x1392   : > { %v3740_v17 = vmul.f32 %v7002_v35, %v3722_v33 }
0x13a2   : > { %3726 = vperm.xlu1 %7971, %v3716_v5  }
0x13a6   : > { %3731 = vperm.xlu1 %7971, %v3717_v22  }
0x141a   : > { %v3626_v10 = vpop.xlane.xlu1 %3625 }
0x141b   : > { %v3627_v11 = vmul.f32 0.03125, %v3626_v10 }
0x141d   : > { %v3628_v12 = vadd.f32 1e-05, %v3627_v11  ;;  %v8013_v11 = vld [vmem:[%s9532_s5 + $0x8] sm:$0xff]  }
0x141e   : > { %v3727_v25 = vpop.permute.xlu1 %3726 }
0x141f   : > { %8095 = vrsqrt.f32 %v3628_v12  ;;  %v3741_v37 = vmul.f32 %v7002_v35, %v3727_v25  ;;  %v8014_v12 = vld [vmem:[%s9533_s4 + $0x8] sm:$0xff]  }
0x1420   : > { %7638 = vmatprep.subr.bf16.mxu1 %v8014_v12 }
0x1421   : > { %7639 = vmatpush3.bf16.msra.mxu1 %v8014_v12 }
0x1422   : > { %v3732_v47 = vpop.permute.xlu1 %3731 }
0x1423   : > { %v3742_v39 = vmul.f32 %v7002_v35, %v3732_v47  ;;  %v8018_v47 = vld [vmem:[%s9534_s0] sm:$0xff]  }
0x142c   : > { %v8096_v14 = vpop.eup %8095 }
0x142d   : > { %v3630_v16 = vmul.f32 %v8096_v14, %v3622_v2  ;;  %v8015_v14 = vld [vmem:[%s9532_s5] sm:$0xff]  }
0x142f   : > { %v3637_v4 = vmul.f32 %v6996_v15, %v3630_v16  ;;  %v8016_v15 = vld [vmem:[%s9533_s4] sm:$0xff]   ;;  %v8017_v16 = vld [vmem:[%s9534_s0 + $0x8] sm:$0xff]  }
0x1430   : > { %7640 = vmatprep.subr.bf16.mxu1 %v8016_v15 }
0x1431   : > { %v3644_v19 = vadd.f32 %v6997_v20, %v3637_v4  ;;  %7641 = vmatpush3.bf16.msra.mxu1 %v8016_v15 }
0x1433   : > { %v3645_v21 = vpack.c.bf16 %v3644_v19, %v3644_v19 }
0x1435   : > { %7616 = vmatmul.mubr.msk.bf16.vlgmr.msra.gmra.mxu0 %vm1760_vm3, %v3645_v21 }
0x1436   : > { %7621 = vmatprep.mubr.msk.f32.mxu0 %vm8297_vm0, %v8296_v1 }
0x14f5   : > { %v3706_v26 = vpop.f32.mrf.mxu0 }
0x14f6   : > { %v3707_v27 = vadd.f32 %v6998_v23, %v3706_v26 }
0x14f7   : > { %v7617_v29 = vpop.f32.mrf.mxu0 }
0x14f8   : > { %7620 = vmatpush3.msra.mxu0 %v3707_v27 }
0x14f9   : > { %v3709_v30 = vpop.f32.mrf.mxu0  ;;  %7622 = vmatmul.mubr.msk.f32.vlgmr.msra.gmra.mxu0 %vm2183_vm5, %v3712_v28  ;;  %7630 = vmatprep.subr.bf16.mxu0 %v8013_v11  ;;  %v8962_v28 = vld [vmem:[%s9535_s7] sm:$0xf] }
0x14fa   : > { %7624 = vmatprep.mubr.msk.f32.mxu0 %vm8297_vm0, %v8296_v1  ;;  %7631 = vmatpush3.bf16.msra.mxu0 %v8013_v11  ;;  %v3933_v33 = vrot.slane %v8962_v28, %v8605_v42 }
0x14fb   : > { %v7618_v31 = vpop.f32.mrf.mxu0  ;;  %7632 = vmatprep.subr.bf16.mxu0 %v8015_v14 }
0x14fd   : > { %7625 = vmatmul.mubr.msk.f32.gmra.mxu0 %vm2183_vm5, %v3713_v24  ;;  %v3926_v24 = vrot.slane %v8962_v28, %v8599_v40 }
0x14fe   : > { %7627 = vmatprep.mubr.msk.f32.mxu0 %vm8297_vm0, %v8296_v1  ;;  %7633 = vmatpush3.bf16.msra.mxu0 %v8015_v14 }
0x14ff   : > { %7646 = vmatprep.subr.bf16.mxu0 %v8017_v16 }
0x1501   : > { %7628 = vmatmul.mubr.msk.f32.gmra.mxu0 %vm2183_vm5, %v3714_v32 }
0x15b9   : > { %v3818_v18 = vpop.f32.mrf.mxu0 }
0x15ba   : > { %v3819_v36 = vadd.f32 %v3818_v18, %v3740_v17 }
0x15bb   : > { %v7623_v38 = vpop.f32.mrf.mxu0 }
0x15bc   : > { %v8936_v44 = vadd.f32 %v3832_v7, %v3819_v36 }
0x15bd   : > { %v3823_v45 = vpop.f32.mrf.mxu0 }
0x15be   : > { %v3824_v48 = vadd.f32 %v3823_v45, %v3741_v37  ;;  %v3884_v1 = vsel %vm1760_vm3, %v8936_v44, 0.0 }
0x15bf   : > { %3885 = vadd.xlane.f32.xlu0 %v3884_v1  ;;  %v7626_v49 = vpop.f32.mrf.mxu0 }
0x15c0   : > { %v8941_v13 = vadd.f32 %v3833_v46, %v3824_v48  ;;  %v3856_v48 = vld [vmem:[%s9536_s10] sm:$0x7] }
0x15c1   : > { %v3828_v50 = vpop.f32.mrf.mxu0  ;;  %v4012_v1 = vrot.slane %v3856_v48, %v8605_v42  ;;  %v4076_v14 = vrot.slane %v3856_v48, %v8632_v63 }
0x15c2   : > { %v3829_v51 = vadd.f32 %v3828_v50, %v3742_v39  ;;  %v3887_v52 = vsel %vm1760_vm3, %v8941_v13, 0.0 }
0x15c3   : > { %3888 = vadd.xlane.f32.xlu1 %v3887_v52  ;;  %v7629_v53 = vpop.f32.mrf.mxu0  ;;  %v3942_v52 = vrot.slane %v3856_v48, %v8599_v40 }
0x15c4   : > { %v8946_v54 = vadd.f32 %v3834_v41, %v3829_v51 }
0x15c6   : > { %v3890_v55 = vsel %vm1760_vm3, %v8946_v54, 0.0 }
0x15c7   : > { %3891 = vadd.xlane.f32.xlu0 %v3890_v55 }
0x1648   : > { %v3886_v56 = vpop.xlane.xlu0 %3885 }
0x1649   : > { %v3893_v57 = vmul.f32 0.03125, %v3886_v56 }
0x164b   : > { %v3896_v58 = vsub.f32 %v8936_v44, %v3893_v57 }
0x164c   : > { %v3889_v59 = vpop.xlane.xlu1 %3888 }
0x164d   : > { %v3894_v60 = vmul.f32 0.03125, %v3889_v59  ;;  %v3899_v61 = vmul.f32 %v3896_v58, %v3896_v58 }
0x164f   : > { %v3897_v62 = vsub.f32 %v8941_v13, %v3894_v60  ;;  %v3902_v0 = vsel %vm1760_vm3, %v3899_v61, 0.0 }
0x1650   : > { %3903 = vadd.xlane.f32.xlu0 %v3902_v0  ;;  %v3892_v34 = vpop.xlane.xlu0 %3891  ;;  %v8982_v0 = vld [vmem:[%s9537_s26] ss:$0 sm:$0xff] }
0x1651   : > { %v3895_v2 = vmul.f32 0.03125, %v3892_v34  ;;  %v3900_v3 = vmul.f32 %v3897_v62, %v3897_v62  ;;  %v8985_v34 = vld [vmem:[%s9537_s26 + $0x1] ss:$0 sm:$0xff] }
0x1653   : > { %v3898_v6 = vsub.f32 %v8946_v54, %v3895_v2  ;;  %v3905_v8 = vsel %vm1760_vm3, %v3900_v3, 0.0 }
0x1654   : > { %3906 = vadd.xlane.f32.xlu1 %v3905_v8 }
0x1655   : > { %v3901_v9 = vmul.f32 %v3898_v6, %v3898_v6 }
0x1657   : > { %v3908_v10 = vsel %vm1760_vm3, %v3901_v9, 0.0 }
0x1658   : > { %3909 = vadd.xlane.f32.xlu0 %v3908_v10 }
0x16d9   : > { %v3904_v20 = vpop.xlane.xlu0 %3903 }
0x16da   : > { %v3911_v4 = vmul.f32 0.03125, %v3904_v20 }
0x16dc   : > { %v3914_v19 = vadd.f32 1e-05, %v3911_v4 }
0x16dd   : > { %v3907_v21 = vpop.xlane.xlu1 %3906 }
0x16de   : > { %8097 = vrsqrt.f32 %v3914_v19  ;;  %v3912_v5 = vmul.f32 0.03125, %v3907_v21 }
0x16e0   : > { %v3915_v22 = vadd.f32 1e-05, %v3912_v5 }
0x16e1   : > { %v3910_v23 = vpop.xlane.xlu0 %3909 }
0x16e2   : > { %8099 = vrsqrt.f32 %v3915_v22  ;;  %v3913_v26 = vmul.f32 0.03125, %v3910_v23  ;;  %v7020_v23 = vld [vmem:[%s9537_s26 + $0x2] ss:$0 sm:$0xff] }
0x16e4   : > { %v3916_v27 = vadd.f32 1e-05, %v3913_v26 }
0x16e6   : > { %8101 = vrsqrt.f32 %v3916_v27  ;;  %v7021_v27 = vld [vmem:[%s9537_s26 + $0x3] ss:$0 sm:$0xff] }
0x16eb   : > { %v8098_v29 = vpop.eup %8097 }
0x16ec   : > { %v3920_v30 = vmul.f32 %v8098_v29, %v3896_v58 }
0x16ee   : > { %v3927_v35 = vmul.f32 %v3926_v24, %v3920_v30 }
0x16ef   : > { %v8100_v31 = vpop.eup %8099 }
0x16f0   : > { %v3921_v32 = vmul.f32 %v8100_v31, %v3897_v62  ;;  %v3934_v7 = vadd.f32 %v3933_v33, %v3927_v35 }
0x16f2   : > { %v3928_v25 = vmul.f32 %v3926_v24, %v3921_v32 }
0x16f3   : > { %v8102_v17 = vpop.eup %8101 }
0x16f4   : > { %v3922_v18 = vmul.f32 %v8102_v17, %v3898_v6  ;;  %v3935_v36 = vadd.f32 %v3933_v33, %v3928_v25 }
0x16f6   : > { %v3937_v37 = vpack.c.bf16 %v3935_v36, %v3934_v7  ;;  %v3929_v38 = vmul.f32 %v3926_v24, %v3922_v18 }
0x16f8   : > { %7634 = vmatprep.mubr.msk.bf16.mxu0 %vm1760_vm3, %v3937_v37  ;;  %7642 = vmatprep.mubr.msk.bf16.mxu1 %vm1760_vm3, %v3937_v37  ;;  %v3936_v45 = vadd.f32 %v3933_v33, %v3929_v38 }
0x16fa   : > { %v3938_v46 = vpack.c.bf16 %v3936_v45, %v3936_v45 }
0x16fc   : > { %7635 = vmatmul.mubr.msk.bf16.vlgmr.msra.gmra.mxu0 %vm1760_vm3, %v3938_v46  ;;  %7643 = vmatmul.mubr.msk.bf16.vlgmr.msra.gmra.mxu1 %vm1760_vm3, %v3938_v46 }
0x16fd   : > { %7647 = vmatpush3.bf16.msra.mxu0 %v8017_v16  ;;  %7650 = vmatprep.mubr.msk.bf16.mxu0 %vm1760_vm3, %v3937_v37 }
0x16fe   : > { %7648 = vmatprep.subr.bf16.mxu0 %v8018_v47 }
0x1701   : > { %7649 = vmatpush3.bf16.msra.mxu0 %v8018_v47 }
0x1704   : > { %7651 = vmatmul.mubr.msk.bf16.vlgmr.msra.gmra.mxu0 %vm1760_vm3, %v3938_v46 }
0x17bc   : > { %v7636_v49 = vpop.f32.mrf.mxu0  ;;  %v7644_v39 = vpop.f32.mrf.mxu1 }
0x17bd   : > { %v4068_v50 = vadd.f32 %v7644_v39, %v4012_v1  ;;  %v4004_v20 = vadd.f32 %v7636_v49, %v3942_v52 }
0x17be   : > { %v3995_v41 = vpop.f32.mrf.mxu0  ;;  %v4059_v51 = vpop.f32.mrf.mxu1 }
0x17bf   : > { %v4194_v53 = vpack.c.bf16 %v4068_v50, %v4068_v50  ;;  %v3996_v57 = vadd.f32 %v3995_v41, %v3942_v52  ;;  %v4060_v2 = vadd.f32 %v4059_v51, %v4012_v1  ;;  %v4163_v26 = vmul.f32 %v8982_v0, %v4004_v20 }
0x17c0   : > { %v7637_v55 = vpop.f32.mrf.mxu0  ;;  %v7645_v56 = vpop.f32.mrf.mxu1  ;;  %v4166_v29 = vmul.f32 %v8985_v34, %v4004_v20  ;;  %v4169_v39 = vmul.f32 %v7020_v23, %v4004_v20  ;;  %v4172_v50 = vmul.f32 %v7021_v27, %v4004_v20 }
0x17c1   : > { %7886 = vmatprep.subr.msk.bf16.mxu1 %vm1760_vm3, %v4194_v53  ;;  %7888 = vmatprep.subr.msk.bf16.mxu0 %vm1760_vm3, %v4194_v53  ;;  %v4205_v62 = vsel %vm1760_vm3, %v4194_v53, 0  ;;  %v4161_v6 = vmul.f32 %v8982_v0, %v3996_v57  ;;  %v4164_v8 = vmul.f32 %v8985_v34, %v3996_v57  ;;  %v4167_v17 = vmul.f32 %v7020_v23, %v3996_v57 }
0x17c2   : > { %v3998_v58 = vpop.f32.mrf.mxu0  ;;  %v4062_v59 = vpop.f32.mrf.mxu1  ;;  %7655 = vmatpush3.bf16.xpose.msra.mxu1 %v4205_v62  ;;  %7663 = vmatpush3.bf16.xpose.msra.mxu0 %v4205_v62  ;;  %v4186_v7 = vpack.c.bf16 %v4163_v26, %v4163_v26  ;;  %v4188_v36 = vpack.c.bf16 %v4166_v29, %v4166_v29  ;;  %v4170_v37 = vmul.f32 %v7021_v27, %v3996_v57 }
0x17c3   : > { %v3999_v60 = vadd.f32 %v3998_v58, %v3942_v52  ;;  %v4063_v61 = vadd.f32 %v4062_v59, %v4012_v1  ;;  %v4190_v52 = vpack.c.bf16 %v4169_v39, %v4169_v39  ;;  %v4192_v55 = vpack.c.bf16 %v4172_v50, %v4172_v50 }
0x17c4   : > { %v7652_v3 = vpop.f32.mrf.mxu0 }
0x17c5   : > { %v4162_v9 = vmul.f32 %v8982_v0, %v3999_v60  ;;  %v4165_v10 = vmul.f32 %v8985_v34, %v3999_v60  ;;  %v4193_v11 = vpack.c.bf16 %v4063_v61, %v4060_v2  ;;  %v4168_v31 = vmul.f32 %v7020_v23, %v3999_v60 }
0x17c6   : > { %v4123_v12 = vpop.f32.mrf.mxu0  ;;  %v4171_v33 = vmul.f32 %v7021_v27, %v3999_v60  ;;  %v4132_v45 = vadd.f32 %v7652_v3, %v4076_v14 }
0x17c7   : > { %v4185_v15 = vpack.c.bf16 %v4162_v9, %v4161_v6  ;;  %v4187_v16 = vpack.c.bf16 %v4165_v10, %v4164_v8  ;;  %7887 = vmatprep.subr.msk.bf16.mxu1 %vm1760_vm3, %v4193_v11  ;;  %7889 = vmatprep.subr.msk.bf16.mxu0 %vm1760_vm3, %v4193_v11  ;;  %v4124_v19 = vadd.f32 %v4123_v12, %v4076_v14  ;;  %v4202_v22 = vsel %vm1760_vm3, %v4193_v11, 0  ;;  %v7030_v6 = vld [vmem:[%s9538_s3] ss:$0 sm:$0xff] }
0x17c8   : > { %v7653_v4 = vpop.f32.mrf.mxu0  ;;  %v4189_v38 = vpack.c.bf16 %v4168_v31, %v4167_v17  ;;  %v4191_v46 = vpack.c.bf16 %v4171_v33, %v4170_v37  ;;  %v4175_v47 = vmul.f32 %v8982_v0, %v4132_v45  ;;  %v4178_v48 = vmul.f32 %v8985_v34, %v4132_v45 }
0x17c9   : > { %7658 = vmatprep.mubr.msk.bf16.mxu1 %vm1760_vm3, %v4185_v15  ;;  %7666 = vmatprep.mubr.msk.bf16.mxu0 %vm1760_vm3, %v4187_v16  ;;  %v4179_v30 = vmul.f32 %v7020_v23, %v4124_v19  ;;  %v4182_v32 = vmul.f32 %v7021_v27, %v4124_v19  ;;  %v4176_v56 = vmul.f32 %v8985_v34, %v4124_v19 }
0x17ca   : > { %v4126_v21 = vpop.f32.mrf.mxu0  ;;  %7657 = vmatpush3.bf16.xpose.msra.mxu1 %v4202_v22  ;;  %7665 = vmatpush3.bf16.xpose.msra.mxu0 %v4202_v22  ;;  %v4589_v1 = vpack.c.bf16 %v4175_v47, %v4175_v47  ;;  %v4591_v49 = vpack.c.bf16 %v4178_v48, %v4178_v48  ;;  %v4181_v59 = vmul.f32 %v7020_v23, %v4132_v45 }
0x17cb   : > { %v4127_v5 = vadd.f32 %v4126_v21, %v4076_v14  ;;  %7890 = vmatprep.subr.msk.bf16.mxu1 %vm1760_vm3, %v4194_v53  ;;  %7892 = vmatprep.subr.msk.bf16.mxu0 %vm1760_vm3, %v4194_v53  ;;  %v4173_v53 = vmul.f32 %v8982_v0, %v4124_v19 }
0x17cc   : > { %v4603_v57 = vsel %vm2239_vm4, %v4589_v1, 0  ;;  %v4660_v60 = vsel %vm2239_vm4, %v4591_v49, 0 }
0x17cd   : > { %v4180_v24 = vmul.f32 %v7020_v23, %v4127_v5  ;;  %v4183_v35 = vmul.f32 %v7021_v27, %v4127_v5  ;;  %v4174_v41 = vmul.f32 %v8982_v0, %v4127_v5  ;;  %v4177_v51 = vmul.f32 %v8985_v34, %v4127_v5 }
0x17ce   : > { %v9025_v0 = vpack.c.bf16 %v4181_v59, %v4181_v59 }
0x17cf   : > { %v9003_v25 = vpack.c.bf16 %v4180_v24, %v4179_v30  ;;  %v9005_v18 = vpack.c.bf16 %v4183_v35, %v4182_v32  ;;  %v4588_v58 = vpack.c.bf16 %v4174_v41, %v4173_v53  ;;  %v4590_v61 = vpack.c.bf16 %v4177_v51, %v4176_v56 }
0x17d1   : > { %7659 = vmatmul.mubr.msk.bf16.vlgmr.msra.gmra.mxu1 %vm1760_vm3, %v4186_v7  ;;  %7667 = vmatmul.mubr.msk.bf16.vlgmr.msra.gmra.mxu0 %vm1760_vm3, %v4188_v36 }
0x17d2   : > { %7671 = vmatpush3.bf16.xpose.msra.mxu1 %v4205_v62  ;;  %7674 = vmatprep.mubr.msk.bf16.mxu1 %vm1760_vm3, %v4189_v38 }
0x17d3   : > { %7679 = vmatpush3.bf16.xpose.msra.mxu0 %v4205_v62  ;;  %7682 = vmatprep.mubr.msk.bf16.mxu0 %vm1760_vm3, %v4191_v46  ;;  %v4184_v62 = vmul.f32 %v7021_v27, %v4132_v45 }
0x17d4   : > { %7891 = vmatprep.subr.msk.bf16.mxu1 %vm1760_vm3, %v4193_v11  ;;  %7893 = vmatprep.subr.msk.bf16.mxu0 %vm1760_vm3, %v4193_v11 }
0x17d5   : > { %v9027_v34 = vpack.c.bf16 %v4184_v62, %v4184_v62 }
0x17da   : > { %7673 = vmatpush3.bf16.xpose.msra.mxu1 %v4202_v22 }
0x17db   : > { %7681 = vmatpush3.bf16.xpose.msra.mxu0 %v4202_v22  ;;  %7894 = vmatprep.subr.msk.bf16.mxu1 %vm2239_vm4, %v4589_v1 }
0x17dc   : > { %7895 = vmatprep.subr.msk.bf16.mxu0 %vm2239_vm4, %v4591_v49 }
0x17e1   : > { %7675 = vmatmul.mubr.msk.bf16.vlgmr.msra.gmra.mxu1 %vm1760_vm3, %v4190_v52 }
0x17e2   : > { %7683 = vmatmul.mubr.msk.bf16.vlgmr.msra.gmra.mxu0 %vm1760_vm3, %v4192_v55  ;;  %7687 = vmatpush3.bf16.msra.mxu1 %v4603_v57 }
0x17e3   : > { %7695 = vmatpush3.bf16.msra.mxu0 %v4660_v60  ;;  %7688 = vmatprep.subr.bf16.mxu1 %v4588_v58 }
0x17e4   : > { %7696 = vmatprep.subr.bf16.mxu0 %v4590_v61 }
0x17e6   : > { %7689 = vmatpush3.bf16.msra.mxu1 %v4588_v58 }
0x17e7   : > { %7697 = vmatpush3.bf16.msra.mxu0 %v4590_v61  ;;  %7896 = vmatprep.subr.msk.bf16.mxu1 %vm2239_vm4, %v9025_v0 }
0x17e8   : > { %7897 = vmatprep.subr.msk.bf16.mxu0 %vm2239_vm4, %v9027_v34 }
0x1891   : > { %v7660_v2 = vpop.f32.mrf.mxu1  ;;  %v7668_v3 = vpop.f32.mrf.mxu0 }
0x1892   : > { %v4419_v8 = vmul.f32 0.35355338, %v7660_v2  ;;  %v4422_v9 = vmul.f32 0.35355338, %v7668_v3 }
0x1893   : > { %v4241_v10 = vpop.f32.mrf.mxu1  ;;  %v4295_v11 = vpop.f32.mrf.mxu0 }
0x1894   : > { %v4417_v12 = vmul.f32 0.35355338, %v4241_v10  ;;  %v4420_v14 = vmul.f32 0.35355338, %v4295_v11  ;;  %v4440_v15 = vadd.f32 %v7030_v6, %v4422_v9  ;;  %v4437_v16 = vadd.f32 %v7030_v6, %v4419_v8 }
0x1895   : > { %v7661_v20 = vpop.f32.mrf.mxu1  ;;  %v7669_v4 = vpop.f32.mrf.mxu0 }
0x1896   : > { %v4463_v19 = vsel %vm4447_vm6, %v4440_v15, -inf  ;;  %v4454_v21 = vsel %vm4447_vm6, %v4437_v16, -inf  ;;  %v4438_v5 = vadd.f32 %v7030_v6, %v4420_v14  ;;  %v4435_v22 = vadd.f32 %v7030_v6, %v4417_v12 }
0x1897   : > { %4464 = vmax.xlane.f32.xlu0 %v4463_v19  ;;  %v4298_v23 = vpop.f32.mrf.mxu0  ;;  %4455 = vmax.xlane.f32.xlu1 %v4454_v21  ;;  %v4244_v26 = vpop.f32.mrf.mxu1 }
0x1898   : > { %v4421_v27 = vmul.f32 0.35355338, %v4298_v23  ;;  %v4418_v29 = vmul.f32 0.35355338, %v4244_v26  ;;  %v4457_v30 = vsel %vm4447_vm6, %v4438_v5, -inf  ;;  %v4448_v24 = vsel %vm4447_vm6, %v4435_v22, -inf }
0x189a   : > { %v4439_v31 = vadd.f32 %v7030_v6, %v4421_v27  ;;  %v4436_v32 = vadd.f32 %v7030_v6, %v4418_v29 }
0x189b   : > { %4458 = vmax.xlane.f32.xlu0 %v4457_v30  ;;  %4449 = vmax.xlane.f32.xlu1 %v4448_v24 }
0x189c   : > { %v4460_v35 = vsel %vm4447_vm6, %v4439_v31, -inf  ;;  %v4451_v33 = vsel %vm4447_vm6, %v4436_v32, -inf }
0x189f   : > { %4461 = vmax.xlane.f32.xlu1 %v4460_v35  ;;  %4452 = vmax.xlane.f32.xlu0 %v4451_v33 }
0x18a1   : > { %v7676_v17 = vpop.f32.mrf.mxu1 }
0x18a2   : > { %v4425_v7 = vmul.f32 0.35355338, %v7676_v17  ;;  %v7684_v36 = vpop.f32.mrf.mxu0 }
0x18a3   : > { %v4349_v37 = vpop.f32.mrf.mxu1  ;;  %v4428_v53 = vmul.f32 0.35355338, %v7684_v36 }
0x18a4   : > { %v4423_v38 = vmul.f32 0.35355338, %v4349_v37  ;;  %v4403_v45 = vpop.f32.mrf.mxu0  ;;  %v4443_v46 = vadd.f32 %v7030_v6, %v4425_v7 }
0x18a5   : > { %v4426_v47 = vmul.f32 0.35355338, %v4403_v45  ;;  %v7677_v48 = vpop.f32.mrf.mxu1  ;;  %v9049_v61 = vadd.f32 %v7030_v6, %v4428_v53 }
0x18a6   : > { %v7685_v1 = vpop.f32.mrf.mxu0  ;;  %v4472_v49 = vsel %vm4447_vm6, %v4443_v46, -inf  ;;  %v4441_v39 = vadd.f32 %v7030_v6, %v4423_v38 }
0x18a7   : > { %4473 = vmax.xlane.f32.xlu1 %v4472_v49  ;;  %v4352_v50 = vpop.f32.mrf.mxu1  ;;  %v4444_v41 = vadd.f32 %v7030_v6, %v4426_v47  ;;  %v4481_v2 = vsel %vm4447_vm6, %v9049_v61, -inf }
0x18a8   : > { %v4406_v51 = vpop.f32.mrf.mxu0  ;;  %v4424_v52 = vmul.f32 0.35355338, %v4352_v50  ;;  %v4466_v57 = vsel %vm4447_vm6, %v4441_v39, -inf }
0x18a9   : > { %v4427_v55 = vmul.f32 0.35355338, %v4406_v51  ;;  %v4475_v56 = vsel %vm4447_vm6, %v4444_v41, -inf }
0x18aa   : > { %4476 = vmax.xlane.f32.xlu0 %v4475_v56  ;;  %v9043_v58 = vadd.f32 %v7030_v6, %v4424_v52 }
0x18ab   : > { %4467 = vmax.xlane.f32.xlu1 %v4466_v57  ;;  %v9045_v59 = vadd.f32 %v7030_v6, %v4427_v55 }
0x18ac   : > { %v4469_v60 = vsel %vm4447_vm6, %v9043_v58, -inf }
0x18ad   : > { %v4478_v62 = vsel %vm4447_vm6, %v9045_v59, -inf }
0x18ae   : > { %4470 = vmax.xlane.f32.xlu0 %v4469_v60 }
0x18af   : > { %4479 = vmax.xlane.f32.xlu1 %v4478_v62 }
0x18b2   : > { %4482 = vmax.xlane.f32.xlu0 %v4481_v2 }
0x1920   : > { %v4465_v3 = vpop.xlane.xlu0 %4464  ;;  %v4456_v8 = vpop.xlane.xlu1 %4455 }
0x1921   : > { %v4489_v9 = vsub.f32 %v4440_v15, %v4465_v3  ;;  %v4486_v10 = vsub.f32 %v4437_v16, %v4456_v8 }
0x1923   : > { %v4506_v11 = vmul.f32 1.442695, %v4489_v9  ;;  %v4500_v12 = vmul.f32 1.442695, %v4486_v10 }
0x1924   : > { %v4459_v14 = vpop.xlane.xlu0 %4458  ;;  %v4450_v20 = vpop.xlane.xlu1 %4449 }
0x1925   : > { %8103 = vpow2.f32 %v4506_v11  ;;  %v4487_v6 = vsub.f32 %v4438_v5, %v4459_v14  ;;  %v4484_v4 = vsub.f32 %v4435_v22, %v4450_v20 }
0x1926   : > { %8105 = vpow2.f32 %v4500_v12 }
0x1927   : > { %v4502_v19 = vmul.f32 1.442695, %v4487_v6  ;;  %v4496_v21 = vmul.f32 1.442695, %v4484_v4 }
0x1928   : > { %v4462_v23 = vpop.xlane.xlu1 %4461  ;;  %v4453_v26 = vpop.xlane.xlu0 %4452 }
0x1929   : > { %8107 = vpow2.f32 %v4502_v19  ;;  %v4488_v27 = vsub.f32 %v4439_v31, %v4462_v23  ;;  %v4485_v29 = vsub.f32 %v4436_v32, %v4453_v26 }
0x192a   : > { %8109 = vpow2.f32 %v4496_v21 }
0x192b   : > { %v4504_v30 = vmul.f32 1.442695, %v4488_v27  ;;  %v4498_v24 = vmul.f32 1.442695, %v4485_v29 }
0x192d   : > { %8111 = vpow2.f32 %v4504_v30 }
0x192e   : > { %8113 = vpow2.f32 %v4498_v24 }
0x1930   : > { %v4474_v15 = vpop.xlane.xlu1 %4473 }
0x1931   : > { %v4492_v16 = vsub.f32 %v4443_v46, %v4474_v15 }
0x1932   : > { %v9055_v35 = vpop.eup %8103 }
0x1933   : > { %v9057_v33 = vpop.eup %8105  ;;  %v4512_v5 = vmul.f32 1.442695, %v4492_v16  ;;  %v4477_v22 = vpop.xlane.xlu0 %4476  ;;  %v4535_v17 = vsel %vm4447_vm6, %v9055_v35, 0.0 }
0x1934   : > { %v4493_v7 = vsub.f32 %v4444_v41, %v4477_v22  ;;  %v4526_v31 = vsel %vm4447_vm6, %v9057_v33, 0.0  ;;  %v4468_v32 = vpop.xlane.xlu1 %4467  ;;  %4536 = vadd.xlane.f32.xlu0 %v4535_v17 }
0x1935   : > { %8115 = vpow2.f32 %v4512_v5  ;;  %4527 = vadd.xlane.f32.xlu1 %v4526_v31  ;;  %v4490_v36 = vsub.f32 %v4441_v39, %v4468_v32 }
0x1936   : > { %v9063_v37 = vpop.eup %8107  ;;  %v4514_v38 = vmul.f32 1.442695, %v4493_v7 }
0x1937   : > { %v9065_v45 = vpop.eup %8109  ;;  %v4508_v46 = vmul.f32 1.442695, %v4490_v36  ;;  %v4471_v47 = vpop.xlane.xlu0 %4470  ;;  %v4529_v48 = vsel %vm4447_vm6, %v9063_v37, 0.0 }
0x1938   : > { %8117 = vpow2.f32 %v4514_v38  ;;  %v4491_v1 = vsub.f32 %v9043_v58, %v4471_v47  ;;  %v4520_v49 = vsel %vm4447_vm6, %v9065_v45, 0.0  ;;  %v4480_v50 = vpop.xlane.xlu1 %4479  ;;  %4530 = vadd.xlane.f32.xlu0 %v4529_v48 }
0x1939   : > { %8119 = vpow2.f32 %v4508_v46  ;;  %4521 = vadd.xlane.f32.xlu1 %v4520_v49  ;;  %v4494_v39 = vsub.f32 %v9045_v59, %v4480_v50 }
0x193a   : > { %v8112_v41 = vpop.eup %8111  ;;  %v4510_v51 = vmul.f32 1.442695, %v4491_v1 }
0x193b   : > { %v9073_v52 = vpop.eup %8113  ;;  %v4516_v53 = vmul.f32 1.442695, %v4494_v39  ;;  %v4483_v55 = vpop.xlane.xlu0 %4482  ;;  %v4532_v56 = vsel %vm4447_vm6, %v8112_v41, 0.0 }
0x193c   : > { %8121 = vpow2.f32 %v4510_v51  ;;  %v4495_v57 = vsub.f32 %v9049_v61, %v4483_v55  ;;  %v4523_v58 = vsel %vm4447_vm6, %v9073_v52, 0.0 }
0x193d   : > { %8123 = vpow2.f32 %v4516_v53  ;;  %4533 = vadd.xlane.f32.xlu1 %v4532_v56  ;;  %4524 = vadd.xlane.f32.xlu0 %v4523_v58 }
0x193e   : > { %v4518_v60 = vmul.f32 1.442695, %v4495_v57 }
0x1940   : > { %8125 = vpow2.f32 %v4518_v60 }
0x1942   : > { %v9079_v59 = vpop.eup %8115 }
0x1943   : > { %v4544_v62 = vsel %vm4447_vm6, %v9079_v59, 0.0 }
0x1944   : > { %4545 = vadd.xlane.f32.xlu1 %v4544_v62 }
0x1945   : > { %v9083_v2 = vpop.eup %8117 }
0x1946   : > { %v9085_v3 = vpop.eup %8119  ;;  %v4547_v61 = vsel %vm4447_vm6, %v9083_v2, 0.0 }
0x1947   : > { %4548 = vadd.xlane.f32.xlu0 %v4547_v61  ;;  %v4538_v8 = vsel %vm4447_vm6, %v9085_v3, 0.0 }
0x1948   : > { %4539 = vadd.xlane.f32.xlu1 %v4538_v8 }
0x1949   : > { %v9091_v9 = vpop.eup %8121 }
0x194a   : > { %v9093_v10 = vpop.eup %8123  ;;  %v4541_v11 = vsel %vm4447_vm6, %v9091_v9, 0.0 }
0x194b   : > { %4542 = vadd.xlane.f32.xlu0 %v4541_v11  ;;  %v4550_v12 = vsel %vm4447_vm6, %v9093_v10, 0.0 }
0x194c   : > { %4551 = vadd.xlane.f32.xlu1 %v4550_v12 }
0x194d   : > { %v9099_v14 = vpop.eup %8125 }
0x194e   : > { %v4553_v20 = vsel %vm4447_vm6, %v9099_v14, 0.0 }
0x194f   : > { %4554 = vadd.xlane.f32.xlu0 %v4553_v20 }
0x19bd   : > { %v4537_v6 = vpop.xlane.xlu0 %4536 }
0x19be   : > { %v4528_v4 = vpop.xlane.xlu1 %4527  ;;  %8127 = vrcp.f32 %v4537_v6 }
0x19bf   : > { %8129 = vrcp.f32 %v4528_v4 }
0x19c1   : > { %v4531_v19 = vpop.xlane.xlu0 %4530 }
0x19c2   : > { %v4522_v21 = vpop.xlane.xlu1 %4521  ;;  %8131 = vrcp.f32 %v4531_v19 }
0x19c3   : > { %8133 = vrcp.f32 %v4522_v21 }
0x19c6   : > { %v4534_v23 = vpop.xlane.xlu1 %4533  ;;  %v4525_v26 = vpop.xlane.xlu0 %4524 }
0x19c7   : > { %8135 = vrcp.f32 %v4534_v23 }
0x19c8   : > { %8137 = vrcp.f32 %v4525_v26 }
0x19cb   : > { %v8128_v29 = vpop.eup %8127 }
0x19cc   : > { %v8130_v24 = vpop.eup %8129  ;;  %v4567_v7 = vmul.f32 %v8128_v29, %v9055_v35 }
0x19cd   : > { %v4546_v27 = vpop.xlane.xlu1 %4545  ;;  %v4561_v46 = vmul.f32 %v8130_v24, %v9057_v33  ;;  %v4774_v33 = vsel %vm2239_vm4, %v9027_v34, 0 }
0x19ce   : > { %8139 = vrcp.f32 %v4546_v27  ;;  %v4583_v39 = vpack.c.bf16 %v4567_v7, %v4567_v7 }
0x19cf   : > { %v8132_v16 = vpop.eup %8131  ;;  %v4581_v35 = vpack.c.bf16 %v4561_v46, %v4561_v46 }
0x19d0   : > { %v4549_v30 = vpop.xlane.xlu0 %4548  ;;  %v8134_v5 = vpop.eup %8133  ;;  %v4563_v36 = vmul.f32 %v8132_v16, %v9063_v37  ;;  %v4717_v37 = vsel %vm2239_vm4, %v9025_v0, 0 }
0x19d1   : > { %v4540_v15 = vpop.xlane.xlu1 %4539  ;;  %v4557_v47 = vmul.f32 %v8134_v5, %v9065_v45 }
0x19d2   : > { %8141 = vrcp.f32 %v4540_v15 }
0x19d3   : > { %8143 = vrcp.f32 %v4549_v30 }
0x19d4   : > { %v8136_v22 = vpop.eup %8135  ;;  %v4543_v17 = vpop.xlane.xlu0 %4542 }
0x19d5   : > { %v8138_v31 = vpop.eup %8137  ;;  %8145 = vrcp.f32 %v4543_v17  ;;  %v4552_v32 = vpop.xlane.xlu1 %4551  ;;  %v4565_v38 = vmul.f32 %v8136_v22, %v8112_v41 }
0x19d6   : > { %8147 = vrcp.f32 %v4552_v32  ;;  %v4559_v48 = vmul.f32 %v8138_v31, %v9073_v52 }
0x19d7   : > { %v4582_v1 = vpack.c.bf16 %v4565_v38, %v4563_v36 }
0x19d8   : > { %v4555_v49 = vpop.xlane.xlu0 %4554  ;;  %v4580_v50 = vpack.c.bf16 %v4559_v48, %v4557_v47 }
0x19d9   : > { %8149 = vrcp.f32 %v4555_v49  ;;  %7698 = vmatprep.mubr.msk.bf16.mxu0 %vm4447_vm6, %v4582_v1  ;;  %v7043_v1 = vld [vmem:[%s9540_s8] ss:$0 sm:$0xff] }
0x19da   : > { %7690 = vmatprep.mubr.msk.bf16.mxu1 %vm4447_vm6, %v4580_v50  ;;  %7699 = vmatmul.mubr.msk.bf16.vlgmr.msra.gmra.mxu0 %vm4447_vm6, %v4583_v39 }
0x19db   : > { %7691 = vmatmul.mubr.msk.bf16.vlgmr.msra.gmra.mxu1 %vm4447_vm6, %v4581_v35  ;;  %7711 = vmatpush3.bf16.msra.mxu0 %v4774_v33  ;;  %v8140_v45 = vpop.eup %8139 }
0x19dc   : > { %7703 = vmatpush3.bf16.msra.mxu1 %v4717_v37  ;;  %7712 = vmatprep.subr.bf16.mxu0 %v9005_v18  ;;  %v4573_v34 = vmul.f32 %v8140_v45, %v9079_v59 }
0x19dd   : > { %7704 = vmatprep.subr.bf16.mxu1 %v9003_v25 }
0x19de   : > { %v4585_v60 = vpack.c.bf16 %v4573_v34, %v4573_v34 }
0x19df   : > { %7713 = vmatpush3.bf16.msra.mxu0 %v9005_v18  ;;  %v8142_v41 = vpop.eup %8141 }
0x19e0   : > { %7705 = vmatpush3.bf16.msra.mxu1 %v9003_v25  ;;  %v8144_v51 = vpop.eup %8143  ;;  %v4569_v0 = vmul.f32 %v8142_v41, %v9085_v3  ;;  %v8019_v3 = vld [vmem:[%s9539_s6 + $0x8] sm:$0xff]  }
0x19e1   : > { %v4575_v56 = vmul.f32 %v8144_v51, %v9083_v2  ;;  %7718 = vmatprep.subr.bf16.mxu1 %v8019_v3  ;;  %v8020_v2 = vld [vmem:[%s9539_s6] sm:$0xff]  }
0x19e2   : > { %v8146_v52 = vpop.eup %8145 }
0x19e3   : > { %v8148_v53 = vpop.eup %8147  ;;  %v4571_v55 = vmul.f32 %v8146_v52, %v9091_v9 }
0x19e4   : > { %v4577_v57 = vmul.f32 %v8148_v53, %v9093_v10 }
0x19e5   : > { %v4584_v58 = vpack.c.bf16 %v4571_v55, %v4569_v0 }
0x19e6   : > { %v8150_v18 = vpop.eup %8149  ;;  %v4586_v62 = vpack.c.bf16 %v4577_v57, %v4575_v56 }
0x19e7   : > { %7706 = vmatprep.mubr.msk.bf16.mxu1 %vm4447_vm6, %v4584_v58  ;;  %v4579_v25 = vmul.f32 %v8150_v18, %v9099_v14 }
0x19e8   : > { %7707 = vmatmul.mubr.msk.bf16.vlgmr.msra.gmra.mxu1 %vm4447_vm6, %v4585_v60  ;;  %7714 = vmatprep.mubr.msk.bf16.mxu0 %vm4447_vm6, %v4586_v62 }
0x19e9   : > { %v4587_v59 = vpack.c.bf16 %v4579_v25, %v4579_v25  ;;  %7719 = vmatpush3.bf16.msra.mxu1 %v8019_v3  ;;  %v8022_v3 = vld [vmem:[%s9541_s9] sm:$0xff]  }
0x19ea   : > { %7720 = vmatprep.subr.bf16.mxu1 %v8020_v2 }
0x19eb   : > { %7715 = vmatmul.mubr.msk.bf16.vlgmr.msra.gmra.mxu0 %vm4447_vm6, %v4587_v59  ;;  %v8021_v59 = vld [vmem:[%s9541_s9 + $0x8] sm:$0xff]  }
0x19ec   : > { %7726 = vmatprep.subr.bf16.mxu0 %v8021_v59 }
0x19ed   : > { %7721 = vmatpush3.bf16.msra.mxu1 %v8020_v2  ;;  %7727 = vmatpush3.bf16.msra.mxu0 %v8021_v59 }
0x19ee   : > { %7728 = vmatprep.subr.bf16.mxu0 %v8022_v3 }
0x19f1   : > { %7729 = vmatpush3.bf16.msra.mxu0 %v8022_v3 }
0x1a9a   : > { %v7700_v61 = vpop.f32.mrf.mxu0 }
0x1a9b   : > { %v7692_v8 = vpop.f32.mrf.mxu1 }
0x1a9c   : > { %v4696_v9 = vpop.f32.mrf.mxu0  ;;  %v4826_v19 = vadd.f32 %v7700_v61, %v7692_v8 }
0x1a9d   : > { %v4639_v10 = vpop.f32.mrf.mxu1 }
0x1a9e   : > { %v7701_v11 = vpop.f32.mrf.mxu0  ;;  %v4824_v23 = vadd.f32 %v4696_v9, %v4639_v10 }
0x1a9f   : > { %v7693_v12 = vpop.f32.mrf.mxu1 }
0x1aa0   : > { %v4699_v6 = vpop.f32.mrf.mxu0 }
0x1aa1   : > { %v4642_v14 = vpop.f32.mrf.mxu1 }
0x1aa2   : > { %v4825_v27 = vadd.f32 %v4699_v6, %v4642_v14 }
0x1aa8   : > { %v7708_v20 = vpop.f32.mrf.mxu1 }
0x1aa9   : > { %v4829_v29 = vadd.f32 %v7708_v20, %v4826_v19  ;;  %v4955_v19 = vrot.slane %v8962_v28, %v8632_v63 }
0x1aaa   : > { %v4753_v4 = vpop.f32.mrf.mxu1 }
0x1aab   : > { %v7716_v21 = vpop.f32.mrf.mxu0  ;;  %v4827_v24 = vadd.f32 %v4824_v23, %v4753_v4 }
0x1aac   : > { %v7709_v26 = vpop.f32.mrf.mxu1  ;;  %v4832_v22 = vadd.f32 %v7716_v21, %v4829_v29  ;;  %v4962_v29 = vrot.slane %v8962_v28, %v8733_v43  ;;  %v8024_v28 = vld [vmem:[%s9542_s11 + $0x30] sm:$0xff]  }
0x1aad   : > { %v4810_v30 = vpop.f32.mrf.mxu0 }
0x1aae   : > { %v4756_v15 = vpop.f32.mrf.mxu1  ;;  %v4830_v7 = vadd.f32 %v4827_v24, %v4810_v30  ;;  %v4834_v36 = vpack.c.bf16 %v4832_v22, %v4832_v22 }
0x1aaf   : > { %v4828_v16 = vadd.f32 %v4825_v27, %v4756_v15  ;;  %v7717_v5 = vpop.f32.mrf.mxu0 }
0x1ab1   : > { %v4813_v17 = vpop.f32.mrf.mxu0 }
0x1ab2   : > { %v4831_v31 = vadd.f32 %v4828_v16, %v4813_v17 }
0x1ab4   : > { %v4833_v32 = vpack.c.bf16 %v4831_v31, %v4830_v7  ;;  %v8023_v31 = vld [vmem:[%s9542_s11 + $0x38] sm:$0xff]  }
0x1ab5   : > { %7734 = vmatprep.subr.bf16.mxu1 %v8023_v31 }
0x1ab6   : > { %7722 = vmatprep.mubr.msk.bf16.mxu1 %vm1760_vm3, %v4833_v32  ;;  %v8025_v32 = vld [vmem:[%s9542_s11 + $0x28] sm:$0xff]  }
0x1ab7   : > { %7723 = vmatmul.mubr.msk.bf16.vlgmr.msra.gmra.mxu1 %vm1760_vm3, %v4834_v36  ;;  %v8026_v36 = vld [vmem:[%s9542_s11 + $0x20] sm:$0xff]  }
0x1ab8   : > { %7735 = vmatpush3.bf16.msra.mxu1 %v8023_v31 }
0x1ab9   : > { %7736 = vmatprep.subr.bf16.mxu1 %v8024_v28 }
0x1abc   : > { %7737 = vmatpush3.bf16.msra.mxu1 %v8024_v28 }
0x1abd   : > { %7738 = vmatprep.subr.bf16.mxu1 %v8025_v32 }
0x1ac0   : > { %7739 = vmatpush3.bf16.msra.mxu1 %v8025_v32 }
0x1ac1   : > { %7740 = vmatprep.subr.bf16.mxu1 %v8026_v36 }
0x1ac4   : > { %7741 = vmatpush3.bf16.msra.mxu1 %v8026_v36 }
0x1b77   : > { %v7724_v38 = vpop.f32.mrf.mxu1 }
0x1b78   : > { %v4903_v47 = vadd.f32 %v7724_v38, %v8946_v54  ;;  %v8027_v38 = vld [vmem:[%s9542_s11 + $0x18] sm:$0xff]  }
0x1b79   : > { %v4887_v46 = vpop.f32.mrf.mxu1  ;;  %7742 = vmatprep.subr.bf16.mxu1 %v8027_v38 }
0x1b7a   : > { %v4901_v48 = vadd.f32 %v4887_v46, %v8936_v44  ;;  %v9139_v35 = vadd.f32 %v7043_v1, %v4903_v47  ;;  %v8028_v46 = vld [vmem:[%s9542_s11 + $0x10] sm:$0xff]   ;;  %7743 = vmatpush3.bf16.msra.mxu1 %v8027_v38  ;;  %v8029_v47 = vld [vmem:[%s9542_s11 + $0x8] sm:$0xff]  }
0x1b7b   : > { %v7725_v49 = vpop.f32.mrf.mxu1  ;;  %7744 = vmatprep.subr.bf16.mxu1 %v8028_v46 }
0x1b7c   : > { %v9137_v50 = vadd.f32 %v7043_v1, %v4901_v48  ;;  %v4919_v54 = vsel %vm1760_vm3, %v9139_v35, 0.0  ;;  %v8030_v48 = vld [vmem:[%s9542_s11] sm:$0xff]  }
0x1b7d   : > { %v4890_v39 = vpop.f32.mrf.mxu1 }
0x1b7e   : > { %v4902_v33 = vadd.f32 %v4890_v39, %v8941_v13  ;;  %v4913_v37 = vsel %vm1760_vm3, %v9137_v50, 0.0  ;;  %7745 = vmatpush3.bf16.msra.mxu1 %v8028_v46 }
0x1b7f   : > { %4914 = vadd.xlane.f32.xlu1 %v4913_v37  ;;  %7746 = vmatprep.subr.bf16.mxu1 %v8029_v47 }
0x1b80   : > { %v9144_v45 = vadd.f32 %v7043_v1, %v4902_v33  ;;  %v7044_v1 = vld [vmem:[%s9543_s14] ss:$0 sm:$0xff] }
0x1b82   : > { %v4916_v44 = vsel %vm1760_vm3, %v9144_v45, 0.0  ;;  %7747 = vmatpush3.bf16.msra.mxu1 %v8029_v47 }
0x1b83   : > { %4920 = vadd.xlane.f32.xlu1 %v4919_v54  ;;  %4917 = vadd.xlane.f32.xlu0 %v4916_v44 }
0x1b84   : > { %7748 = vmatprep.subr.bf16.mxu1 %v8030_v48 }
0x1b86   : > { %7749 = vmatpush3.bf16.msra.mxu1 %v8030_v48 }
0x1c08   : > { %v4915_v41 = vpop.xlane.xlu1 %4914 }
0x1c09   : > { %v4922_v51 = vmul.f32 0.03125, %v4915_v41 }
0x1c0b   : > { %v4925_v52 = vsub.f32 %v9137_v50, %v4922_v51 }
0x1c0c   : > { %v4921_v13 = vpop.xlane.xlu1 %4920  ;;  %v4918_v34 = vpop.xlane.xlu0 %4917 }
0x1c0d   : > { %v4924_v53 = vmul.f32 0.03125, %v4921_v13  ;;  %v4923_v0 = vmul.f32 0.03125, %v4918_v34  ;;  %v4928_v55 = vmul.f32 %v4925_v52, %v4925_v52 }
0x1c0f   : > { %v4927_v56 = vsub.f32 %v9139_v35, %v4924_v53  ;;  %v4926_v57 = vsub.f32 %v9144_v45, %v4923_v0  ;;  %v4931_v58 = vsel %vm1760_vm3, %v4928_v55, 0.0 }
0x1c10   : > { %4932 = vadd.xlane.f32.xlu0 %v4931_v58 }
0x1c11   : > { %v4930_v18 = vmul.f32 %v4927_v56, %v4927_v56  ;;  %v4929_v60 = vmul.f32 %v4926_v57, %v4926_v57 }
0x1c13   : > { %v4937_v62 = vsel %vm1760_vm3, %v4930_v18, 0.0  ;;  %v4934_v25 = vsel %vm1760_vm3, %v4929_v60, 0.0 }
0x1c14   : > { %4938 = vadd.xlane.f32.xlu0 %v4937_v62  ;;  %4935 = vadd.xlane.f32.xlu1 %v4934_v25 }
0x1c99   : > { %v4933_v2 = vpop.xlane.xlu0 %4932 }
0x1c9a   : > { %v4940_v61 = vmul.f32 0.03125, %v4933_v2 }
0x1c9c   : > { %v4943_v8 = vadd.f32 1e-05, %v4940_v61 }
0x1c9d   : > { %v4936_v9 = vpop.xlane.xlu1 %4935  ;;  %v4939_v10 = vpop.xlane.xlu0 %4938 }
0x1c9e   : > { %8151 = vrsqrt.f32 %v4943_v8  ;;  %v4941_v11 = vmul.f32 0.03125, %v4936_v9  ;;  %v4942_v12 = vmul.f32 0.03125, %v4939_v10 }
0x1ca0   : > { %v4944_v14 = vadd.f32 1e-05, %v4941_v11  ;;  %v4945_v20 = vadd.f32 1e-05, %v4942_v12 }
0x1ca2   : > { %8153 = vrsqrt.f32 %v4944_v14 }
0x1ca3   : > { %8155 = vrsqrt.f32 %v4945_v20 }
0x1cab   : > { %v8152_v6 = vpop.eup %8151 }
0x1cac   : > { %v4949_v4 = vmul.f32 %v8152_v6, %v4925_v52 }
0x1cae   : > { %v4956_v27 = vmul.f32 %v4955_v19, %v4949_v4 }
0x1caf   : > { %v8154_v21 = vpop.eup %8153 }
0x1cb0   : > { %v8156_v23 = vpop.eup %8155  ;;  %v4950_v26 = vmul.f32 %v8154_v21, %v4926_v57  ;;  %v4963_v16 = vadd.f32 %v4962_v29, %v4956_v27 }
0x1cb1   : > { %v4951_v30 = vmul.f32 %v8156_v23, %v4927_v56 }
0x1cb2   : > { %v4957_v24 = vmul.f32 %v4955_v19, %v4950_v26 }
0x1cb3   : > { %v4958_v15 = vmul.f32 %v4955_v19, %v4951_v30  ;;  %v7057_v30 = vld [vmem:[%s9544_s15] ss:$0 sm:$0xff] }
0x1cb4   : > { %v4964_v5 = vadd.f32 %v4962_v29, %v4957_v24 }
0x1cb5   : > { %v4965_v22 = vadd.f32 %v4962_v29, %v4958_v15 }
0x1cb6   : > { %v4966_v17 = vpack.c.bf16 %v4964_v5, %v4963_v16 }
0x1cb7   : > { %v4967_v7 = vpack.c.bf16 %v4965_v22, %v4965_v22 }
0x1cb8   : > { %7730 = vmatprep.mubr.msk.bf16.mxu0 %vm1760_vm3, %v4966_v17 }
0x1cb9   : > { %7731 = vmatmul.mubr.msk.bf16.vlgmr.msra.gmra.mxu0 %vm1760_vm3, %v4967_v7 }
0x1d79   : > { %v7732_v49 = vpop.f32.mrf.mxu0 }
0x1d7a   : > { %v5035_v39 = vadd.f32 %v7732_v49, %v7044_v1 }
0x1d7b   : > { %v5026_v33 = vpop.f32.mrf.mxu0 }
0x1d7c   : > { %v5042_v37 = vmul.f32 %v5035_v39, %v5035_v39  ;;  %v5027_v54 = vadd.f32 %v7044_v1, %v5026_v33 }
0x1d7d   : > { %v7733_v44 = vpop.f32.mrf.mxu0 }
0x1d7e   : > { %v5045_v41 = vmul.f32 %v5042_v37, %v5035_v39  ;;  %v5040_v51 = vmul.f32 %v5027_v54, %v5027_v54  ;;  %v8031_v44 = vld [vmem:[%s9532_s5 + $0x18] sm:$0xff]  }
0x1d7f   : > { %v5029_v52 = vpop.f32.mrf.mxu0  ;;  %7754 = vmatprep.subr.bf16.mxu0 %v8031_v44 }
0x1d80   : > { %v5048_v13 = vmul.f32 0.044715, %v5045_v41  ;;  %v5043_v34 = vmul.f32 %v5040_v51, %v5027_v54  ;;  %v5030_v53 = vadd.f32 %v7044_v1, %v5029_v52  ;;  %v8032_v41 = vld [vmem:[%s9532_s5 + $0x10] sm:$0xff]   ;;  %7755 = vmatpush3.bf16.msra.mxu0 %v8031_v44  ;;  %v8033_v51 = vld [vmem:[%s9533_s4 + $0x18] sm:$0xff]  }
0x1d81   : > { %7756 = vmatprep.subr.bf16.mxu0 %v8032_v41 }
0x1d82   : > { %v5051_v0 = vadd.f32 %v5048_v13, %v5035_v39  ;;  %v5046_v55 = vmul.f32 0.044715, %v5043_v34  ;;  %v5041_v56 = vmul.f32 %v5030_v53, %v5030_v53 }
0x1d84   : > { %v5054_v57 = vmul.f32 0.7978846, %v5051_v0  ;;  %v5049_v58 = vadd.f32 %v5046_v55, %v5027_v54  ;;  %v5044_v18 = vmul.f32 %v5041_v56, %v5030_v53  ;;  %7757 = vmatpush3.bf16.msra.mxu0 %v8032_v41 }
0x1d85   : > { %7762 = vmatprep.subr.bf16.mxu0 %v8033_v51 }
0x1d86   : > { %8157 = vtanh.f32 %v5054_v57  ;;  %v5052_v60 = vmul.f32 0.7978846, %v5049_v58  ;;  %v5047_v62 = vmul.f32 0.044715, %v5044_v18  ;;  %v9199_v18 = vld [vmem:[%s9535_s7 + $0x4] sm:$0xf] }
0x1d88   : > { %8159 = vtanh.f32 %v5052_v60  ;;  %v5050_v25 = vadd.f32 %v5047_v62, %v5030_v53 }
0x1d8a   : > { %v5053_v59 = vmul.f32 0.7978846, %v5050_v25  ;;  %v5271_v25 = vrot.slane %v9199_v18, %v8599_v40 }
0x1d8c   : > { %8161 = vtanh.f32 %v5053_v59 }
0x1d93   : > { %v8158_v3 = vpop.eup %8157 }
0x1d94   : > { %v5060_v61 = vadd.f32 1.0, %v8158_v3 }
0x1d95   : > { %v8160_v2 = vpop.eup %8159 }
0x1d96   : > { %v5058_v8 = vadd.f32 1.0, %v8160_v2  ;;  %v5063_v10 = vmul.f32 0.5, %v5060_v61 }
0x1d98   : > { %v5061_v12 = vmul.f32 0.5, %v5058_v8  ;;  %v5066_v20 = vmul.f32 %v5063_v10, %v5035_v39  ;;  %v5278_v8 = vrot.slane %v9199_v18, %v8605_v42 }
0x1d99   : > { %v8162_v9 = vpop.eup %8161 }
0x1d9a   : > { %v5059_v11 = vadd.f32 1.0, %v8162_v9  ;;  %v5064_v6 = vmul.f32 %v5061_v12, %v5027_v54  ;;  %v5068_v21 = vpack.c.bf16 %v5066_v20, %v5066_v20 }
0x1d9c   : > { %v5062_v14 = vmul.f32 0.5, %v5059_v11 }
0x1d9e   : > { %v5065_v4 = vmul.f32 %v5062_v14, %v5030_v53 }
0x1da0   : > { %v5067_v19 = vpack.c.bf16 %v5065_v4, %v5064_v6 }
0x1da2   : > { %7750 = vmatprep.mubr.bf16.mxu1 %v5067_v19  ;;  %v8034_v19 = vld [vmem:[%s9533_s4 + $0x10] sm:$0xff]   ;;  %s9547_s4 = sld [smem:[#allocation6_spill]] }
0x1da3   : > { %7751 = vmatmul.mubr.bf16.vlgmr.msra.gmra.mxu1 %v5068_v21  ;;  %v8035_v21 = vld [vmem:[%s9534_s0 + $0x18] sm:$0xff]  }
0x1da8   : > { %s1527_s5 = scalar_lea.vmem %s9547_s4, %s8910_s2 }
0x1e63   : > { %v7752_v23 = vpop.f32.mrf.mxu1 }
0x1e64   : > { %v5167_v27 = vadd.f32 %v7752_v23, %v9139_v35  ;;  %v8036_v23 = vld [vmem:[%s9534_s0 + $0x10] sm:$0xff]   ;;  %s9545_s0 = sld [smem:[#allocation38_spill]] }
0x1e65   : > { %v5151_v26 = vpop.f32.mrf.mxu1 }
0x1e66   : > { %v5165_v29 = vadd.f32 %v5151_v26, %v9137_v50  ;;  %v9178_v5 = vadd.f32 %v7057_v30, %v5167_v27  ;;  %v7071_v26 = vld [vmem:[%s9536_s10 + $0x4] sm:$0x7] }
0x1e67   : > { %v7753_v24 = vpop.f32.mrf.mxu1 }
0x1e68   : > { %v9176_v15 = vadd.f32 %v7057_v30, %v5165_v29  ;;  %v5235_v35 = vsel %vm1760_vm3, %v9178_v5, 0.0 }
0x1e69   : > { %v5154_v16 = vpop.f32.mrf.mxu1 }
0x1e6a   : > { %v5166_v22 = vadd.f32 %v5154_v16, %v9144_v45  ;;  %v5229_v17 = vsel %vm1760_vm3, %v9176_v15, 0.0 }
0x1e6b   : > { %5230 = vadd.xlane.f32.xlu1 %v5229_v17  ;;  %v5357_v17 = vrot.slane %v7071_v26, %v8605_v42 }
0x1e6c   : > { %v9183_v7 = vadd.f32 %v7057_v30, %v5166_v22  ;;  %v5287_v30 = vrot.slane %v7071_v26, %v8599_v40 }
0x1e6e   : > { %v5232_v50 = vsel %vm1760_vm3, %v9183_v7, 0.0 }
0x1e6f   : > { %5236 = vadd.xlane.f32.xlu1 %v5235_v35  ;;  %5233 = vadd.xlane.f32.xlu0 %v5232_v50 }
0x1ef4   : > { %v5231_v31 = vpop.xlane.xlu1 %5230 }
0x1ef5   : > { %v5238_v28 = vmul.f32 0.03125, %v5231_v31  ;;  %v9218_v31 = vld [vmem:[%s9537_s26] ss:$0 sm:$0xff] }
0x1ef7   : > { %v5241_v32 = vsub.f32 %v9176_v15, %v5238_v28 }
0x1ef8   : > { %v5237_v45 = vpop.xlane.xlu1 %5236  ;;  %v5234_v36 = vpop.xlane.xlu0 %5233 }
0x1ef9   : > { %v5240_v38 = vmul.f32 0.03125, %v5237_v45  ;;  %v5239_v46 = vmul.f32 0.03125, %v5234_v36  ;;  %v5244_v47 = vmul.f32 %v5241_v32, %v5241_v32 }
0x1efb   : > { %v5243_v48 = vsub.f32 %v9178_v5, %v5240_v38  ;;  %v5242_v1 = vsub.f32 %v9183_v7, %v5239_v46  ;;  %v5247_v49 = vsel %vm1760_vm3, %v5244_v47, 0.0 }
0x1efc   : > { %5248 = vadd.xlane.f32.xlu0 %v5247_v49 }
0x1efd   : > { %v5246_v39 = vmul.f32 %v5243_v48, %v5243_v48  ;;  %v5245_v33 = vmul.f32 %v5242_v1, %v5242_v1 }
0x1eff   : > { %v5253_v37 = vsel %vm1760_vm3, %v5246_v39, 0.0  ;;  %v5250_v54 = vsel %vm1760_vm3, %v5245_v33, 0.0 }
0x1f00   : > { %5254 = vadd.xlane.f32.xlu0 %v5253_v37  ;;  %5251 = vadd.xlane.f32.xlu1 %v5250_v54 }
0x1f85   : > { %v5249_v52 = vpop.xlane.xlu0 %5248 }
0x1f86   : > { %v5256_v13 = vmul.f32 0.03125, %v5249_v52 }
0x1f88   : > { %v5259_v34 = vadd.f32 1e-05, %v5256_v13 }
0x1f89   : > { %v5252_v53 = vpop.xlane.xlu1 %5251  ;;  %v5255_v0 = vpop.xlane.xlu0 %5254 }
0x1f8a   : > { %8163 = vrsqrt.f32 %v5259_v34  ;;  %v5257_v55 = vmul.f32 0.03125, %v5252_v53  ;;  %v5258_v56 = vmul.f32 0.03125, %v5255_v0 }
0x1f8c   : > { %v5260_v57 = vadd.f32 1e-05, %v5257_v55  ;;  %v5261_v58 = vadd.f32 1e-05, %v5258_v56 }
0x1f8e   : > { %8165 = vrsqrt.f32 %v5260_v57 }
0x1f8f   : > { %8167 = vrsqrt.f32 %v5261_v58  ;;  %v8237_v58 = vld [vmem:[%s9537_s26 + $0x2] ss:$0 sm:$0xff] }
0x1f97   : > { %v8164_v60 = vpop.eup %8163 }
0x1f98   : > { %v5265_v62 = vmul.f32 %v8164_v60, %v5241_v32  ;;  %v9222_v32 = vld [vmem:[%s9537_s26 + $0x1] ss:$0 sm:$0xff] }
0x1f9a   : > { %v5272_v61 = vmul.f32 %v5271_v25, %v5265_v62 }
0x1f9b   : > { %v8166_v59 = vpop.eup %8165 }
0x1f9c   : > { %v8168_v3 = vpop.eup %8167  ;;  %v5266_v2 = vmul.f32 %v8166_v59, %v5242_v1  ;;  %v5279_v12 = vadd.f32 %v5278_v8, %v5272_v61  ;;  %v8238_v59 = vld [vmem:[%s9537_s26 + $0x3] ss:$0 sm:$0xff] }
0x1f9d   : > { %v5267_v9 = vmul.f32 %v8168_v3, %v5243_v48 }
0x1f9e   : > { %v5273_v10 = vmul.f32 %v5271_v25, %v5266_v2 }
0x1f9f   : > { %v5274_v11 = vmul.f32 %v5271_v25, %v5267_v9 }
0x1fa0   : > { %v5280_v14 = vadd.f32 %v5278_v8, %v5273_v10 }
0x1fa1   : > { %v5281_v20 = vadd.f32 %v5278_v8, %v5274_v11 }
0x1fa2   : > { %v5282_v6 = vpack.c.bf16 %v5280_v14, %v5279_v12 }
0x1fa3   : > { %v5283_v4 = vpack.c.bf16 %v5281_v20, %v5281_v20 }
0x1fa4   : > { %7758 = vmatprep.mubr.msk.bf16.mxu0 %vm1760_vm3, %v5282_v6 }
0x1fa5   : > { %7759 = vmatmul.mubr.msk.bf16.vlgmr.msra.gmra.mxu0 %vm1760_vm3, %v5283_v4 }
0x1fa6   : > { %7763 = vmatpush3.bf16.msra.mxu0 %v8033_v51  ;;  %7766 = vmatprep.mubr.msk.bf16.mxu0 %vm1760_vm3, %v5282_v6  ;;  %v5421_v51 = vrot.slane %v7071_v26, %v8632_v63 }
0x1fa7   : > { %7764 = vmatprep.subr.bf16.mxu0 %v8034_v19 }
0x1faa   : > { %7765 = vmatpush3.bf16.msra.mxu0 %v8034_v19 }
0x1fab   : > { %7770 = vmatprep.subr.bf16.mxu0 %v8035_v21 }
0x1fad   : > { %7767 = vmatmul.mubr.msk.bf16.vlgmr.msra.gmra.mxu0 %vm1760_vm3, %v5283_v4 }
0x1fae   : > { %7771 = vmatpush3.bf16.msra.mxu0 %v8035_v21  ;;  %7774 = vmatprep.mubr.msk.bf16.mxu0 %vm1760_vm3, %v5282_v6 }
0x1faf   : > { %7772 = vmatprep.subr.bf16.mxu0 %v8036_v23 }
0x1fb2   : > { %7773 = vmatpush3.bf16.msra.mxu0 %v8036_v23 }
0x1fb5   : > { %7775 = vmatmul.mubr.msk.bf16.vlgmr.msra.gmra.mxu0 %vm1760_vm3, %v5283_v4 }
0x2065   : > { %v7760_v27 = vpop.f32.mrf.mxu0 }
0x2066   : > { %v5349_v52 = vadd.f32 %v7760_v27, %v5287_v30 }
0x2067   : > { %v5340_v29 = vpop.f32.mrf.mxu0 }
0x2068   : > { %v5341_v16 = vadd.f32 %v5340_v29, %v5287_v30  ;;  %v5484_v56 = vmul.f32 %v9218_v31, %v5349_v52  ;;  %v5487_v57 = vmul.f32 %v9222_v32, %v5349_v52  ;;  %v5490_v27 = vmul.f32 %v8237_v58, %v5349_v52 }
0x2069   : > { %v7761_v24 = vpop.f32.mrf.mxu0  ;;  %v5493_v29 = vmul.f32 %v8238_v59, %v5349_v52 }
0x206a   : > { %v5482_v28 = vmul.f32 %v9218_v31, %v5341_v16  ;;  %v5485_v45 = vmul.f32 %v9222_v32, %v5341_v16  ;;  %v5488_v8 = vmul.f32 %v8237_v58, %v5341_v16  ;;  %v5507_v11 = vpack.c.bf16 %v5484_v56, %v5484_v56 }
0x206b   : > { %v5343_v22 = vpop.f32.mrf.mxu0  ;;  %v5509_v12 = vpack.c.bf16 %v5487_v57, %v5487_v57  ;;  %v5491_v14 = vmul.f32 %v8238_v59, %v5341_v16  ;;  %v5511_v16 = vpack.c.bf16 %v5490_v27, %v5490_v27 }
0x206c   : > { %v5344_v35 = vadd.f32 %v5343_v22, %v5287_v30 }
0x206d   : > { %v7768_v50 = vpop.f32.mrf.mxu0 }
0x206e   : > { %v5483_v36 = vmul.f32 %v9218_v31, %v5344_v35  ;;  %v5486_v38 = vmul.f32 %v9222_v32, %v5344_v35  ;;  %v5413_v40 = vadd.f32 %v7768_v50, %v5357_v17  ;;  %v5489_v60 = vmul.f32 %v8237_v58, %v5344_v35 }
0x206f   : > { %v5404_v46 = vpop.f32.mrf.mxu0  ;;  %v5492_v61 = vmul.f32 %v8238_v59, %v5344_v35 }
0x2070   : > { %v5506_v47 = vpack.c.bf16 %v5483_v36, %v5482_v28  ;;  %v5508_v48 = vpack.c.bf16 %v5486_v38, %v5485_v45  ;;  %v5515_v1 = vpack.c.bf16 %v5413_v40, %v5413_v40  ;;  %v5405_v33 = vadd.f32 %v5404_v46, %v5357_v17 }
0x2071   : > { %v7769_v42 = vpop.f32.mrf.mxu0  ;;  %v5510_v20 = vpack.c.bf16 %v5489_v60, %v5488_v8  ;;  %v5512_v4 = vpack.c.bf16 %v5492_v61, %v5491_v14 }
0x2072   : > { %7782 = vmatprep.mubr.msk.bf16.mxu0 %vm1760_vm3, %v5506_v47  ;;  %7790 = vmatprep.mubr.msk.bf16.mxu1 %vm1760_vm3, %v5508_v48  ;;  %v5526_v39 = vsel %vm1760_vm3, %v5515_v1, 0 }
0x2073   : > { %7898 = vmatprep.subr.msk.bf16.mxu0 %vm1760_vm3, %v5515_v1  ;;  %7900 = vmatprep.subr.msk.bf16.mxu1 %vm1760_vm3, %v5515_v1  ;;  %v5407_v49 = vpop.f32.mrf.mxu0 }
0x2074   : > { %v5408_v37 = vadd.f32 %v5407_v49, %v5357_v17  ;;  %7779 = vmatpush3.bf16.xpose.msra.mxu0 %v5526_v39  ;;  %7787 = vmatpush3.bf16.xpose.msra.mxu1 %v5526_v39  ;;  %v5513_v17 = vpack.c.bf16 %v5493_v29, %v5493_v29 }
0x2075   : > { %v7776_v54 = vpop.f32.mrf.mxu0 }
0x2076   : > { %v5514_v44 = vpack.c.bf16 %v5408_v37, %v5405_v33  ;;  %v5477_v6 = vadd.f32 %v7776_v54, %v5421_v51  ;;  %v8239_v37 = vld [vmem:[%s9538_s3] ss:$0 sm:$0xff]  ;;  %s9546_s3 = sld [smem:[#allocation39_spill]] }
0x2077   : > { %v5468_v41 = vpop.f32.mrf.mxu0 }
0x2078   : > { %7899 = vmatprep.subr.msk.bf16.mxu0 %vm1760_vm3, %v5514_v44  ;;  %7901 = vmatprep.subr.msk.bf16.mxu1 %vm1760_vm3, %v5514_v44  ;;  %v5469_v34 = vadd.f32 %v5468_v41, %v5421_v51  ;;  %v5523_v0 = vsel %vm1760_vm3, %v5514_v44, 0  ;;  %v5496_v19 = vmul.f32 %v9218_v31, %v5477_v6  ;;  %v5499_v21 = vmul.f32 %v9222_v32, %v5477_v6 }
0x2079   : > { %v7777_v13 = vpop.f32.mrf.mxu0  ;;  %v5502_v45 = vmul.f32 %v8237_v58, %v5477_v6  ;;  %v5505_v40 = vmul.f32 %v8238_v59, %v5477_v6 }
0x207a   : > { %v5500_v62 = vmul.f32 %v8237_v58, %v5469_v34  ;;  %v5503_v3 = vmul.f32 %v8238_v59, %v5469_v34  ;;  %v5903_v23 = vpack.c.bf16 %v5496_v19, %v5496_v19  ;;  %v5905_v26 = vpack.c.bf16 %v5499_v21, %v5499_v21 }
0x207b   : > { %v5471_v53 = vpop.f32.mrf.mxu0  ;;  %v5494_v22 = vmul.f32 %v9218_v31, %v5469_v34  ;;  %v5497_v35 = vmul.f32 %v9222_v32, %v5469_v34 }
0x207c   : > { %v5472_v55 = vadd.f32 %v5471_v53, %v5421_v51  ;;  %7781 = vmatpush3.bf16.xpose.msra.mxu0 %v5523_v0  ;;  %7789 = vmatpush3.bf16.xpose.msra.mxu1 %v5523_v0  ;;  %v5917_v50 = vsel %vm2239_vm4, %v5903_v23, 0  ;;  %v5974_v36 = vsel %vm2239_vm4, %v5905_v26, 0 }
0x207d   : > { %7902 = vmatprep.subr.msk.bf16.mxu0 %vm1760_vm3, %v5515_v1  ;;  %7904 = vmatprep.subr.msk.bf16.mxu1 %vm1760_vm3, %v5515_v1 }
0x207e   : > { %v5501_v25 = vmul.f32 %v8237_v58, %v5472_v55  ;;  %v5504_v2 = vmul.f32 %v8238_v59, %v5472_v55  ;;  %v5495_v30 = vmul.f32 %v9218_v31, %v5472_v55  ;;  %v5498_v24 = vmul.f32 %v9222_v32, %v5472_v55 }
0x207f   : > { %v9264_v31 = vpack.c.bf16 %v5502_v45, %v5502_v45  ;;  %v9266_v32 = vpack.c.bf16 %v5505_v40, %v5505_v40 }
0x2080   : > { %v9242_v9 = vpack.c.bf16 %v5501_v25, %v5500_v62  ;;  %v9244_v10 = vpack.c.bf16 %v5504_v2, %v5503_v3  ;;  %v5902_v28 = vpack.c.bf16 %v5495_v30, %v5494_v22  ;;  %v5904_v38 = vpack.c.bf16 %v5498_v24, %v5497_v35 }
0x2083   : > { %7783 = vmatmul.mubr.msk.bf16.vlgmr.msra.gmra.mxu0 %vm1760_vm3, %v5507_v11  ;;  %7791 = vmatmul.mubr.msk.bf16.vlgmr.msra.gmra.mxu1 %vm1760_vm3, %v5509_v12 }
0x2084   : > { %7795 = vmatpush3.bf16.xpose.msra.mxu0 %v5526_v39  ;;  %7798 = vmatprep.mubr.msk.bf16.mxu0 %vm1760_vm3, %v5510_v20 }
0x2085   : > { %7803 = vmatpush3.bf16.xpose.msra.mxu1 %v5526_v39  ;;  %7806 = vmatprep.mubr.msk.bf16.mxu1 %vm1760_vm3, %v5512_v4 }
0x2086   : > { %7903 = vmatprep.subr.msk.bf16.mxu0 %vm1760_vm3, %v5514_v44  ;;  %7905 = vmatprep.subr.msk.bf16.mxu1 %vm1760_vm3, %v5514_v44 }
0x208c   : > { %7797 = vmatpush3.bf16.xpose.msra.mxu0 %v5523_v0 }
0x208d   : > { %7805 = vmatpush3.bf16.xpose.msra.mxu1 %v5523_v0  ;;  %7906 = vmatprep.subr.msk.bf16.mxu0 %vm2239_vm4, %v5903_v23 }
0x208e   : > { %7907 = vmatprep.subr.msk.bf16.mxu1 %vm2239_vm4, %v5905_v26 }
0x2093   : > { %7799 = vmatmul.mubr.msk.bf16.vlgmr.msra.gmra.mxu0 %vm1760_vm3, %v5511_v16 }
0x2094   : > { %7807 = vmatmul.mubr.msk.bf16.vlgmr.msra.gmra.mxu1 %vm1760_vm3, %v5513_v17  ;;  %7811 = vmatpush3.bf16.msra.mxu0 %v5917_v50 }
0x2095   : > { %7819 = vmatpush3.bf16.msra.mxu1 %v5974_v36  ;;  %7812 = vmatprep.subr.bf16.mxu0 %v5902_v28 }
0x2096   : > { %7820 = vmatprep.subr.bf16.mxu1 %v5904_v38 }
0x2098   : > { %7813 = vmatpush3.bf16.msra.mxu0 %v5902_v28 }
0x2099   : > { %7821 = vmatpush3.bf16.msra.mxu1 %v5904_v38  ;;  %7908 = vmatprep.subr.msk.bf16.mxu0 %vm2239_vm4, %v9264_v31 }
0x209a   : > { %7909 = vmatprep.subr.msk.bf16.mxu1 %vm2239_vm4, %v9266_v32 }
0x2143   : > { %v7784_v46 = vpop.f32.mrf.mxu0  ;;  %v7792_v47 = vpop.f32.mrf.mxu1 }
0x2144   : > { %v5740_v48 = vmul.f32 0.35355338, %v7784_v46  ;;  %v5743_v1 = vmul.f32 0.35355338, %v7792_v47 }
0x2145   : > { %v5562_v42 = vpop.f32.mrf.mxu0  ;;  %v5616_v49 = vpop.f32.mrf.mxu1 }
0x2146   : > { %v5738_v39 = vmul.f32 0.35355338, %v5562_v42  ;;  %v5741_v33 = vmul.f32 0.35355338, %v5616_v49  ;;  %v5755_v54 = vadd.f32 %v8239_v37, %v5743_v1  ;;  %v5752_v44 = vadd.f32 %v8239_v37, %v5740_v48 }
0x2147   : > { %v7785_v41 = vpop.f32.mrf.mxu0  ;;  %v7793_v51 = vpop.f32.mrf.mxu1 }
0x2148   : > { %v5777_v52 = vsel %vm4447_vm6, %v5755_v54, -inf  ;;  %v5768_v13 = vsel %vm4447_vm6, %v5752_v44, -inf  ;;  %v5753_v34 = vadd.f32 %v8239_v37, %v5741_v33  ;;  %v5750_v53 = vadd.f32 %v8239_v37, %v5738_v39 }
0x2149   : > { %5778 = vmax.xlane.f32.xlu0 %v5777_v52  ;;  %v5619_v0 = vpop.f32.mrf.mxu1  ;;  %5769 = vmax.xlane.f32.xlu1 %v5768_v13  ;;  %v5565_v55 = vpop.f32.mrf.mxu0 }
0x214a   : > { %v5742_v56 = vmul.f32 0.35355338, %v5619_v0  ;;  %v5739_v57 = vmul.f32 0.35355338, %v5565_v55  ;;  %v5771_v58 = vsel %vm4447_vm6, %v5753_v34, -inf  ;;  %v5762_v60 = vsel %vm4447_vm6, %v5750_v53, -inf }
0x214c   : > { %v5754_v62 = vadd.f32 %v8239_v37, %v5742_v56  ;;  %v5751_v25 = vadd.f32 %v8239_v37, %v5739_v57 }
0x214d   : > { %5772 = vmax.xlane.f32.xlu0 %v5771_v58  ;;  %5763 = vmax.xlane.f32.xlu1 %v5762_v60 }
0x214e   : > { %v5774_v59 = vsel %vm4447_vm6, %v5754_v62, -inf  ;;  %v5765_v3 = vsel %vm4447_vm6, %v5751_v25, -inf }
0x2151   : > { %5775 = vmax.xlane.f32.xlu1 %v5774_v59  ;;  %5766 = vmax.xlane.f32.xlu0 %v5765_v3 }
0x2153   : > { %v7800_v2 = vpop.f32.mrf.mxu0 }
0x2154   : > { %v5746_v61 = vmul.f32 0.35355338, %v7800_v2  ;;  %v7808_v8 = vpop.f32.mrf.mxu1 }
0x2155   : > { %v5670_v11 = vpop.f32.mrf.mxu0  ;;  %v5749_v24 = vmul.f32 0.35355338, %v7808_v8 }
0x2156   : > { %v5744_v12 = vmul.f32 0.35355338, %v5670_v11  ;;  %v5724_v14 = vpop.f32.mrf.mxu1  ;;  %v5758_v20 = vadd.f32 %v8239_v37, %v5746_v61 }
0x2157   : > { %v5747_v6 = vmul.f32 0.35355338, %v5724_v14  ;;  %v7801_v4 = vpop.f32.mrf.mxu0  ;;  %v9288_v45 = vadd.f32 %v8239_v37, %v5749_v24 }
0x2158   : > { %v7809_v19 = vpop.f32.mrf.mxu1  ;;  %v5786_v21 = vsel %vm4447_vm6, %v5758_v20, -inf  ;;  %v5756_v23 = vadd.f32 %v8239_v37, %v5744_v12 }
0x2159   : > { %5787 = vmax.xlane.f32.xlu1 %v5786_v21  ;;  %v5673_v26 = vpop.f32.mrf.mxu0  ;;  %v5759_v27 = vadd.f32 %v8239_v37, %v5747_v6  ;;  %v5795_v38 = vsel %vm4447_vm6, %v9288_v45, -inf }
0x215a   : > { %v5727_v29 = vpop.f32.mrf.mxu1  ;;  %v5745_v30 = vmul.f32 0.35355338, %v5673_v26  ;;  %v5780_v17 = vsel %vm4447_vm6, %v5756_v23, -inf }
0x215b   : > { %v5748_v16 = vmul.f32 0.35355338, %v5727_v29  ;;  %v5789_v22 = vsel %vm4447_vm6, %v5759_v27, -inf }
0x215c   : > { %5790 = vmax.xlane.f32.xlu0 %v5789_v22  ;;  %v9282_v35 = vadd.f32 %v8239_v37, %v5745_v30 }
0x215d   : > { %5781 = vmax.xlane.f32.xlu1 %v5780_v17  ;;  %v9284_v50 = vadd.f32 %v8239_v37, %v5748_v16 }
0x215e   : > { %v5783_v28 = vsel %vm4447_vm6, %v9282_v35, -inf }
0x215f   : > { %v5792_v36 = vsel %vm4447_vm6, %v9284_v50, -inf }
0x2160   : > { %5784 = vmax.xlane.f32.xlu0 %v5783_v28 }
0x2161   : > { %5793 = vmax.xlane.f32.xlu1 %v5792_v36 }
0x2164   : > { %5796 = vmax.xlane.f32.xlu0 %v5795_v38 }
0x21d2   : > { %v5779_v40 = vpop.xlane.xlu0 %5778  ;;  %v5770_v46 = vpop.xlane.xlu1 %5769 }
0x21d3   : > { %v5803_v47 = vsub.f32 %v5755_v54, %v5779_v40  ;;  %v5800_v48 = vsub.f32 %v5752_v44, %v5770_v46 }
0x21d5   : > { %v5820_v1 = vmul.f32 1.442695, %v5803_v47  ;;  %v5814_v42 = vmul.f32 1.442695, %v5800_v48 }
0x21d6   : > { %v5773_v49 = vpop.xlane.xlu0 %5772  ;;  %v5764_v39 = vpop.xlane.xlu1 %5763 }
0x21d7   : > { %8169 = vpow2.f32 %v5820_v1  ;;  %v5801_v33 = vsub.f32 %v5753_v34, %v5773_v49  ;;  %v5798_v37 = vsub.f32 %v5750_v53, %v5764_v39 }
0x21d8   : > { %8171 = vpow2.f32 %v5814_v42 }
0x21d9   : > { %v5816_v41 = vmul.f32 1.442695, %v5801_v33  ;;  %v5810_v51 = vmul.f32 1.442695, %v5798_v37 }
0x21da   : > { %v5776_v52 = vpop.xlane.xlu1 %5775  ;;  %v5767_v13 = vpop.xlane.xlu0 %5766 }
0x21db   : > { %8173 = vpow2.f32 %v5816_v41  ;;  %v5802_v0 = vsub.f32 %v5754_v62, %v5776_v52  ;;  %v5799_v55 = vsub.f32 %v5751_v25, %v5767_v13 }
0x21dc   : > { %8175 = vpow2.f32 %v5810_v51 }
0x21dd   : > { %v5818_v56 = vmul.f32 1.442695, %v5802_v0  ;;  %v5812_v57 = vmul.f32 1.442695, %v5799_v55 }
0x21df   : > { %8177 = vpow2.f32 %v5818_v56 }
0x21e0   : > { %8179 = vpow2.f32 %v5812_v57 }
0x21e2   : > { %v5788_v54 = vpop.xlane.xlu1 %5787 }
0x21e3   : > { %v5806_v44 = vsub.f32 %v5758_v20, %v5788_v54 }
0x21e4   : > { %v9294_v58 = vpop.eup %8169 }
0x21e5   : > { %v9296_v60 = vpop.eup %8171  ;;  %v5826_v34 = vmul.f32 1.442695, %v5806_v44  ;;  %v5791_v53 = vpop.xlane.xlu0 %5790  ;;  %v5849_v59 = vsel %vm4447_vm6, %v9294_v58, 0.0 }
0x21e6   : > { %v5807_v3 = vsub.f32 %v5759_v27, %v5791_v53  ;;  %v5840_v62 = vsel %vm4447_vm6, %v9296_v60, 0.0  ;;  %v5782_v25 = vpop.xlane.xlu1 %5781  ;;  %5850 = vadd.xlane.f32.xlu0 %v5849_v59 }
0x21e7   : > { %8181 = vpow2.f32 %v5826_v34  ;;  %5841 = vadd.xlane.f32.xlu1 %v5840_v62  ;;  %v5804_v2 = vsub.f32 %v5756_v23, %v5782_v25 }
0x21e8   : > { %v9302_v61 = vpop.eup %8173  ;;  %v5828_v8 = vmul.f32 1.442695, %v5807_v3 }
0x21e9   : > { %v9304_v11 = vpop.eup %8175  ;;  %v5822_v12 = vmul.f32 1.442695, %v5804_v2  ;;  %v5785_v14 = vpop.xlane.xlu0 %5784  ;;  %v5843_v20 = vsel %vm4447_vm6, %v9302_v61, 0.0 }
0x21ea   : > { %8183 = vpow2.f32 %v5828_v8  ;;  %v5805_v6 = vsub.f32 %v9282_v35, %v5785_v14  ;;  %v5834_v4 = vsel %vm4447_vm6, %v9304_v11, 0.0  ;;  %v5794_v19 = vpop.xlane.xlu1 %5793  ;;  %5844 = vadd.xlane.f32.xlu0 %v5843_v20 }
0x21eb   : > { %8185 = vpow2.f32 %v5822_v12  ;;  %5835 = vadd.xlane.f32.xlu1 %v5834_v4  ;;  %v5808_v21 = vsub.f32 %v9284_v50, %v5794_v19 }
0x21ec   : > { %v8178_v23 = vpop.eup %8177  ;;  %v5824_v26 = vmul.f32 1.442695, %v5805_v6 }
0x21ed   : > { %v9312_v27 = vpop.eup %8179  ;;  %v5830_v29 = vmul.f32 1.442695, %v5808_v21  ;;  %v5797_v30 = vpop.xlane.xlu0 %5796  ;;  %v5846_v24 = vsel %vm4447_vm6, %v8178_v23, 0.0 }
0x21ee   : > { %8187 = vpow2.f32 %v5824_v26  ;;  %v5809_v16 = vsub.f32 %v9288_v45, %v5797_v30  ;;  %v5837_v22 = vsel %vm4447_vm6, %v9312_v27, 0.0 }
0x21ef   : > { %8189 = vpow2.f32 %v5830_v29  ;;  %5847 = vadd.xlane.f32.xlu1 %v5846_v24  ;;  %5838 = vadd.xlane.f32.xlu0 %v5837_v22 }
0x21f0   : > { %v5832_v17 = vmul.f32 1.442695, %v5809_v16 }
0x21f2   : > { %8191 = vpow2.f32 %v5832_v17 }
0x21f4   : > { %v9318_v35 = vpop.eup %8181 }
0x21f5   : > { %v5858_v50 = vsel %vm4447_vm6, %v9318_v35, 0.0 }
0x21f6   : > { %5859 = vadd.xlane.f32.xlu1 %v5858_v50  ;;  %v8038_v50 = vld [vmem:[%s9539_s6 + $0x10] sm:$0xff]  }
0x21f7   : > { %v9322_v28 = vpop.eup %8183 }
0x21f8   : > { %v9324_v36 = vpop.eup %8185  ;;  %v5861_v45 = vsel %vm4447_vm6, %v9322_v28, 0.0 }
0x21f9   : > { %5862 = vadd.xlane.f32.xlu0 %v5861_v45  ;;  %v5852_v38 = vsel %vm4447_vm6, %v9324_v36, 0.0 }
0x21fa   : > { %5853 = vadd.xlane.f32.xlu1 %v5852_v38 }
0x21fb   : > { %v9330_v40 = vpop.eup %8187 }
0x21fc   : > { %v9332_v46 = vpop.eup %8189  ;;  %v5855_v47 = vsel %vm4447_vm6, %v9330_v40, 0.0 }
0x21fd   : > { %5856 = vadd.xlane.f32.xlu0 %v5855_v47  ;;  %v5864_v48 = vsel %vm4447_vm6, %v9332_v46, 0.0 }
0x21fe   : > { %5865 = vadd.xlane.f32.xlu1 %v5864_v48 }
0x21ff   : > { %v9338_v1 = vpop.eup %8191 }
0x2200   : > { %v5867_v42 = vsel %vm4447_vm6, %v9338_v1, 0.0 }
0x2201   : > { %5868 = vadd.xlane.f32.xlu0 %v5867_v42 }
0x226f   : > { %v5851_v49 = vpop.xlane.xlu0 %5850 }
0x2270   : > { %v5842_v39 = vpop.xlane.xlu1 %5841  ;;  %8193 = vrcp.f32 %v5851_v49 }
0x2271   : > { %8195 = vrcp.f32 %v5842_v39 }
0x2273   : > { %v5845_v33 = vpop.xlane.xlu0 %5844 }
0x2274   : > { %v5836_v37 = vpop.xlane.xlu1 %5835  ;;  %8197 = vrcp.f32 %v5845_v33 }
0x2275   : > { %8199 = vrcp.f32 %v5836_v37 }
0x2278   : > { %v5848_v41 = vpop.xlane.xlu1 %5847  ;;  %v5839_v51 = vpop.xlane.xlu0 %5838 }
0x2279   : > { %8201 = vrcp.f32 %v5848_v41 }
0x227a   : > { %8203 = vrcp.f32 %v5839_v51 }
0x227d   : > { %v8194_v13 = vpop.eup %8193 }
0x227e   : > { %v8196_v55 = vpop.eup %8195  ;;  %v5881_v53 = vmul.f32 %v8194_v13, %v9294_v58 }
0x227f   : > { %v5860_v52 = vpop.xlane.xlu1 %5859  ;;  %v5875_v2 = vmul.f32 %v8196_v55, %v9296_v60  ;;  %v6088_v60 = vsel %vm2239_vm4, %v9266_v32, 0 }
0x2280   : > { %8205 = vrcp.f32 %v5860_v52  ;;  %v5897_v4 = vpack.c.bf16 %v5881_v53, %v5881_v53 }
0x2281   : > { %v8198_v57 = vpop.eup %8197  ;;  %v5895_v58 = vpack.c.bf16 %v5875_v2, %v5875_v2 }
0x2282   : > { %v5863_v0 = vpop.xlane.xlu0 %5862  ;;  %v8200_v54 = vpop.eup %8199  ;;  %v5877_v62 = vmul.f32 %v8198_v57, %v9302_v61  ;;  %v6031_v61 = vsel %vm2239_vm4, %v9264_v31, 0 }
0x2283   : > { %v5854_v56 = vpop.xlane.xlu1 %5853  ;;  %v5871_v8 = vmul.f32 %v8200_v54, %v9304_v11 }
0x2284   : > { %8207 = vrcp.f32 %v5854_v56 }
0x2285   : > { %8209 = vrcp.f32 %v5863_v0 }
0x2286   : > { %v8202_v44 = vpop.eup %8201  ;;  %v5857_v34 = vpop.xlane.xlu0 %5856 }
0x2287   : > { %v8204_v59 = vpop.eup %8203  ;;  %8211 = vrcp.f32 %v5857_v34  ;;  %v5866_v3 = vpop.xlane.xlu1 %5865  ;;  %v5879_v25 = vmul.f32 %v8202_v44, %v8178_v23 }
0x2288   : > { %8213 = vrcp.f32 %v5866_v3  ;;  %v5873_v12 = vmul.f32 %v8204_v59, %v9312_v27 }
0x2289   : > { %v5896_v14 = vpack.c.bf16 %v5879_v25, %v5877_v62 }
0x228a   : > { %v5869_v20 = vpop.xlane.xlu0 %5868  ;;  %v5894_v6 = vpack.c.bf16 %v5873_v12, %v5871_v8  ;;  %v7131_v8 = vld [vmem:[%s9540_s8 + $0x1] ss:$0 sm:$0xff] }
0x228b   : > { %8215 = vrcp.f32 %v5869_v20  ;;  %7822 = vmatprep.mubr.msk.bf16.mxu1 %vm4447_vm6, %v5896_v14 }
0x228c   : > { %7814 = vmatprep.mubr.msk.bf16.mxu0 %vm4447_vm6, %v5894_v6  ;;  %7823 = vmatmul.mubr.msk.bf16.vlgmr.msra.gmra.mxu1 %vm4447_vm6, %v5897_v4 }
0x228d   : > { %7815 = vmatmul.mubr.msk.bf16.vlgmr.msra.gmra.mxu0 %vm4447_vm6, %v5895_v58  ;;  %7835 = vmatpush3.bf16.msra.mxu1 %v6088_v60  ;;  %v8206_v11 = vpop.eup %8205 }
0x228e   : > { %7827 = vmatpush3.bf16.msra.mxu0 %v6031_v61  ;;  %7836 = vmatprep.subr.bf16.mxu1 %v9244_v10  ;;  %v5887_v32 = vmul.f32 %v8206_v11, %v9318_v35  ;;  %v8037_v35 = vld [vmem:[%s9539_s6 + $0x18] sm:$0xff]  }
0x228f   : > { %7828 = vmatprep.subr.bf16.mxu0 %v9242_v9 }
0x2290   : > { %v5899_v16 = vpack.c.bf16 %v5887_v32, %v5887_v32 }
0x2291   : > { %7837 = vmatpush3.bf16.msra.mxu1 %v9244_v10  ;;  %v8208_v19 = vpop.eup %8207 }
0x2292   : > { %7829 = vmatpush3.bf16.msra.mxu0 %v9242_v9  ;;  %v8210_v21 = vpop.eup %8209  ;;  %v5883_v31 = vmul.f32 %v8208_v19, %v9324_v36 }
0x2293   : > { %v5889_v29 = vmul.f32 %v8210_v21, %v9322_v28  ;;  %7842 = vmatprep.subr.bf16.mxu0 %v8037_v35 }
0x2294   : > { %v8212_v23 = vpop.eup %8211 }
0x2295   : > { %v8214_v26 = vpop.eup %8213  ;;  %v5885_v27 = vmul.f32 %v8212_v23, %v9330_v40 }
0x2296   : > { %v5891_v30 = vmul.f32 %v8214_v26, %v9332_v46 }
0x2297   : > { %v5898_v24 = vpack.c.bf16 %v5885_v27, %v5883_v31 }
0x2298   : > { %v8216_v10 = vpop.eup %8215  ;;  %v5900_v22 = vpack.c.bf16 %v5891_v30, %v5889_v29 }
0x2299   : > { %v5893_v9 = vmul.f32 %v8216_v10, %v9338_v1  ;;  %7830 = vmatprep.mubr.msk.bf16.mxu0 %vm4447_vm6, %v5898_v24 }
0x229a   : > { %7831 = vmatmul.mubr.msk.bf16.vlgmr.msra.gmra.mxu0 %vm4447_vm6, %v5899_v16  ;;  %7838 = vmatprep.mubr.msk.bf16.mxu1 %vm4447_vm6, %v5900_v22  ;;  %v8039_v22 = vld [vmem:[%s9541_s9 + $0x18] sm:$0xff]  }
0x229b   : > { %v5901_v17 = vpack.c.bf16 %v5893_v9, %v5893_v9  ;;  %7843 = vmatpush3.bf16.msra.mxu0 %v8037_v35  ;;  %v8040_v9 = vld [vmem:[%s9541_s9 + $0x10] sm:$0xff]   ;;  %7850 = vmatprep.subr.bf16.mxu1 %v8039_v22 }
0x229c   : > { %7844 = vmatprep.subr.bf16.mxu0 %v8038_v50 }
0x229d   : > { %7839 = vmatmul.mubr.msk.bf16.vlgmr.msra.gmra.mxu1 %vm4447_vm6, %v5901_v17 }
0x229e   : > { %7851 = vmatpush3.bf16.msra.mxu1 %v8039_v22 }
0x229f   : > { %7845 = vmatpush3.bf16.msra.mxu0 %v8038_v50  ;;  %7852 = vmatprep.subr.bf16.mxu1 %v8040_v9 }
0x22a2   : > { %7853 = vmatpush3.bf16.msra.mxu1 %v8040_v9 }
0x234c   : > { %v7824_v28 = vpop.f32.mrf.mxu1 }
0x234d   : > { %v7816_v36 = vpop.f32.mrf.mxu0 }
0x234e   : > { %v6010_v45 = vpop.f32.mrf.mxu1  ;;  %v6140_v49 = vadd.f32 %v7824_v28, %v7816_v36 }
0x234f   : > { %v5953_v38 = vpop.f32.mrf.mxu0 }
0x2350   : > { %v7825_v40 = vpop.f32.mrf.mxu1  ;;  %v6138_v33 = vadd.f32 %v6010_v45, %v5953_v38 }
0x2351   : > { %v7817_v46 = vpop.f32.mrf.mxu0 }
0x2352   : > { %v6013_v1 = vpop.f32.mrf.mxu1 }
0x2353   : > { %v5956_v47 = vpop.f32.mrf.mxu0 }
0x2354   : > { %v6139_v41 = vadd.f32 %v6013_v1, %v5956_v47  ;;  %v6269_v1 = vrot.slane %v9199_v18, %v8632_v63 }
0x235a   : > { %v7832_v48 = vpop.f32.mrf.mxu0 }
0x235b   : > { %v6143_v51 = vadd.f32 %v7832_v48, %v6140_v49 }
0x235c   : > { %v6067_v42 = vpop.f32.mrf.mxu0 }
0x235d   : > { %v7840_v39 = vpop.f32.mrf.mxu1  ;;  %v6141_v13 = vadd.f32 %v6138_v33, %v6067_v42 }
0x235e   : > { %v7833_v37 = vpop.f32.mrf.mxu0  ;;  %v6146_v57 = vadd.f32 %v7840_v39, %v6143_v51 }
0x235f   : > { %v6124_v52 = vpop.f32.mrf.mxu1  ;;  %v6276_v37 = vrot.slane %v9199_v18, %v8733_v43  ;;  %v8042_v43 = vld [vmem:[%s9542_s11 + $0x70] sm:$0xff]   ;;  %v8043_v18 = vld [vmem:[%s9542_s11 + $0x68] sm:$0xff]  }
0x2360   : > { %v6070_v0 = vpop.f32.mrf.mxu0  ;;  %v6144_v44 = vadd.f32 %v6141_v13, %v6124_v52  ;;  %v6148_v59 = vpack.c.bf16 %v6146_v57, %v6146_v57  ;;  %v8041_v57 = vld [vmem:[%s9542_s11 + $0x78] sm:$0xff]  }
0x2361   : > { %v6142_v55 = vadd.f32 %v6139_v41, %v6070_v0  ;;  %v7841_v56 = vpop.f32.mrf.mxu1  ;;  %7858 = vmatprep.subr.bf16.mxu0 %v8041_v57 }
0x2363   : > { %v6127_v54 = vpop.f32.mrf.mxu1 }
0x2364   : > { %v6145_v34 = vadd.f32 %v6142_v55, %v6127_v54  ;;  %v8044_v54 = vld [vmem:[%s9542_s11 + $0x60] sm:$0xff]  }
0x2366   : > { %v6147_v53 = vpack.c.bf16 %v6145_v34, %v6144_v44  ;;  %v8045_v44 = vld [vmem:[%s9542_s11 + $0x58] sm:$0xff]   ;;  %v8046_v34 = vld [vmem:[%s9542_s11 + $0x50] sm:$0xff]  }
0x2368   : > { %7846 = vmatprep.mubr.msk.bf16.mxu0 %vm1760_vm3, %v6147_v53  ;;  %v8047_v53 = vld [vmem:[%s9542_s11 + $0x48] sm:$0xff]  }
0x2369   : > { %7847 = vmatmul.mubr.msk.bf16.vlgmr.msra.gmra.mxu0 %vm1760_vm3, %v6148_v59  ;;  %v8048_v59 = vld [vmem:[%s9542_s11 + $0x40] sm:$0xff]  }
0x236a   : > { %7859 = vmatpush3.bf16.msra.mxu0 %v8041_v57 }
0x236b   : > { %7860 = vmatprep.subr.bf16.mxu0 %v8042_v43 }
0x236e   : > { %7861 = vmatpush3.bf16.msra.mxu0 %v8042_v43 }
0x236f   : > { %7862 = vmatprep.subr.bf16.mxu0 %v8043_v18 }
0x2372   : > { %7863 = vmatpush3.bf16.msra.mxu0 %v8043_v18 }
0x2373   : > { %7864 = vmatprep.subr.bf16.mxu0 %v8044_v54 }
0x2376   : > { %7865 = vmatpush3.bf16.msra.mxu0 %v8044_v54 }
0x2377   : > { %7866 = vmatprep.subr.bf16.mxu0 %v8045_v44 }
0x237a   : > { %7867 = vmatpush3.bf16.msra.mxu0 %v8045_v44 }
0x237b   : > { %7868 = vmatprep.subr.bf16.mxu0 %v8046_v34 }
0x237e   : > { %7869 = vmatpush3.bf16.msra.mxu0 %v8046_v34 }
0x237f   : > { %7870 = vmatprep.subr.bf16.mxu0 %v8047_v53 }
0x2382   : > { %7871 = vmatpush3.bf16.msra.mxu0 %v8047_v53 }
0x2383   : > { %7872 = vmatprep.subr.bf16.mxu0 %v8048_v59 }
0x2386   : > { %7873 = vmatpush3.bf16.msra.mxu0 %v8048_v59 }
0x2429   : > { %v7848_v3 = vpop.f32.mrf.mxu0 }
0x242a   : > { %v6217_v25 = vadd.f32 %v7848_v3, %v9178_v5  ;;  %v7132_v3 = vld [vmem:[%s9543_s14 + $0x1] ss:$0 sm:$0xff] }
0x242b   : > { %v6201_v62 = vpop.f32.mrf.mxu0 }
0x242c   : > { %v6215_v2 = vadd.f32 %v6201_v62, %v9176_v15  ;;  %v9378_v6 = vadd.f32 %v7131_v8, %v6217_v25 }
0x242d   : > { %v7849_v12 = vpop.f32.mrf.mxu0 }
0x242e   : > { %v9376_v14 = vadd.f32 %v7131_v8, %v6215_v2  ;;  %v6233_v5 = vsel %vm1760_vm3, %v9378_v6, 0.0 }
0x242f   : > { %v6204_v20 = vpop.f32.mrf.mxu0 }
0x2430   : > { %v6216_v4 = vadd.f32 %v6204_v20, %v9183_v7  ;;  %v6227_v58 = vsel %vm1760_vm3, %v9376_v14, 0.0 }
0x2431   : > { %6228 = vadd.xlane.f32.xlu1 %v6227_v58 }
0x2432   : > { %v9383_v60 = vadd.f32 %v7131_v8, %v6216_v4 }
0x2434   : > { %v6230_v15 = vsel %vm1760_vm3, %v9383_v60, 0.0 }
0x2435   : > { %6234 = vadd.xlane.f32.xlu1 %v6233_v5  ;;  %6231 = vadd.xlane.f32.xlu0 %v6230_v15 }
0x24ba   : > { %v6229_v61 = vpop.xlane.xlu1 %6228 }
0x24bb   : > { %v6236_v11 = vmul.f32 0.03125, %v6229_v61 }
0x24bd   : > { %v6239_v19 = vsub.f32 %v9376_v14, %v6236_v11 }
0x24be   : > { %v6235_v7 = vpop.xlane.xlu1 %6234  ;;  %v6232_v21 = vpop.xlane.xlu0 %6231 }
0x24bf   : > { %v6238_v23 = vmul.f32 0.03125, %v6235_v7  ;;  %v6237_v32 = vmul.f32 0.03125, %v6232_v21  ;;  %v6242_v26 = vmul.f32 %v6239_v19, %v6239_v19 }
0x24c1   : > { %v6241_v31 = vsub.f32 %v9378_v6, %v6238_v23  ;;  %v6240_v27 = vsub.f32 %v9383_v60, %v6237_v32  ;;  %v6245_v29 = vsel %vm1760_vm3, %v6242_v26, 0.0 }
0x24c2   : > { %6246 = vadd.xlane.f32.xlu0 %v6245_v29 }
0x24c3   : > { %v6244_v30 = vmul.f32 %v6241_v31, %v6241_v31  ;;  %v6243_v24 = vmul.f32 %v6240_v27, %v6240_v27 }
0x24c5   : > { %v6251_v10 = vsel %vm1760_vm3, %v6244_v30, 0.0  ;;  %v6248_v16 = vsel %vm1760_vm3, %v6243_v24, 0.0 }
0x24c6   : > { %6252 = vadd.xlane.f32.xlu0 %v6251_v10  ;;  %6249 = vadd.xlane.f32.xlu1 %v6248_v16 }
0x254b   : > { %v6247_v17 = vpop.xlane.xlu0 %6246 }
0x254c   : > { %v6254_v35 = vmul.f32 0.03125, %v6247_v17 }
0x254e   : > { %v6257_v50 = vadd.f32 1e-05, %v6254_v35 }
0x254f   : > { %v6250_v28 = vpop.xlane.xlu1 %6249  ;;  %v6253_v36 = vpop.xlane.xlu0 %6252 }
0x2550   : > { %8217 = vrsqrt.f32 %v6257_v50  ;;  %v6255_v45 = vmul.f32 0.03125, %v6250_v28  ;;  %v6256_v38 = vmul.f32 0.03125, %v6253_v36 }
0x2552   : > { %v6258_v40 = vadd.f32 1e-05, %v6255_v45  ;;  %v6259_v46 = vadd.f32 1e-05, %v6256_v38 }
0x2554   : > { %8219 = vrsqrt.f32 %v6258_v40 }
0x2555   : > { %8221 = vrsqrt.f32 %v6259_v46 }
0x255d   : > { %v8218_v47 = vpop.eup %8217 }
0x255e   : > { %v6263_v48 = vmul.f32 %v8218_v47, %v6239_v19 }
0x2560   : > { %v6270_v33 = vmul.f32 %v6269_v1, %v6263_v48 }
0x2561   : > { %v8220_v42 = vpop.eup %8219 }
0x2562   : > { %v8222_v49 = vpop.eup %8221  ;;  %v6264_v39 = vmul.f32 %v8220_v42, %v6240_v27  ;;  %v6277_v13 = vadd.f32 %v6276_v37, %v6270_v33 }
0x2563   : > { %v6265_v41 = vmul.f32 %v8222_v49, %v6241_v31  ;;  %v7145_v49 = vld [vmem:[%s9544_s15 + $0x1] ss:$0 sm:$0xff] }
0x2564   : > { %v6271_v51 = vmul.f32 %v6269_v1, %v6264_v39 }
0x2565   : > { %v6272_v52 = vmul.f32 %v6269_v1, %v6265_v41 }
0x2566   : > { %v6278_v0 = vadd.f32 %v6276_v37, %v6271_v51 }
0x2567   : > { %v6279_v55 = vadd.f32 %v6276_v37, %v6272_v52 }
0x2568   : > { %v6280_v56 = vpack.c.bf16 %v6278_v0, %v6277_v13 }
0x2569   : > { %v6281_v63 = vpack.c.bf16 %v6279_v55, %v6279_v55 }
0x256a   : > { %7854 = vmatprep.mubr.msk.bf16.mxu1 %vm1760_vm3, %v6280_v56 }
0x256b   : > { %7855 = vmatmul.mubr.msk.bf16.vlgmr.msra.gmra.mxu1 %vm1760_vm3, %v6281_v63 }
0x262b   : > { %v7856_v62 = vpop.f32.mrf.mxu1 }
0x262c   : > { %v6349_v25 = vadd.f32 %v7856_v62, %v7132_v3 }
0x262d   : > { %v6340_v2 = vpop.f32.mrf.mxu1 }
0x262e   : > { %v6356_v8 = vmul.f32 %v6349_v25, %v6349_v25  ;;  %v6341_v12 = vadd.f32 %v7132_v3, %v6340_v2  ;;  %v8050_v2 = vld [vmem:[%s8532_s12] sm:$0xff]  }
0x262f   : > { %v7857_v20 = vpop.f32.mrf.mxu1 }
0x2630   : > { %v6359_v4 = vmul.f32 %v6356_v8, %v6349_v25  ;;  %v6354_v58 = vmul.f32 %v6341_v12, %v6341_v12 }
0x2631   : > { %v6343_v5 = vpop.f32.mrf.mxu1 }
0x2632   : > { %v6362_v15 = vmul.f32 0.044715, %v6359_v4  ;;  %v6357_v61 = vmul.f32 %v6354_v58, %v6341_v12  ;;  %v6344_v11 = vadd.f32 %v7132_v3, %v6343_v5 }
0x2634   : > { %v6365_v19 = vadd.f32 %v6362_v15, %v6349_v25  ;;  %v6360_v7 = vmul.f32 0.044715, %v6357_v61  ;;  %v6355_v21 = vmul.f32 %v6344_v11, %v6344_v11 }
0x2636   : > { %v6368_v23 = vmul.f32 0.7978846, %v6365_v19  ;;  %v6363_v32 = vadd.f32 %v6360_v7, %v6341_v12  ;;  %v6358_v26 = vmul.f32 %v6355_v21, %v6344_v11  ;;  %v7146_v21 = vld [vmem:[%s9545_s0] ss:$0 sm:$0xff]  ;;  %s1537_s0 = scalar_lea.vmem %s8542_s17, %s8910_s2 }
0x2638   : > { %8223 = vtanh.f32 %v6368_v23  ;;  %v6366_v31 = vmul.f32 0.7978846, %v6363_v32  ;;  %v6361_v27 = vmul.f32 0.044715, %v6358_v26 }
0x263a   : > { %8225 = vtanh.f32 %v6366_v31  ;;  %v6364_v29 = vadd.f32 %v6361_v27, %v6344_v11 }
0x263c   : > { %v6367_v30 = vmul.f32 0.7978846, %v6364_v29  ;;  %v7147_v29 = vld [vmem:[%s9546_s3] ss:$0 sm:$0xff]  ;;  %s9548_s3 = sld [smem:[#allocation7_spill]] }
0x263e   : > { %8227 = vtanh.f32 %v6367_v30 }
0x2642   : > { %s1532_s4 = scalar_lea.vmem %s9548_s3, %s8910_s2  ;;  %s1540_s2 = scalar_lea.vmem %s8547_s30, %s9550_s1 }
0x2645   : > { %v8224_v24 = vpop.eup %8223 }
0x2646   : > { %v6374_v16 = vadd.f32 1.0, %v8224_v24 }
0x2647   : > { %v8226_v10 = vpop.eup %8225 }
0x2648   : > { %v6372_v22 = vadd.f32 1.0, %v8226_v10  ;;  %v6377_v17 = vmul.f32 0.5, %v6374_v16 }
0x264a   : > { %v6375_v50 = vmul.f32 0.5, %v6372_v22  ;;  %v6380_v36 = vmul.f32 %v6377_v17, %v6349_v25  ;;  %v8049_v25 = vld [vmem:[%s8532_s12 + $0x8] sm:$0xff]  }
0x264b   : > { %v8228_v9 = vpop.eup %8227  ;;  %7878 = vmatprep.subr.bf16.mxu1 %v8049_v25 }
0x264c   : > { %v6373_v35 = vadd.f32 1.0, %v8228_v9  ;;  %v6378_v45 = vmul.f32 %v6375_v50, %v6341_v12  ;;  %v6382_v46 = vpack.c.bf16 %v6380_v36, %v6380_v36  ;;  %7879 = vmatpush3.bf16.msra.mxu1 %v8049_v25 }
0x264d   : > { %7880 = vmatprep.subr.bf16.mxu1 %v8050_v2 }
0x264e   : > { %v6376_v28 = vmul.f32 0.5, %v6373_v35  ;;  %v7148_v35 = vld [vmem:[%s8537_s13] ss:$0 sm:$0xff] }
0x2650   : > { %v6379_v38 = vmul.f32 %v6376_v28, %v6344_v11  ;;  %7881 = vmatpush3.bf16.msra.mxu1 %v8050_v2 }
0x2652   : > { %v6381_v40 = vpack.c.bf16 %v6379_v38, %v6378_v45  ;;  %v6632_v45 = vld [vmem:[%s1527_s5] sm:$0xff] }
0x2654   : > { %7874 = vmatprep.mubr.bf16.mxu0 %v6381_v40  ;;  %v6634_v40 = vld [vmem:[%s1527_s5 + $0x10] sm:$0xff] }
0x2655   : > { %7875 = vmatmul.mubr.bf16.vlgmr.msra.gmra.mxu0 %v6382_v46 }
0x2715   : > { %v7876_v47 = vpop.f32.mrf.mxu0 }
0x2716   : > { %v6481_v1 = vadd.f32 %v7876_v47, %v9378_v6 }
0x2717   : > { %v6465_v48 = vpop.f32.mrf.mxu0 }
0x2718   : > { %v6479_v42 = vadd.f32 %v6465_v48, %v9376_v14  ;;  %v6490_v41 = vadd.f32 %v7145_v49, %v6481_v1  ;;  %v6633_v1 = vld [vmem:[%s1527_s5 + $0x8] sm:$0xff] }
0x2719   : > { %v7877_v39 = vpop.f32.mrf.mxu0 }
0x271a   : > { %v6488_v33 = vadd.f32 %v7145_v49, %v6479_v42  ;;  %v6499_v0 = vsel %vm1760_vm3, %v6490_v41, 0.0 }
0x271b   : > { %v6468_v37 = vpop.f32.mrf.mxu0 }
0x271c   : > { %v6480_v51 = vadd.f32 %v6468_v37, %v9383_v60  ;;  %v6493_v52 = vsel %vm1760_vm3, %v6488_v33, 0.0 }
0x271d   : > { %6494 = vadd.xlane.f32.xlu1 %v6493_v52 }
0x271e   : > { %v6489_v13 = vadd.f32 %v7145_v49, %v6480_v51 }
0x2720   : > { %v6496_v55 = vsel %vm1760_vm3, %v6489_v13, 0.0 }
0x2721   : > { %6500 = vadd.xlane.f32.xlu1 %v6499_v0  ;;  %6497 = vadd.xlane.f32.xlu0 %v6496_v55  ;;  %v6651_v0 = vld [vmem:[%s1532_s4 + $0x8] sm:$0xff] }
0x27a6   : > { %v6495_v6 = vpop.xlane.xlu1 %6494 }
0x27a7   : > { %v6502_v56 = vmul.f32 0.03125, %v6495_v6  ;;  %v6652_v6 = vld [vmem:[%s1532_s4 + $0x10] sm:$0xff] }
0x27a9   : > { %v6505_v14 = vsub.f32 %v6488_v33, %v6502_v56 }
0x27aa   : > { %v6501_v63 = vpop.xlane.xlu1 %6500  ;;  %v6498_v57 = vpop.xlane.xlu0 %6497 }
0x27ab   : > { %v6504_v43 = vmul.f32 0.03125, %v6501_v63  ;;  %v6503_v18 = vmul.f32 0.03125, %v6498_v57  ;;  %v6508_v60 = vmul.f32 %v6505_v14, %v6505_v14 }
0x27ad   : > { %v6507_v54 = vsub.f32 %v6490_v41, %v6504_v43  ;;  %v6506_v44 = vsub.f32 %v6489_v13, %v6503_v18  ;;  %v6511_v34 = vsel %vm1760_vm3, %v6508_v60, 0.0  ;;  %v6650_v13 = vld [vmem:[%s1532_s4] sm:$0xff] }
0x27ae   : > { %6512 = vadd.xlane.f32.xlu0 %v6511_v34 }
0x27af   : > { %v6510_v53 = vmul.f32 %v6507_v54, %v6507_v54  ;;  %v6509_v59 = vmul.f32 %v6506_v44, %v6506_v44 }
0x27b1   : > { %v6517_v3 = vsel %vm1760_vm3, %v6510_v53, 0.0  ;;  %v6514_v62 = vsel %vm1760_vm3, %v6509_v59, 0.0 }
0x27b2   : > { %6518 = vadd.xlane.f32.xlu0 %v6517_v3  ;;  %6515 = vadd.xlane.f32.xlu1 %v6514_v62 }
0x2837   : > { %v6513_v8 = vpop.xlane.xlu0 %6512 }
0x2838   : > { %v6520_v12 = vmul.f32 0.03125, %v6513_v8 }
0x283a   : > { %v6523_v20 = vadd.f32 1e-05, %v6520_v12 }
0x283b   : > { %v6516_v4 = vpop.xlane.xlu1 %6515  ;;  %v6519_v58 = vpop.xlane.xlu0 %6518 }
0x283c   : > { %8229 = vrsqrt.f32 %v6523_v20  ;;  %v6521_v5 = vmul.f32 0.03125, %v6516_v4  ;;  %v6522_v15 = vmul.f32 0.03125, %v6519_v58 }
0x283e   : > { %v6524_v61 = vadd.f32 1e-05, %v6521_v5  ;;  %v6525_v11 = vadd.f32 1e-05, %v6522_v15 }
0x2840   : > { %8231 = vrsqrt.f32 %v6524_v61 }
0x2841   : > { %8233 = vrsqrt.f32 %v6525_v11 }
0x2849   : > { %v8230_v19 = vpop.eup %8229 }
0x284a   : > { %v6529_v7 = vmul.f32 %v8230_v19, %v6505_v14 }
0x284c   : > { %v6538_v31 = vmul.f32 %v7146_v21, %v6529_v7 }
0x284d   : > { %v8232_v23 = vpop.eup %8231 }
0x284e   : > { %v8234_v32 = vpop.eup %8233  ;;  %v6530_v26 = vmul.f32 %v8232_v23, %v6506_v44  ;;  %v6547_v10 = vadd.f32 %v7147_v29, %v6538_v31 }
0x284f   : > { %v6531_v27 = vmul.f32 %v8234_v32, %v6507_v54 }
0x2850   : > { %v6539_v30 = vmul.f32 %v7146_v21, %v6530_v26 }
0x2851   : > { %v6540_v24 = vmul.f32 %v7146_v21, %v6531_v27 }
0x2852   : > { %v6548_v16 = vadd.f32 %v7147_v29, %v6539_v30 }
0x2853   : > { %v6549_v22 = vadd.f32 %v7147_v29, %v6540_v24 }
0x2854   : > { %v6550_v9 = vpack.c.bf16 %v6548_v16, %v6547_v10 }
0x2855   : > { %v6551_v17 = vpack.c.bf16 %v6549_v22, %v6549_v22 }
0x2856   : > { %7882 = vmatprep.mubr.msk.bf16.mxu1 %vm1760_vm3, %v6550_v9 }
0x2857   : > { %7883 = vmatmul.mubr.msk.bf16.vlgmr.msra.gmra.mxu1 %vm1760_vm3, %v6551_v17 }
0x2917   : > { %v7884_v50 = vpop.f32.mrf.mxu1 }
0x2918   : > { %v6624_v28 = vadd.f32 %v7884_v50, %v7148_v35 }
0x2919   : > { %v6615_v36 = vpop.f32.mrf.mxu1 }
0x291a   : > { %6631 = vst [vmem:[%s1537_s0 + $0x10] sm:$0xff] %v6624_v28  ;;  %v6616_v38 = vadd.f32 %v7148_v35, %v6615_v36  ;;  %v6637_v42 = vsub.f32 %v6624_v28, %v6634_v40 }
0x291b   : > { %v7885_v46 = vpop.f32.mrf.mxu1 }
0x291c   : > { %6629 = vst [vmem:[%s1537_s0] sm:$0xff] %v6616_v38  ;;  %v6635_v47 = vsub.f32 %v6616_v38, %v6632_v45  ;;  %v6640_v37 = vmul.f32 %v6637_v42, %v6637_v42 }
0x291d   : > { %v6618_v48 = vpop.f32.mrf.mxu1 }
0x291e   : > { %v6638_v49 = vmul.f32 %v6635_v47, %v6635_v47  ;;  %v6619_v39 = vadd.f32 %v7148_v35, %v6618_v48 }
0x2920   : > { %6630 = vst [vmem:[%s1537_s0 + $0x8] sm:$0xff] %v6619_v39  ;;  %v6636_v33 = vsub.f32 %v6619_v39, %v6633_v1  ;;  %6641 = vadd.xlane.f32.xlu1 %v6638_v49 }
0x2922   : > { %v6639_v41 = vmul.f32 %v6636_v33, %v6636_v33 }
0x2924   : > { %6643 = vadd.xlane.f32.xlu0 %v6639_v41  ;;  %6645 = vadd.xlane.f32.xlu1 %v6640_v37 }
0x29a9   : > { %v6642_v51 = vpop.xlane.xlu1 %6641 }
0x29aa   : > { %v6647_v52 = vmul.f32 0.020833334, %v6642_v51 }
0x29ac   : > { %v6653_v14 = vmul.f32 %v6650_v13, %v6647_v52 }
0x29ad   : > { %v6644_v55 = vpop.xlane.xlu0 %6643  ;;  %v6646_v56 = vpop.xlane.xlu1 %6645 }
0x29ae   : > { %v6648_v63 = vmul.f32 0.020833334, %v6644_v55  ;;  %v6649_v57 = vmul.f32 0.020833334, %v6646_v56  ;;  %v6657_v60 = vsel %vm6656_vm7, %v6653_v14, 0.0 }
0x29b0   : > { %v6654_v43 = vmul.f32 %v6651_v0, %v6648_v63  ;;  %v6655_v18 = vmul.f32 %v6652_v6, %v6649_v57 }
0x29b2   : > { %v6658_v54 = vsel %vm6656_vm7, %v6654_v43, 0.0  ;;  %v6660_v34 = vsel %vm6656_vm7, %v6655_v18, 0.0 }
0x29b3   : > { %v6659_v44 = vadd.f32 %v6658_v54, %v6657_v60 }
0x29b5   : > { %v6661_v53 = vadd.f32 %v6660_v34, %v6659_v44 }
0x29b7   : > { %v6662_v59 = vrot.slane %v6661_v53, 4 }
0x29b9   : > { %v6663_v3 = vadd.f32 %v6662_v59, %v6661_v53 }
0x29bb   : > { %v6664_v62 = vrot.slane %v6663_v3, 2 }
0x29bd   : > { %v6665_v25 = vadd.f32 %v6664_v62, %v6663_v3 }
0x29bf   : > { %v6666_v2 = vrot.slane %v6665_v25, 1 }
0x29c1   : > { %v6667_v8 = vadd.f32 %v6666_v2, %v6665_v25 }
0x29c3   : > { %6670 = vperm.xlu0 %7970, %v6667_v8  }
0x2a3e   : > { %v6671_v12 = vpop.permute.xlu0 %6670 }
0x2a3f   : > { %6673 = vst [vmem:[%s1540_s2] sm:$0x1] %v6671_v12 }
0x2a40 PF: > { %s108_s28 = sadd.s32 1, %s8246_s28  }
0x2a41   : > { %p105_p4 = scmp.ge.s32.totalorder %s108_s28, 4  }
0x2a43   :  { %107 = sbr.rel (!%p105_p4) target bundleno = 94 (0x5e), region = 335 }

</bundles_post_ra>
